<compile_context>
chip_gen: v7x
topology: tpu7x:2x2x1
jax: 0.10.0
libtpu: 0.0.40
codegen_flags: <defaults>
</compile_context>

<pallas_src>
import functools
import math

import jax
import jax.numpy as jnp
from jax import lax
from jax.experimental import pallas as pl
from jax.experimental.pallas import tpu as pltpu

SQRT2 = math.sqrt(2.0)
_LN_EPS = 1e-5


def _gelu(x):
    # exact (erf-based) GELU, identical to torch.nn.functional.gelu default
    return 0.5 * x * (1.0 + lax.erf(x / SQRT2))


def _round_up(x, m):
    return ((x + m - 1) // m) * m


def _params(semantics, est_block_bytes):
    # double-buffered block footprint + headroom, capped so v7x (64 MiB physical VMEM)
    # keeps slack for compiler-internal scratch; v5e/v6e have far more room anyway.
    limit = int(min(max(2 * est_block_bytes + (4 << 20), 16 << 20), 44 << 20))
    return pltpu.CompilerParams(dimension_semantics=semantics, vmem_limit_bytes=limit)


# ------------------------------ matmul kernel ------------------------------- #

def _matmul_kernel(*refs, fuse_ln, apply_gelu):
    if fuse_ln:
        x_ref, w_ref, b_ref, g_ref, be_ref, o_ref, acc_ref = refs
    else:
        x_ref, w_ref, b_ref, o_ref, acc_ref = refs
    k = pl.program_id(2)

    @pl.when(k == 0)
    def _():
        # bias-initialized accumulator (saves a VALU pass at finalize)
        acc_ref[...] = jnp.broadcast_to(b_ref[...], acc_ref.shape)

    x = x_ref[...]
    if fuse_ln:
        # LayerNorm over the (full) K axis of this x tile, then GELU — matches the
        # BidirectionalGRU's LayerNorm -> GELU prologue.
        xf = x.astype(jnp.float32)
        mu = jnp.mean(xf, axis=-1, keepdims=True)
        var = jnp.mean(jnp.square(xf - mu), axis=-1, keepdims=True)
        xf = (xf - mu) * lax.rsqrt(var + _LN_EPS)
        x = _gelu(xf * g_ref[...] + be_ref[...])
    acc_ref[...] += jnp.dot(x.astype(jnp.bfloat16), w_ref[...],
                            preferred_element_type=jnp.float32)

    @pl.when(k == pl.num_programs(2) - 1)
    def _():
        y = acc_ref[...]
        if apply_gelu:
            y = _gelu(y)
        o_ref[...] = y.astype(o_ref.dtype)


def matmul_bias(x, packed, *, apply_gelu=False, fuse_ln=None, out_dtype=jnp.float32,
                tm_max=256, tn_max=512, tk_max=1024):
    """x: (M, K) x packed bf16 weight (K, N) + f32 bias (1, N) -> (M, N).

    Tiled/pipelined MXU matmul with f32 accumulation.  Weights/biases are pre-packed at
    init (no per-call cast/pad copies).  Optional fused LayerNorm+GELU prologue over the
    K axis (requires a single K block) and GELU epilogue.  N is never padded: tiny N
    uses a full-N block (masked stores beat 8-12x padded writes + a de-pad copy here).
    """
    wp, bp = packed["w"], packed["b"]
    M, K = x.shape
    Kw, N = wp.shape
    assert K == Kw, (K, Kw)

    if N <= tn_max:
        tn = N
    else:
        tn = next((c for c in (tn_max, 512, 256, 128) if N % c == 0), N)

    if fuse_ln is not None or K <= tk_max:
        tk, nk = K, 1                       # all K in this model fit one block
    else:
        tk = next((c for c in (1024, 512, 256) if K % c == 0), K)
        nk = K // tk

    Mp = _round_up(M, 16)
    tm = min(tm_max, Mp)
    if tm == Mp and tn == N and Mp >= 64:
        # grid would be (1, 1, nk): split rows so v7x's second TensorCore gets a tile
        tm = _round_up(Mp // 2, 16)
    Mp = _round_up(Mp, tm)

    xp = jnp.pad(x, ((0, Mp - M), (0, 0))) if Mp != M else x

    in_specs = [pl.BlockSpec((tm, tk), lambda i, j, k: (i, k)),
                pl.BlockSpec((tk, tn), lambda i, j, k: (k, j)),
                pl.BlockSpec((1, tn), lambda i, j, k: (0, j))]
    args = [xp, wp, bp]
    if fuse_ln is not None:
        g, be = fuse_ln
        in_specs += [pl.BlockSpec((1, K), lambda i, j, k: (0, 0)),
                     pl.BlockSpec((1, K), lambda i, j, k: (0, 0))]
        args += [g.reshape(1, K).astype(jnp.float32),
                 be.reshape(1, K).astype(jnp.float32)]

    est = 4 * (tm * tk + tk * tn + 2 * tm * tn + tn + 2 * K)
    out = pl.pallas_call(
        functools.partial(_matmul_kernel, fuse_ln=fuse_ln is not None,
                          apply_gelu=apply_gelu),
        out_shape=jax.ShapeDtypeStruct((Mp, N), out_dtype),
        grid_spec=pltpu.PrefetchScalarGridSpec(
            num_scalar_prefetch=0,
            grid=(Mp // tm, N // tn, nk),
            in_specs=in_specs,
            out_specs=pl.BlockSpec((tm, tn), lambda i, j, k: (i, j)),
            scratch_shapes=[pltpu.VMEM((tm, tn), jnp.float32)]),
        compiler_params=_params(("parallel", "parallel", "arbitrary"), est),
    )(*args)
    return out[:M] if Mp != M else out


# ------------------------- fused ResidualCNN kernel -------------------------- #
# Activation layout inside the CNN stack: (B, W=time, H=feats, C) channels-last.

def _rescnn_kernel(x_ref, g1_ref, be1_ref, g2_ref, be2_ref, w1_ref, w2_ref,
                   cb1_ref, cb2_ref, o_ref):
    _, W, H, C = x_ref.shape
    x = x_ref[0]                                          # (W, H, C) f32

    def ln_gelu(v, g_ref, b_ref):
        # CNNLayerNorm: normalize over the feats axis (H) per (w, c), affine per-H
        mu = jnp.mean(v, axis=1, keepdims=True)
        var = jnp.mean(jnp.square(v - mu), axis=1, keepdims=True)
        return _gelu((v - mu) * lax.rsqrt(var + _LN_EPS) * g_ref[...] + b_ref[...])

    def conv3x3(v, w_ref, b_ref):
        # 3x3 / stride 1 / pad 1 conv: zero-pad in VMEM (no HBM patch tensor), then 9
        # shifted (W*H, C) x (C, Cout) MXU taps accumulated in f32.
        cout = w_ref.shape[-1]
        zc = jnp.zeros((W, 1, C), jnp.float32)
        vp = jnp.concatenate([zc, v, zc], axis=1)         # (W, H+2, C)
        zr = jnp.zeros((1, H + 2, C), jnp.float32)
        vp = jnp.concatenate([zr, vp, zr], axis=0)        # (W+2, H+2, C)
        acc = jnp.zeros((W * H, cout), jnp.float32)
        for a in range(3):                                # tap over W (time)
            for b in range(3):                            # tap over H (feats)
                patch = vp[a:a + W, b:b + H, :].reshape(W * H, C)
                acc = acc + jnp.dot(patch.astype(jnp.bfloat16), w_ref[a, b],
                                    preferred_element_type=jnp.float32)
        return (acc + b_ref[...]).reshape(W, H, cout)

    y = conv3x3(ln_gelu(x, g1_ref, be1_ref), w1_ref, cb1_ref)
    y = conv3x3(ln_gelu(y, g2_ref, be2_ref), w2_ref, cb2_ref)
    o_ref[0] = (y + x).astype(o_ref.dtype)                # residual add


def residual_cnn(x, p):
    # TODO(synk): for very long time axes, tile W with a halo via manual DMA instead of
    # holding the whole (W, H, C) slab per batch element in VMEM.
    B, W, H, C = x.shape
    full = lambda arr: pl.BlockSpec(arr.shape, lambda i, _n=arr.ndim: (0,) * _n)
    est = 10 * W * H * C * 4 + 4 * 9 * C * C * 2
    return pl.pallas_call(
        _rescnn_kernel,
        out_shape=jax.ShapeDtypeStruct((B, W, H, C), jnp.float32),
        grid_spec=pltpu.PrefetchScalarGridSpec(
            num_scalar_prefetch=0,
            grid=(B,),
            in_specs=[pl.BlockSpec((1, W, H, C), lambda i: (i, 0, 0, 0)),
                      full(p["ln1_g"]), full(p["ln1_b"]),
                      full(p["ln2_g"]), full(p["ln2_b"]),
                      full(p["w1"]), full(p["w2"]),
                      full(p["cb1"]), full(p["cb2"])],
            out_specs=pl.BlockSpec((1, W, H, C), lambda i: (i, 0, 0, 0))),
        compiler_params=_params(("parallel",), est),
    )(x, p["ln1_g"], p["ln1_b"], p["ln2_g"], p["ln2_b"],
      p["w1"], p["w2"], p["cb1"], p["cb2"])


# ------------------------------ bi-GRU kernel -------------------------------- #

def _bigru_kernel(gxf_ref, gxb_ref, wf_ref, wb_ref, bf_ref, bb_ref,
                  of_ref, ob_ref, h_ref, *, chunk, hidden):
    H = hidden

    @pl.when(pl.program_id(0) == 0)
    def _():
        h_ref[...] = jnp.zeros_like(h_ref)

    wf, wb = wf_ref[...], wb_ref[...]                     # (H, 3H) f32, gates [r|z|n]
    bf, bb = bf_ref[...], bb_ref[...]                     # (1, 3H) f32

    def cell(h, gx, w, b):
        # single fused recurrent matmul per direction per step (f32 recurrence)
        gh = jnp.dot(h, w, preferred_element_type=jnp.float32) + b      # (N, 3H)
        rz = jax.nn.sigmoid(gx[:, :2 * H] + gh[:, :2 * H])
        r, z = rz[:, :H], rz[:, H:]
        n = jnp.tanh(gx[:, 2 * H:] + r * gh[:, 2 * H:])
        return (1.0 - z) * n + z * h

    def step(t, carry):
        hf, hb = carry
        hf = cell(hf, gxf_ref[t], wf, bf)                 # forward: natural time order
        of_ref[t] = hf.astype(of_ref.dtype)
        tb = chunk - 1 - t                                # backward: reversed in-kernel
        hb = cell(hb, gxb_ref[tb], wb, bb)
        ob_ref[tb] = hb.astype(ob_ref.dtype)
        return hf, hb

    hf, hb = lax.fori_loop(0, chunk, step, (h_ref[0], h_ref[1]), unroll=True)
    h_ref[0] = hf
    h_ref[1] = hb


def bigru_scan(gx_f, gx_b, w_f, w_b, bh_f, bh_b, chunk):
    """Both GRU directions in one kernel instance (halves serial steps on 1-TC chips).

    gx_*: (Sp, N, 3H) f32 precomputed input gates per direction (gate order r,z,n).
    The backward direction's time reversal is done by the gxb/ob index_maps plus the
    in-chunk index flip; no [::-1] HBM copies are needed.  Hidden state (both dirs)
    lives in VMEM scratch across time chunks.
    """
    Sp, N, G = gx_f.shape
    H = w_f.shape[0]
    nc = Sp // chunk
    gf_spec = pl.BlockSpec((chunk, N, G), lambda c: (c, 0, 0))
    gb_spec = pl.BlockSpec((chunk, N, G), lambda c: (nc - 1 - c, 0, 0))
    w_spec = pl.BlockSpec((H, G), lambda c: (0, 0))
    b_spec = pl.BlockSpec((1, G), lambda c: (0, 0))
    of_spec = pl.BlockSpec((chunk, N, H), lambda c: (c, 0, 0))
    ob_spec = pl.BlockSpec((chunk, N, H), lambda c: (nc - 1 - c, 0, 0))
    est = 4 * (2 * chunk * N * G + 2 * chunk * N * H + 2 * H * G + 2 * G + 2 * N * H)
    out_sds = jax.ShapeDtypeStruct((Sp, N, H), jnp.float32)
    return pl.pallas_call(
        functools.partial(_bigru_kernel, chunk=chunk, hidden=H),
        out_shape=(out_sds, out_sds),
        grid_spec=pltpu.PrefetchScalarGridSpec(
            num_scalar_prefetch=0,
            grid=(nc,),
            in_specs=[gf_spec, gb_spec, w_spec, w_spec, b_spec, b_spec],
            out_specs=(of_spec, ob_spec),
            scratch_shapes=[pltpu.VMEM((2, N, H), jnp.float32)]),
        compiler_params=_params(("arbitrary",), est),
    )(gx_f, gx_b, w_f, w_b, bh_f, bh_b)


# --------------------------- model building blocks --------------------------- #

def bidirectional_gru(x, p, batch_first):
    """BidirectionalGRU: LayerNorm -> GELU -> bi-GRU (dropout = identity).

    Reproduces the original module's batch_first quirk: only layer 0 scans over time;
    later layers scan over axis 0 of the (batch, time, feat) tensor.
    """
    xs = jnp.transpose(x, (1, 0, 2)) if batch_first else x
    S, N, D = xs.shape
    H = p["hh_w"][0].shape[0]
    x2d = xs.reshape(S * N, D)
    ln = (p["ln_g"], p["ln_b"])
    # Per-direction input-gate projections with LayerNorm+GELU fused as the matmul
    # prologue; output layout (S, N, 3H) is exactly what the scan consumes (no
    # stack / pad / lane-slice relayout).
    gx_f = matmul_bias(x2d, p["ih"][0], fuse_ln=ln).reshape(S, N, 3 * H)
    gx_b = matmul_bias(x2d, p["ih"][1], fuse_ln=ln).reshape(S, N, 3 * H)

    chunk = S if S <= 32 else 32
    Sp = _round_up(S, chunk)
    if Sp != S:
        # Forward: pads run after the real steps (outputs discarded).  Backward: the
        # in-kernel reversed scan hits the pads FIRST, so saturate all its gates
        # (z == 1 exactly) so the hidden state stays exactly 0 until real data begins.
        gx_f = jnp.pad(gx_f, ((0, Sp - S), (0, 0), (0, 0)))
        gx_b = jnp.pad(gx_b, ((0, Sp - S), (0, 0), (0, 0)), constant_values=1e9)

    out_f, out_b = bigru_scan(gx_f, gx_b, p["hh_w"][0], p["hh_w"][1],
                              p["hh_b"][0], p["hh_b"][1], chunk)
    y = jnp.concatenate([out_f[:S], out_b[:S]], axis=-1)  # (S, N, 2H)
    return jnp.transpose(y, (1, 0, 2)) if batch_first else y


def conv_stem(x, packed, *, stride=2):
    """First conv (1 -> 16 ch, 3x3, stride 2, pad 1) via im2col + the tiled matmul.

    Cin == 1, so the patch tensor is only 9 floats per output pixel (tiny); the
    16-channel residual convs use the fully fused Pallas kernel instead.
    """
    # TODO(synk): a fused stride-2 Pallas conv (strided in-kernel slices) would remove
    # even this small patch tensor.
    B = x.shape[0]
    xl = jnp.transpose(x, (0, 3, 2, 1))[..., 0]           # (B, W=time, H=feats)
    Wi, Hi = xl.shape[1], xl.shape[2]
    Wo = (Wi + 2 - 3) // stride + 1
    Ho = (Hi + 2 - 3) // stride + 1
    xp = jnp.pad(xl, ((0, 0), (1, 1), (1, 1)))
    cols = [xp[:, a:a + stride * (Wo - 1) + 1:stride, b:b + stride * (Ho - 1) + 1:stride]
            for a in range(3) for b in range(3)]
    patches = jnp.stack(cols, axis=-1).reshape(B * Wo * Ho, 9)
    y = matmul_bias(patches, packed)
    return y.reshape(B, Wo, Ho, -1)                       # (B, W, H, C) channels-last


def speech_recognition_forward(x, params):
    # x: (B, 1, n_feats, T) exactly like the PyTorch module input.  Dropout = identity.
    y = conv_stem(x, params["cnn"])                       # (B, T/2, n_feats/2, 16)
    for p in params["rescnn"]:
        y = residual_cnn(y, p)
    B, W, H, C = y.shape
    # torch: view(B, C*H, W).transpose(1, 2).  The (c*H + h) feature order is baked into
    # the packed FC weight (column permutation at init), so a plain reshape suffices.
    y = matmul_bias(y.reshape(B * W, H * C), params["fc"]).reshape(B, W, -1)
    for i, p in enumerate(params["birnn"]):
        y = bidirectional_gru(y, p, batch_first=(i == 0))
    Bt, T, D = y.shape
    h = matmul_bias(y.reshape(Bt * T, D), params["cls1"], apply_gelu=True,
                    out_dtype=jnp.bfloat16)               # GELU hidden kept bf16
    out = matmul_bias(h, params["cls2"])
    return out.reshape(Bt, T, -1)


# -------------------------------- parameters --------------------------------- #

def init_params(key, n_cnn_layers, n_rnn_layers, rnn_dim, n_class, n_feats):
    """Creates PyTorch-shaped random weights, then packs them ONCE for the kernels
    (bf16 casts, transposes, tap/column orderings, bias reshapes)."""
    nf = n_feats // 2
    keys = iter(jax.random.split(key, 1024))

    def rn(shape, scale=0.1):
        return scale * jax.random.normal(next(keys), shape, dtype=jnp.float32)

    def pack_matmul(w_kn, b):                 # (K, N) weight + (N,) bias
        return {"w": w_kn.astype(jnp.bfloat16),
                "b": b.reshape(1, -1).astype(jnp.float32)}

    def pack_conv(w):                         # torch (Cout,Cin,kh,kw) -> (kw,kh,Cin,Cout)
        return jnp.transpose(w, (3, 2, 1, 0)).astype(jnp.bfloat16)

    def pack_cnn_ln(v, C):                    # per-feat (H,) affine, broadcast to (1,H,C)
        return jnp.broadcast_to(v.reshape(1, -1, 1), (1, v.shape[0], C)).astype(jnp.float32)

    C = 16
    params = {"cnn": pack_matmul(pack_conv(rn((C, 1, 3, 3))).reshape(9, C), rn((C,))),
              "rescnn": [], "birnn": []}

    for _ in range(n_cnn_layers):
        params["rescnn"].append({
            "ln1_g": pack_cnn_ln(jnp.ones((nf,), jnp.float32), C),
            "ln1_b": pack_cnn_ln(jnp.zeros((nf,), jnp.float32), C),
            "ln2_g": pack_cnn_ln(jnp.ones((nf,), jnp.float32), C),
            "ln2_b": pack_cnn_ln(jnp.zeros((nf,), jnp.float32), C),
            "w1": pack_conv(rn((C, C, 3, 3))), "cb1": rn((C,)).reshape(1, C),
            "w2": pack_conv(rn((C, C, 3, 3))), "cb2": rn((C,)).reshape(1, C),
        })

    # fully_connected: torch columns are indexed c*nf + h; our CNN flatten is h*C + c.
    w_fc = rn((rnn_dim, nf * C))
    perm = (jnp.arange(C)[None, :] * nf + jnp.arange(nf)[:, None]).reshape(-1)
    params["fc"] = pack_matmul(w_fc[:, perm].T, rn((rnn_dim,)))

    H = rnn_dim
    for i in range(n_rnn_layers):
        d_in = rnn_dim if i == 0 else 2 * rnn_dim
        ih, hh_w, hh_b = [], [], []
        for _ in range(2):                                # forward / backward directions
            w_ih, w_hh = rn((3 * H, d_in)), rn((3 * H, H))
            b_ih, b_hh = rn((3 * H,)), rn((3 * H,))
            ih.append(pack_matmul(w_ih.T, b_ih))          # (d_in, 3H) bf16, gates [r|z|n]
            hh_w.append(w_hh.T.astype(jnp.float32))       # (H, 3H) f32 (f32 recurrence)
            hh_b.append(b_hh.reshape(1, 3 * H).astype(jnp.float32))
        params["birnn"].append({
            "ln_g": jnp.ones((d_in,), jnp.float32), "ln_b": jnp.zeros((d_in,), jnp.float32),
            "ih": ih, "hh_w": hh_w, "hh_b": hh_b,
        })

    params["cls1"] = pack_matmul(rn((rnn_dim, 2 * rnn_dim)).T, rn((rnn_dim,)))
    params["cls2"] = pack_matmul(rn((n_class, rnn_dim)).T, rn((n_class,)))
    return params


# ----------------------------------- main ------------------------------------ #

if __name__ == "__main__":
    key = jax.random.PRNGKey(0)
    k_in, k_par = jax.random.split(key)

    B, n_feats, T_in = 2, 16, 16
    n_cnn_layers, n_rnn_layers, rnn_dim, n_class = 2, 2, 32, 10

    x = jax.random.normal(k_in, (B, 1, n_feats, T_in), dtype=jnp.float32)
    params = init_params(k_par, n_cnn_layers, n_rnn_layers, rnn_dim, n_class, n_feats)

    fwd = jax.jit(speech_recognition_forward)
    out = jax.block_until_ready(fwd(x, params))

    assert out.shape == (B, T_in // 2, n_class), out.shape
    assert bool(jnp.all(jnp.isfinite(out)))
    print("KERNEL_OK")
</pallas_src>

<mosaic_0001>
module attributes {stable_mosaic.version = 11 : i64} {
  func.func @_matmul_kernel(%arg0: i32, %arg1: i32, %arg2: i32, %arg3: memref<64x9xf32, #tpu.memory_space<vmem>>, %arg4: memref<9x16xbf16, #tpu.memory_space<vmem>>, %arg5: memref<1x16xf32, #tpu.memory_space<vmem>>, %arg6: memref<64x16xf32, #tpu.memory_space<vmem>>, %arg7: memref<64x16xf32, #tpu.memory_space<vmem>>) attributes {dimension_semantics = [#tpu.dimension_semantics<parallel>, #tpu.dimension_semantics<parallel>, #tpu.dimension_semantics<arbitrary>], iteration_bounds = array<i64: 2, 1, 1>, scalar_prefetch = 0 : i64, scratch_operands = 1 : i64, tpu.core_type = #tpu.core_type<tc>, window_params = [{transform_indices = @transform_0, window_bounds = array<i64: 64, 9>}, {transform_indices = @transform_1, window_bounds = array<i64: 9, 16>}, {transform_indices = @transform_2, window_bounds = array<i64: 1, 16>}, {transform_indices = @transform_3, window_bounds = array<i64: 64, 16>}]} {
    %c0_i32 = arith.constant 0 : i32
    %0 = arith.cmpi eq, %arg2, %c0_i32 : i32
    %1 = arith.extui %0 : i1 to i32
    %c0_i32_0 = arith.constant 0 : i32
    %2 = arith.cmpi ne, %1, %c0_i32_0 : i32
    scf.if %2 {
      %c0_10 = arith.constant 0 : index
      %c0_11 = arith.constant 0 : index
      %13 = vector.load %arg5[%c0_10, %c0_11] : memref<1x16xf32, #tpu.memory_space<vmem>>, vector<1x16xf32>
      %14 = vector.shape_cast %13 : vector<1x16xf32> to vector<1x16xf32>
      %15 = vector.broadcast %14 : vector<1x16xf32> to vector<64x16xf32>
      %c0_12 = arith.constant 0 : index
      %c0_13 = arith.constant 0 : index
      %16 = vector.load %arg7[%c0_12, %c0_13] : memref<64x16xf32, #tpu.memory_space<vmem>>, vector<64x16xf32>
      tpu.vector_store %arg7[%c0_12, %c0_13], %15 {strides = array<i32>} : memref<64x16xf32, #tpu.memory_space<vmem>>, vector<64x16xf32>,
    } else {
    }
    %c0 = arith.constant 0 : index
    %c0_1 = arith.constant 0 : index
    %3 = vector.load %arg3[%c0, %c0_1] : memref<64x9xf32, #tpu.memory_space<vmem>>, vector<64x9xf32>
    %c0_2 = arith.constant 0 : index
    %c0_3 = arith.constant 0 : index
    %4 = vector.load %arg7[%c0_2, %c0_3] : memref<64x16xf32, #tpu.memory_space<vmem>>, vector<64x16xf32>
    %5 = arith.truncf %3 : vector<64x9xf32> to vector<64x9xbf16>
    %c0_4 = arith.constant 0 : index
    %c0_5 = arith.constant 0 : index
    %6 = vector.load %arg4[%c0_4, %c0_5] : memref<9x16xbf16, #tpu.memory_space<vmem>>, vector<9x16xbf16>
    %cst = arith.constant dense<0.000000e+00> : vector<64x16xf32>
    %7 = tpu.matmul %5, %6, %cst {dimension_numbers = #tpu.dot_dimension_numbers<[1], [0], [0], [1], [0, 0, 1, 1], [], []>} : vector<64x9xbf16>, vector<9x16xbf16>, vector<64x16xf32> -> vector<64x16xf32>
    %8 = arith.addf %4, %7 : vector<64x16xf32>
    %c0_6 = arith.constant 0 : index
    %c0_7 = arith.constant 0 : index
    %9 = vector.load %arg7[%c0_6, %c0_7] : memref<64x16xf32, #tpu.memory_space<vmem>>, vector<64x16xf32>
    tpu.vector_store %arg7[%c0_6, %c0_7], %8 {strides = array<i32>} : memref<64x16xf32, #tpu.memory_space<vmem>>, vector<64x16xf32>,
    %c0_i32_8 = arith.constant 0 : i32
    %10 = arith.cmpi eq, %arg2, %c0_i32_8 : i32
    %11 = arith.extui %10 : i1 to i32
    %c0_i32_9 = arith.constant 0 : i32
    %12 = arith.cmpi ne, %11, %c0_i32_9 : i32
    scf.if %12 {
      %c0_10 = arith.constant 0 : index
      %c0_11 = arith.constant 0 : index
      %13 = vector.load %arg7[%c0_10, %c0_11] : memref<64x16xf32, #tpu.memory_space<vmem>>, vector<64x16xf32>
      %c0_12 = arith.constant 0 : index
      %c0_13 = arith.constant 0 : index
      %14 = vector.load %arg6[%c0_12, %c0_13] : memref<64x16xf32, #tpu.memory_space<vmem>>, vector<64x16xf32>
      tpu.vector_store %arg6[%c0_12, %c0_13], %13 {strides = array<i32>} : memref<64x16xf32, #tpu.memory_space<vmem>>, vector<64x16xf32>,
    } else {
    }
    return
  }
  func.func @transform_0(%arg0: i32, %arg1: i32, %arg2: i32) -> (i32, i32) {
    %c0_i32 = arith.constant 0 : i32
    return %arg0, %arg2 : i32, i32
  }
  func.func @transform_1(%arg0: i32, %arg1: i32, %arg2: i32) -> (i32, i32) {
    %c0_i32 = arith.constant 0 : i32
    return %arg2, %arg1 : i32, i32
  }
  func.func @transform_2(%arg0: i32, %arg1: i32, %arg2: i32) -> (i32, i32) {
    %c0_i32 = arith.constant 0 : i32
    %c0_i32_0 = arith.constant 0 : i32
    return %c0_i32, %arg1 : i32, i32
  }
  func.func @transform_3(%arg0: i32, %arg1: i32, %arg2: i32) -> (i32, i32) {
    %c0_i32 = arith.constant 0 : i32
    return %arg0, %arg1 : i32, i32
  }
}

module attributes {stable_mosaic.version = 11 : i64} {
  func.func @_matmul_kernel(%arg0: i32, %arg1: i32, %arg2: i32, %arg3: memref<16x128xf32, #tpu.memory_space<vmem>>, %arg4: memref<128x32xbf16, #tpu.memory_space<vmem>>, %arg5: memref<1x32xf32, #tpu.memory_space<vmem>>, %arg6: memref<16x32xf32, #tpu.memory_space<vmem>>, %arg7: memref<16x32xf32, #tpu.memory_space<vmem>>) attributes {dimension_semantics = [#tpu.dimension_semantics<parallel>, #tpu.dimension_semantics<parallel>, #tpu.dimension_semantics<arbitrary>], iteration_bounds = array<i64: 1, 1, 1>, scalar_prefetch = 0 : i64, scratch_operands = 1 : i64, tpu.core_type = #tpu.core_type<tc>, window_params = [{transform_indices = @transform_0, window_bounds = array<i64: 16, 128>}, {transform_indices = @transform_1, window_bounds = array<i64: 128, 32>}, {transform_indices = @transform_2, window_bounds = array<i64: 1, 32>}, {transform_indices = @transform_3, window_bounds = array<i64: 16, 32>}]} {
    %c0_i32 = arith.constant 0 : i32
    %0 = arith.cmpi eq, %arg2, %c0_i32 : i32
    %1 = arith.extui %0 : i1 to i32
    %c0_i32_0 = arith.constant 0 : i32
    %2 = arith.cmpi ne, %1, %c0_i32_0 : i32
    scf.if %2 {
      %c0_10 = arith.constant 0 : index
      %c0_11 = arith.constant 0 : index
      %13 = vector.load %arg5[%c0_10, %c0_11] : memref<1x32xf32, #tpu.memory_space<vmem>>, vector<1x32xf32>
      %14 = vector.shape_cast %13 : vector<1x32xf32> to vector<1x32xf32>
      %15 = vector.broadcast %14 : vector<1x32xf32> to vector<16x32xf32>
      %c0_12 = arith.constant 0 : index
      %c0_13 = arith.constant 0 : index
      %16 = vector.load %arg7[%c0_12, %c0_13] : memref<16x32xf32, #tpu.memory_space<vmem>>, vector<16x32xf32>
      tpu.vector_store %arg7[%c0_12, %c0_13], %15 {strides = array<i32>} : memref<16x32xf32, #tpu.memory_space<vmem>>, vector<16x32xf32>,
    } else {
    }
    %c0 = arith.constant 0 : index
    %c0_1 = arith.constant 0 : index
    %3 = vector.load %arg3[%c0, %c0_1] : memref<16x128xf32, #tpu.memory_space<vmem>>, vector<16x128xf32>
    %c0_2 = arith.constant 0 : index
    %c0_3 = arith.constant 0 : index
    %4 = vector.load %arg7[%c0_2, %c0_3] : memref<16x32xf32, #tpu.memory_space<vmem>>, vector<16x32xf32>
    %5 = arith.truncf %3 : vector<16x128xf32> to vector<16x128xbf16>
    %c0_4 = arith.constant 0 : index
    %c0_5 = arith.constant 0 : index
    %6 = vector.load %arg4[%c0_4, %c0_5] : memref<128x32xbf16, #tpu.memory_space<vmem>>, vector<128x32xbf16>
    %cst = arith.constant dense<0.000000e+00> : vector<16x32xf32>
    %7 = tpu.matmul %5, %6, %cst {dimension_numbers = #tpu.dot_dimension_numbers<[1], [0], [0], [1], [0, 0, 1, 1], [], []>} : vector<16x128xbf16>, vector<128x32xbf16>, vector<16x32xf32> -> vector<16x32xf32>
    %8 = arith.addf %4, %7 : vector<16x32xf32>
    %c0_6 = arith.constant 0 : index
    %c0_7 = arith.constant 0 : index
    %9 = vector.load %arg7[%c0_6, %c0_7] : memref<16x32xf32, #tpu.memory_space<vmem>>, vector<16x32xf32>
    tpu.vector_store %arg7[%c0_6, %c0_7], %8 {strides = array<i32>} : memref<16x32xf32, #tpu.memory_space<vmem>>, vector<16x32xf32>,
    %c0_i32_8 = arith.constant 0 : i32
    %10 = arith.cmpi eq, %arg2, %c0_i32_8 : i32
    %11 = arith.extui %10 : i1 to i32
    %c0_i32_9 = arith.constant 0 : i32
    %12 = arith.cmpi ne, %11, %c0_i32_9 : i32
    scf.if %12 {
      %c0_10 = arith.constant 0 : index
      %c0_11 = arith.constant 0 : index
      %13 = vector.load %arg7[%c0_10, %c0_11] : memref<16x32xf32, #tpu.memory_space<vmem>>, vector<16x32xf32>
      %c0_12 = arith.constant 0 : index
      %c0_13 = arith.constant 0 : index
      %14 = vector.load %arg6[%c0_12, %c0_13] : memref<16x32xf32, #tpu.memory_space<vmem>>, vector<16x32xf32>
      tpu.vector_store %arg6[%c0_12, %c0_13], %13 {strides = array<i32>} : memref<16x32xf32, #tpu.memory_space<vmem>>, vector<16x32xf32>,
    } else {
    }
    return
  }
  func.func @transform_0(%arg0: i32, %arg1: i32, %arg2: i32) -> (i32, i32) {
    %c0_i32 = arith.constant 0 : i32
    return %arg0, %arg2 : i32, i32
  }
  func.func @transform_1(%arg0: i32, %arg1: i32, %arg2: i32) -> (i32, i32) {
    %c0_i32 = arith.constant 0 : i32
    return %arg2, %arg1 : i32, i32
  }
  func.func @transform_2(%arg0: i32, %arg1: i32, %arg2: i32) -> (i32, i32) {
    %c0_i32 = arith.constant 0 : i32
    %c0_i32_0 = arith.constant 0 : i32
    return %c0_i32, %arg1 : i32, i32
  }
  func.func @transform_3(%arg0: i32, %arg1: i32, %arg2: i32) -> (i32, i32) {
    %c0_i32 = arith.constant 0 : i32
    return %arg0, %arg1 : i32, i32
  }
}

module attributes {stable_mosaic.version = 11 : i64} {
  func.func @_rescnn_kernel(%arg0: i32, %arg1: memref<1x8x8x16xf32, #tpu.memory_space<vmem>>, %arg2: memref<1x8x16xf32, #tpu.memory_space<vmem>>, %arg3: memref<1x8x16xf32, #tpu.memory_space<vmem>>, %arg4: memref<1x8x16xf32, #tpu.memory_space<vmem>>, %arg5: memref<1x8x16xf32, #tpu.memory_space<vmem>>, %arg6: memref<3x3x16x16xbf16, #tpu.memory_space<vmem>>, %arg7: memref<3x3x16x16xbf16, #tpu.memory_space<vmem>>, %arg8: memref<1x16xf32, #tpu.memory_space<vmem>>, %arg9: memref<1x16xf32, #tpu.memory_space<vmem>>, %arg10: memref<1x8x8x16xf32, #tpu.memory_space<vmem>>) attributes {dimension_semantics = [#tpu.dimension_semantics<parallel>], iteration_bounds = array<i64: 2>, scalar_prefetch = 0 : i64, scratch_operands = 0 : i64, tpu.core_type = #tpu.core_type<tc>, window_params = [{transform_indices = @transform_0, window_bounds = array<i64: 1, 8, 8, 16>}, {pipeline_mode = #tpu.pipeline_mode<synchronous>, transform_indices = @transform_1, window_bounds = array<i64: 1, 8, 16>}, {pipeline_mode = #tpu.pipeline_mode<synchronous>, transform_indices = @transform_2, window_bounds = array<i64: 1, 8, 16>}, {pipeline_mode = #tpu.pipeline_mode<synchronous>, transform_indices = @transform_3, window_bounds = array<i64: 1, 8, 16>}, {pipeline_mode = #tpu.pipeline_mode<synchronous>, transform_indices = @transform_4, window_bounds = array<i64: 1, 8, 16>}, {pipeline_mode = #tpu.pipeline_mode<synchronous>, transform_indices = @transform_5, window_bounds = array<i64: 3, 3, 16, 16>}, {pipeline_mode = #tpu.pipeline_mode<synchronous>, transform_indices = @transform_6, window_bounds = array<i64: 3, 3, 16, 16>}, {pipeline_mode = #tpu.pipeline_mode<synchronous>, transform_indices = @transform_7, window_bounds = array<i64: 1, 16>}, {pipeline_mode = #tpu.pipeline_mode<synchronous>, transform_indices = @transform_8, window_bounds = array<i64: 1, 16>}, {transform_indices = @transform_9, window_bounds = array<i64: 1, 8, 8, 16>}]} {
    %c0 = arith.constant 0 : index
    %c0_0 = arith.constant 0 : index
    %c0_1 = arith.constant 0 : index
    %c0_2 = arith.constant 0 : index
    %0 = vector.load %arg1[%c0, %c0_0, %c0_1, %c0_2] : memref<1x8x8x16xf32, #tpu.memory_space<vmem>>, vector<1x8x8x16xf32>
    %1 = vector.shape_cast %0 : vector<1x8x8x16xf32> to vector<8x8x16xf32>
    %cst = arith.constant dense<0.000000e+00> : vector<8x16xf32>
    %2 = vector.multi_reduction <add>, %1, %cst [1] : vector<8x8x16xf32> to vector<8x16xf32>
    %3 = vector.shape_cast %2 : vector<8x16xf32> to vector<8x1x16xf32>
    %cst_3 = arith.constant 8.000000e+00 : f32
    %4 = vector.broadcast %cst_3 : f32 to vector<8x1x16xf32>
    %5 = arith.divf %3, %4 : vector<8x1x16xf32>
    %6 = vector.broadcast %5 : vector<8x1x16xf32> to vector<8x8x16xf32>
    %7 = arith.subf %1, %6 : vector<8x8x16xf32>
    %8 = arith.mulf %7, %7 : vector<8x8x16xf32>
    %cst_4 = arith.constant dense<0.000000e+00> : vector<8x16xf32>
    %9 = vector.multi_reduction <add>, %8, %cst_4 [1] : vector<8x8x16xf32> to vector<8x16xf32>
    %10 = vector.shape_cast %9 : vector<8x16xf32> to vector<8x1x16xf32>
    %cst_5 = arith.constant 8.000000e+00 : f32
    %11 = vector.broadcast %cst_5 : f32 to vector<8x1x16xf32>
    %12 = arith.divf %10, %11 : vector<8x1x16xf32>
    %13 = vector.broadcast %5 : vector<8x1x16xf32> to vector<8x8x16xf32>
    %14 = arith.subf %1, %13 : vector<8x8x16xf32>
    %cst_6 = arith.constant 9.99999974E-6 : f32
    %15 = vector.broadcast %cst_6 : f32 to vector<8x1x16xf32>
    %16 = arith.addf %12, %15 : vector<8x1x16xf32>
    %17 = math.rsqrt %16 : vector<8x1x16xf32>
    %18 = vector.broadcast %17 : vector<8x1x16xf32> to vector<8x8x16xf32>
    %19 = arith.mulf %14, %18 : vector<8x8x16xf32>
    %c0_7 = arith.constant 0 : index
    %c0_8 = arith.constant 0 : index
    %c0_9 = arith.constant 0 : index
    %20 = vector.load %arg2[%c0_7, %c0_8, %c0_9] : memref<1x8x16xf32, #tpu.memory_space<vmem>>, vector<1x8x16xf32>
    %21 = vector.broadcast %20 : vector<1x8x16xf32> to vector<8x8x16xf32>
    %22 = arith.mulf %19, %21 : vector<8x8x16xf32>
    %c0_10 = arith.constant 0 : index
    %c0_11 = arith.constant 0 : index
    %c0_12 = arith.constant 0 : index
    %23 = vector.load %arg3[%c0_10, %c0_11, %c0_12] : memref<1x8x16xf32, #tpu.memory_space<vmem>>, vector<1x8x16xf32>
    %24 = vector.broadcast %23 : vector<1x8x16xf32> to vector<8x8x16xf32>
    %25 = arith.addf %22, %24 : vector<8x8x16xf32>
    %cst_13 = arith.constant 5.000000e-01 : f32
    %26 = vector.broadcast %cst_13 : f32 to vector<8x8x16xf32>
    %27 = arith.mulf %26, %25 : vector<8x8x16xf32>
    %cst_14 = arith.constant 1.41421354 : f32
    %28 = vector.broadcast %cst_14 : f32 to vector<8x8x16xf32>
    %29 = arith.divf %25, %28 : vector<8x8x16xf32>
    %30 = math.erf %29 : vector<8x8x16xf32>
    %cst_15 = arith.constant 1.000000e+00 : f32
    %31 = vector.broadcast %cst_15 : f32 to vector<8x8x16xf32>
    %32 = arith.addf %31, %30 : vector<8x8x16xf32>
    %33 = arith.mulf %27, %32 : vector<8x8x16xf32>
    %cst_16 = arith.constant 0.000000e+00 : f32
    %34 = vector.broadcast %cst_16 : f32 to vector<8x1x16xf32>
    %35 = tpu.concatenate %34, %33, %34 in 1 : vector<8x1x16xf32>, vector<8x8x16xf32>, vector<8x1x16xf32> -> vector<8x10x16xf32>
    %cst_17 = arith.constant 0.000000e+00 : f32
    %36 = vector.broadcast %cst_17 : f32 to vector<1x10x16xf32>
    %37 = tpu.concatenate %36, %35, %36 in 0 : vector<1x10x16xf32>, vector<8x10x16xf32>, vector<1x10x16xf32> -> vector<10x10x16xf32>
    %cst_18 = arith.constant 0.000000e+00 : f32
    %38 = vector.broadcast %cst_18 : f32 to vector<64x16xf32>
    %39 = vector.extract_strided_slice %37 {offsets = [0, 0, 0], sizes = [8, 8, 16], strides = [1, 1, 1]} : vector<10x10x16xf32> to vector<8x8x16xf32>
    %40 = vector.shape_cast %39 : vector<8x8x16xf32> to vector<64x16xf32>
    %41 = arith.truncf %40 : vector<64x16xf32> to vector<64x16xbf16>
    %c0_19 = arith.constant 0 : index
    %c0_20 = arith.constant 0 : index
    %c0_21 = arith.constant 0 : index
    %c0_22 = arith.constant 0 : index
    %42 = vector.load %arg6[%c0_19, %c0_20, %c0_21, %c0_22] : memref<3x3x16x16xbf16, #tpu.memory_space<vmem>>, vector<1x1x16x16xbf16>
    %43 = vector.shape_cast %42 : vector<1x1x16x16xbf16> to vector<16x16xbf16>
    %cst_23 = arith.constant dense<0.000000e+00> : vector<64x16xf32>
    %44 = tpu.matmul %41, %43, %cst_23 {dimension_numbers = #tpu.dot_dimension_numbers<[1], [0], [0], [1], [0, 0, 1, 1], [], []>} : vector<64x16xbf16>, vector<16x16xbf16>, vector<64x16xf32> -> vector<64x16xf32>
    %45 = arith.addf %38, %44 : vector<64x16xf32>
    %46 = vector.extract_strided_slice %37 {offsets = [0, 1, 0], sizes = [8, 8, 16], strides = [1, 1, 1]} : vector<10x10x16xf32> to vector<8x8x16xf32>
    %47 = vector.shape_cast %46 : vector<8x8x16xf32> to vector<64x16xf32>
    %48 = arith.truncf %47 : vector<64x16xf32> to vector<64x16xbf16>
    %c0_24 = arith.constant 0 : index
    %c1 = arith.constant 1 : index
    %c0_25 = arith.constant 0 : index
    %c0_26 = arith.constant 0 : index
    %49 = vector.load %arg6[%c0_24, %c1, %c0_25, %c0_26] : memref<3x3x16x16xbf16, #tpu.memory_space<vmem>>, vector<1x1x16x16xbf16>
    %50 = vector.shape_cast %49 : vector<1x1x16x16xbf16> to vector<16x16xbf16>
    %cst_27 = arith.constant dense<0.000000e+00> : vector<64x16xf32>
    %51 = tpu.matmul %48, %50, %cst_27 {dimension_numbers = #tpu.dot_dimension_numbers<[1], [0], [0], [1], [0, 0, 1, 1], [], []>} : vector<64x16xbf16>, vector<16x16xbf16>, vector<64x16xf32> -> vector<64x16xf32>
    %52 = arith.addf %45, %51 : vector<64x16xf32>
    %53 = vector.extract_strided_slice %37 {offsets = [0, 2, 0], sizes = [8, 8, 16], strides = [1, 1, 1]} : vector<10x10x16xf32> to vector<8x8x16xf32>
    %54 = vector.shape_cast %53 : vector<8x8x16xf32> to vector<64x16xf32>
    %55 = arith.truncf %54 : vector<64x16xf32> to vector<64x16xbf16>
    %c0_28 = arith.constant 0 : index
    %c2 = arith.constant 2 : index
    %c0_29 = arith.constant 0 : index
    %c0_30 = arith.constant 0 : index
    %56 = vector.load %arg6[%c0_28, %c2, %c0_29, %c0_30] : memref<3x3x16x16xbf16, #tpu.memory_space<vmem>>, vector<1x1x16x16xbf16>
    %57 = vector.shape_cast %56 : vector<1x1x16x16xbf16> to vector<16x16xbf16>
    %cst_31 = arith.constant dense<0.000000e+00> : vector<64x16xf32>
    %58 = tpu.matmul %55, %57, %cst_31 {dimension_numbers = #tpu.dot_dimension_numbers<[1], [0], [0], [1], [0, 0, 1, 1], [], []>} : vector<64x16xbf16>, vector<16x16xbf16>, vector<64x16xf32> -> vector<64x16xf32>
    %59 = arith.addf %52, %58 : vector<64x16xf32>
    %60 = vector.extract_strided_slice %37 {offsets = [1, 0, 0], sizes = [8, 8, 16], strides = [1, 1, 1]} : vector<10x10x16xf32> to vector<8x8x16xf32>
    %61 = vector.shape_cast %60 : vector<8x8x16xf32> to vector<64x16xf32>
    %62 = arith.truncf %61 : vector<64x16xf32> to vector<64x16xbf16>
    %c1_32 = arith.constant 1 : index
    %c0_33 = arith.constant 0 : index
    %c0_34 = arith.constant 0 : index
    %c0_35 = arith.constant 0 : index
    %63 = vector.load %arg6[%c1_32, %c0_33, %c0_34, %c0_35] : memref<3x3x16x16xbf16, #tpu.memory_space<vmem>>, vector<1x1x16x16xbf16>
    %64 = vector.shape_cast %63 : vector<1x1x16x16xbf16> to vector<16x16xbf16>
    %cst_36 = arith.constant dense<0.000000e+00> : vector<64x16xf32>
    %65 = tpu.matmul %62, %64, %cst_36 {dimension_numbers = #tpu.dot_dimension_numbers<[1], [0], [0], [1], [0, 0, 1, 1], [], []>} : vector<64x16xbf16>, vector<16x16xbf16>, vector<64x16xf32> -> vector<64x16xf32>
    %66 = arith.addf %59, %65 : vector<64x16xf32>
    %67 = vector.extract_strided_slice %37 {offsets = [1, 1, 0], sizes = [8, 8, 16], strides = [1, 1, 1]} : vector<10x10x16xf32> to vector<8x8x16xf32>
    %68 = vector.shape_cast %67 : vector<8x8x16xf32> to vector<64x16xf32>
    %69 = arith.truncf %68 : vector<64x16xf32> to vector<64x16xbf16>
    %c1_37 = arith.constant 1 : index
    %c1_38 = arith.constant 1 : index
    %c0_39 = arith.constant 0 : index
    %c0_40 = arith.constant 0 : index
    %70 = vector.load %arg6[%c1_37, %c1_38, %c0_39, %c0_40] : memref<3x3x16x16xbf16, #tpu.memory_space<vmem>>, vector<1x1x16x16xbf16>
    %71 = vector.shape_cast %70 : vector<1x1x16x16xbf16> to vector<16x16xbf16>
    %cst_41 = arith.constant dense<0.000000e+00> : vector<64x16xf32>
    %72 = tpu.matmul %69, %71, %cst_41 {dimension_numbers = #tpu.dot_dimension_numbers<[1], [0], [0], [1], [0, 0, 1, 1], [], []>} : vector<64x16xbf16>, vector<16x16xbf16>, vector<64x16xf32> -> vector<64x16xf32>
    %73 = arith.addf %66, %72 : vector<64x16xf32>
    %74 = vector.extract_strided_slice %37 {offsets = [1, 2, 0], sizes = [8, 8, 16], strides = [1, 1, 1]} : vector<10x10x16xf32> to vector<8x8x16xf32>
    %75 = vector.shape_cast %74 : vector<8x8x16xf32> to vector<64x16xf32>
    %76 = arith.truncf %75 : vector<64x16xf32> to vector<64x16xbf16>
    %c1_42 = arith.constant 1 : index
    %c2_43 = arith.constant 2 : index
    %c0_44 = arith.constant 0 : index
    %c0_45 = arith.constant 0 : index
    %77 = vector.load %arg6[%c1_42, %c2_43, %c0_44, %c0_45] : memref<3x3x16x16xbf16, #tpu.memory_space<vmem>>, vector<1x1x16x16xbf16>
    %78 = vector.shape_cast %77 : vector<1x1x16x16xbf16> to vector<16x16xbf16>
    %cst_46 = arith.constant dense<0.000000e+00> : vector<64x16xf32>
    %79 = tpu.matmul %76, %78, %cst_46 {dimension_numbers = #tpu.dot_dimension_numbers<[1], [0], [0], [1], [0, 0, 1, 1], [], []>} : vector<64x16xbf16>, vector<16x16xbf16>, vector<64x16xf32> -> vector<64x16xf32>
    %80 = arith.addf %73, %79 : vector<64x16xf32>
    %81 = vector.extract_strided_slice %37 {offsets = [2, 0, 0], sizes = [8, 8, 16], strides = [1, 1, 1]} : vector<10x10x16xf32> to vector<8x8x16xf32>
    %82 = vector.shape_cast %81 : vector<8x8x16xf32> to vector<64x16xf32>
    %83 = arith.truncf %82 : vector<64x16xf32> to vector<64x16xbf16>
    %c2_47 = arith.constant 2 : index
    %c0_48 = arith.constant 0 : index
    %c0_49 = arith.constant 0 : index
    %c0_50 = arith.constant 0 : index
    %84 = vector.load %arg6[%c2_47, %c0_48, %c0_49, %c0_50] : memref<3x3x16x16xbf16, #tpu.memory_space<vmem>>, vector<1x1x16x16xbf16>
    %85 = vector.shape_cast %84 : vector<1x1x16x16xbf16> to vector<16x16xbf16>
    %cst_51 = arith.constant dense<0.000000e+00> : vector<64x16xf32>
    %86 = tpu.matmul %83, %85, %cst_51 {dimension_numbers = #tpu.dot_dimension_numbers<[1], [0], [0], [1], [0, 0, 1, 1], [], []>} : vector<64x16xbf16>, vector<16x16xbf16>, vector<64x16xf32> -> vector<64x16xf32>
    %87 = arith.addf %80, %86 : vector<64x16xf32>
    %88 = vector.extract_strided_slice %37 {offsets = [2, 1, 0], sizes = [8, 8, 16], strides = [1, 1, 1]} : vector<10x10x16xf32> to vector<8x8x16xf32>
    %89 = vector.shape_cast %88 : vector<8x8x16xf32> to vector<64x16xf32>
    %90 = arith.truncf %89 : vector<64x16xf32> to vector<64x16xbf16>
    %c2_52 = arith.constant 2 : index
    %c1_53 = arith.constant 1 : index
    %c0_54 = arith.constant 0 : index
    %c0_55 = arith.constant 0 : index
    %91 = vector.load %arg6[%c2_52, %c1_53, %c0_54, %c0_55] : memref<3x3x16x16xbf16, #tpu.memory_space<vmem>>, vector<1x1x16x16xbf16>
    %92 = vector.shape_cast %91 : vector<1x1x16x16xbf16> to vector<16x16xbf16>
    %cst_56 = arith.constant dense<0.000000e+00> : vector<64x16xf32>
    %93 = tpu.matmul %90, %92, %cst_56 {dimension_numbers = #tpu.dot_dimension_numbers<[1], [0], [0], [1], [0, 0, 1, 1], [], []>} : vector<64x16xbf16>, vector<16x16xbf16>, vector<64x16xf32> -> vector<64x16xf32>
    %94 = arith.addf %87, %93 : vector<64x16xf32>
    %95 = vector.extract_strided_slice %37 {offsets = [2, 2, 0], sizes = [8, 8, 16], strides = [1, 1, 1]} : vector<10x10x16xf32> to vector<8x8x16xf32>
    %96 = vector.shape_cast %95 : vector<8x8x16xf32> to vector<64x16xf32>
    %97 = arith.truncf %96 : vector<64x16xf32> to vector<64x16xbf16>
    %c2_57 = arith.constant 2 : index
    %c2_58 = arith.constant 2 : index
    %c0_59 = arith.constant 0 : index
    %c0_60 = arith.constant 0 : index
    %98 = vector.load %arg6[%c2_57, %c2_58, %c0_59, %c0_60] : memref<3x3x16x16xbf16, #tpu.memory_space<vmem>>, vector<1x1x16x16xbf16>
    %99 = vector.shape_cast %98 : vector<1x1x16x16xbf16> to vector<16x16xbf16>
    %cst_61 = arith.constant dense<0.000000e+00> : vector<64x16xf32>
    %100 = tpu.matmul %97, %99, %cst_61 {dimension_numbers = #tpu.dot_dimension_numbers<[1], [0], [0], [1], [0, 0, 1, 1], [], []>} : vector<64x16xbf16>, vector<16x16xbf16>, vector<64x16xf32> -> vector<64x16xf32>
    %101 = arith.addf %94, %100 : vector<64x16xf32>
    %c0_62 = arith.constant 0 : index
    %c0_63 = arith.constant 0 : index
    %102 = vector.load %arg8[%c0_62, %c0_63] : memref<1x16xf32, #tpu.memory_space<vmem>>, vector<1x16xf32>
    %103 = vector.broadcast %102 : vector<1x16xf32> to vector<64x16xf32>
    %104 = arith.addf %101, %103 : vector<64x16xf32>
    %105 = vector.shape_cast %104 : vector<64x16xf32> to vector<8x8x16xf32>
    %cst_64 = arith.constant dense<0.000000e+00> : vector<8x16xf32>
    %106 = vector.multi_reduction <add>, %105, %cst_64 [1] : vector<8x8x16xf32> to vector<8x16xf32>
    %107 = vector.shape_cast %106 : vector<8x16xf32> to vector<8x1x16xf32>
    %cst_65 = arith.constant 8.000000e+00 : f32
    %108 = vector.broadcast %cst_65 : f32 to vector<8x1x16xf32>
    %109 = arith.divf %107, %108 : vector<8x1x16xf32>
    %110 = vector.broadcast %109 : vector<8x1x16xf32> to vector<8x8x16xf32>
    %111 = arith.subf %105, %110 : vector<8x8x16xf32>
    %112 = arith.mulf %111, %111 : vector<8x8x16xf32>
    %cst_66 = arith.constant dense<0.000000e+00> : vector<8x16xf32>
    %113 = vector.multi_reduction <add>, %112, %cst_66 [1] : vector<8x8x16xf32> to vector<8x16xf32>
    %114 = vector.shape_cast %113 : vector<8x16xf32> to vector<8x1x16xf32>
    %cst_67 = arith.constant 8.000000e+00 : f32
    %115 = vector.broadcast %cst_67 : f32 to vector<8x1x16xf32>
    %116 = arith.divf %114, %115 : vector<8x1x16xf32>
    %117 = vector.broadcast %109 : vector<8x1x16xf32> to vector<8x8x16xf32>
    %118 = arith.subf %105, %117 : vector<8x8x16xf32>
    %cst_68 = arith.constant 9.99999974E-6 : f32
    %119 = vector.broadcast %cst_68 : f32 to vector<8x1x16xf32>
    %120 = arith.addf %116, %119 : vector<8x1x16xf32>
    %121 = math.rsqrt %120 : vector<8x1x16xf32>
    %122 = vector.broadcast %121 : vector<8x1x16xf32> to vector<8x8x16xf32>
    %123 = arith.mulf %118, %122 : vector<8x8x16xf32>
    %c0_69 = arith.constant 0 : index
    %c0_70 = arith.constant 0 : index
    %c0_71 = arith.constant 0 : index
    %124 = vector.load %arg4[%c0_69, %c0_70, %c0_71] : memref<1x8x16xf32, #tpu.memory_space<vmem>>, vector<1x8x16xf32>
    %125 = vector.broadcast %124 : vector<1x8x16xf32> to vector<8x8x16xf32>
    %126 = arith.mulf %123, %125 : vector<8x8x16xf32>
    %c0_72 = arith.constant 0 : index
    %c0_73 = arith.constant 0 : index
    %c0_74 = arith.constant 0 : index
    %127 = vector.load %arg5[%c0_72, %c0_73, %c0_74] : memref<1x8x16xf32, #tpu.memory_space<vmem>>, vector<1x8x16xf32>
    %128 = vector.broadcast %127 : vector<1x8x16xf32> to vector<8x8x16xf32>
    %129 = arith.addf %126, %128 : vector<8x8x16xf32>
    %cst_75 = arith.constant 5.000000e-01 : f32
    %130 = vector.broadcast %cst_75 : f32 to vector<8x8x16xf32>
    %131 = arith.mulf %130, %129 : vector<8x8x16xf32>
    %cst_76 = arith.constant 1.41421354 : f32
    %132 = vector.broadcast %cst_76 : f32 to vector<8x8x16xf32>
    %133 = arith.divf %129, %132 : vector<8x8x16xf32>
    %134 = math.erf %133 : vector<8x8x16xf32>
    %cst_77 = arith.constant 1.000000e+00 : f32
    %135 = vector.broadcast %cst_77 : f32 to vector<8x8x16xf32>
    %136 = arith.addf %135, %134 : vector<8x8x16xf32>
    %137 = arith.mulf %131, %136 : vector<8x8x16xf32>
    %cst_78 = arith.constant 0.000000e+00 : f32
    %138 = vector.broadcast %cst_78 : f32 to vector<8x1x16xf32>
    %139 = tpu.concatenate %138, %137, %138 in 1 : vector<8x1x16xf32>, vector<8x8x16xf32>, vector<8x1x16xf32> -> vector<8x10x16xf32>
    %cst_79 = arith.constant 0.000000e+00 : f32
    %140 = vector.broadcast %cst_79 : f32 to vector<1x10x16xf32>
    %141 = tpu.concatenate %140, %139, %140 in 0 : vector<1x10x16xf32>, vector<8x10x16xf32>, vector<1x10x16xf32> -> vector<10x10x16xf32>
    %cst_80 = arith.constant 0.000000e+00 : f32
    %142 = vector.broadcast %cst_80 : f32 to vector<64x16xf32>
    %143 = vector.extract_strided_slice %141 {offsets = [0, 0, 0], sizes = [8, 8, 16], strides = [1, 1, 1]} : vector<10x10x16xf32> to vector<8x8x16xf32>
    %144 = vector.shape_cast %143 : vector<8x8x16xf32> to vector<64x16xf32>
    %145 = arith.truncf %144 : vector<64x16xf32> to vector<64x16xbf16>
    %c0_81 = arith.constant 0 : index
    %c0_82 = arith.constant 0 : index
    %c0_83 = arith.constant 0 : index
    %c0_84 = arith.constant 0 : index
    %146 = vector.load %arg7[%c0_81, %c0_82, %c0_83, %c0_84] : memref<3x3x16x16xbf16, #tpu.memory_space<vmem>>, vector<1x1x16x16xbf16>
    %147 = vector.shape_cast %146 : vector<1x1x16x16xbf16> to vector<16x16xbf16>
    %cst_85 = arith.constant dense<0.000000e+00> : vector<64x16xf32>
    %148 = tpu.matmul %145, %147, %cst_85 {dimension_numbers = #tpu.dot_dimension_numbers<[1], [0], [0], [1], [0, 0, 1, 1], [], []>} : vector<64x16xbf16>, vector<16x16xbf16>, vector<64x16xf32> -> vector<64x16xf32>
    %149 = arith.addf %142, %148 : vector<64x16xf32>
    %150 = vector.extract_strided_slice %141 {offsets = [0, 1, 0], sizes = [8, 8, 16], strides = [1, 1, 1]} : vector<10x10x16xf32> to vector<8x8x16xf32>
    %151 = vector.shape_cast %150 : vector<8x8x16xf32> to vector<64x16xf32>
    %152 = arith.truncf %151 : vector<64x16xf32> to vector<64x16xbf16>
    %c0_86 = arith.constant 0 : index
    %c1_87 = arith.constant 1 : index
    %c0_88 = arith.constant 0 : index
    %c0_89 = arith.constant 0 : index
    %153 = vector.load %arg7[%c0_86, %c1_87, %c0_88, %c0_89] : memref<3x3x16x16xbf16, #tpu.memory_space<vmem>>, vector<1x1x16x16xbf16>
    %154 = vector.shape_cast %153 : vector<1x1x16x16xbf16> to vector<16x16xbf16>
    %cst_90 = arith.constant dense<0.000000e+00> : vector<64x16xf32>
    %155 = tpu.matmul %152, %154, %cst_90 {dimension_numbers = #tpu.dot_dimension_numbers<[1], [0], [0], [1], [0, 0, 1, 1], [], []>} : vector<64x16xbf16>, vector<16x16xbf16>, vector<64x16xf32> -> vector<64x16xf32>
    %156 = arith.addf %149, %155 : vector<64x16xf32>
    %157 = vector.extract_strided_slice %141 {offsets = [0, 2, 0], sizes = [8, 8, 16], strides = [1, 1, 1]} : vector<10x10x16xf32> to vector<8x8x16xf32>
    %158 = vector.shape_cast %157 : vector<8x8x16xf32> to vector<64x16xf32>
    %159 = arith.truncf %158 : vector<64x16xf32> to vector<64x16xbf16>
    %c0_91 = arith.constant 0 : index
    %c2_92 = arith.constant 2 : index
    %c0_93 = arith.constant 0 : index
    %c0_94 = arith.constant 0 : index
    %160 = vector.load %arg7[%c0_91, %c2_92, %c0_93, %c0_94] : memref<3x3x16x16xbf16, #tpu.memory_space<vmem>>, vector<1x1x16x16xbf16>
    %161 = vector.shape_cast %160 : vector<1x1x16x16xbf16> to vector<16x16xbf16>
    %cst_95 = arith.constant dense<0.000000e+00> : vector<64x16xf32>
    %162 = tpu.matmul %159, %161, %cst_95 {dimension_numbers = #tpu.dot_dimension_numbers<[1], [0], [0], [1], [0, 0, 1, 1], [], []>} : vector<64x16xbf16>, vector<16x16xbf16>, vector<64x16xf32> -> vector<64x16xf32>
    %163 = arith.addf %156, %162 : vector<64x16xf32>
    %164 = vector.extract_strided_slice %141 {offsets = [1, 0, 0], sizes = [8, 8, 16], strides = [1, 1, 1]} : vector<10x10x16xf32> to vector<8x8x16xf32>
    %165 = vector.shape_cast %164 : vector<8x8x16xf32> to vector<64x16xf32>
    %166 = arith.truncf %165 : vector<64x16xf32> to vector<64x16xbf16>
    %c1_96 = arith.constant 1 : index
    %c0_97 = arith.constant 0 : index
    %c0_98 = arith.constant 0 : index
    %c0_99 = arith.constant 0 : index
    %167 = vector.load %arg7[%c1_96, %c0_97, %c0_98, %c0_99] : memref<3x3x16x16xbf16, #tpu.memory_space<vmem>>, vector<1x1x16x16xbf16>
    %168 = vector.shape_cast %167 : vector<1x1x16x16xbf16> to vector<16x16xbf16>
    %cst_100 = arith.constant dense<0.000000e+00> : vector<64x16xf32>
    %169 = tpu.matmul %166, %168, %cst_100 {dimension_numbers = #tpu.dot_dimension_numbers<[1], [0], [0], [1], [0, 0, 1, 1], [], []>} : vector<64x16xbf16>, vector<16x16xbf16>, vector<64x16xf32> -> vector<64x16xf32>
    %170 = arith.addf %163, %169 : vector<64x16xf32>
    %171 = vector.extract_strided_slice %141 {offsets = [1, 1, 0], sizes = [8, 8, 16], strides = [1, 1, 1]} : vector<10x10x16xf32> to vector<8x8x16xf32>
    %172 = vector.shape_cast %171 : vector<8x8x16xf32> to vector<64x16xf32>
    %173 = arith.truncf %172 : vector<64x16xf32> to vector<64x16xbf16>
    %c1_101 = arith.constant 1 : index
    %c1_102 = arith.constant 1 : index
    %c0_103 = arith.constant 0 : index
    %c0_104 = arith.constant 0 : index
    %174 = vector.load %arg7[%c1_101, %c1_102, %c0_103, %c0_104] : memref<3x3x16x16xbf16, #tpu.memory_space<vmem>>, vector<1x1x16x16xbf16>
    %175 = vector.shape_cast %174 : vector<1x1x16x16xbf16> to vector<16x16xbf16>
    %cst_105 = arith.constant dense<0.000000e+00> : vector<64x16xf32>
    %176 = tpu.matmul %173, %175, %cst_105 {dimension_numbers = #tpu.dot_dimension_numbers<[1], [0], [0], [1], [0, 0, 1, 1], [], []>} : vector<64x16xbf16>, vector<16x16xbf16>, vector<64x16xf32> -> vector<64x16xf32>
    %177 = arith.addf %170, %176 : vector<64x16xf32>
    %178 = vector.extract_strided_slice %141 {offsets = [1, 2, 0], sizes = [8, 8, 16], strides = [1, 1, 1]} : vector<10x10x16xf32> to vector<8x8x16xf32>
    %179 = vector.shape_cast %178 : vector<8x8x16xf32> to vector<64x16xf32>
    %180 = arith.truncf %179 : vector<64x16xf32> to vector<64x16xbf16>
    %c1_106 = arith.constant 1 : index
    %c2_107 = arith.constant 2 : index
    %c0_108 = arith.constant 0 : index
    %c0_109 = arith.constant 0 : index
    %181 = vector.load %arg7[%c1_106, %c2_107, %c0_108, %c0_109] : memref<3x3x16x16xbf16, #tpu.memory_space<vmem>>, vector<1x1x16x16xbf16>
    %182 = vector.shape_cast %181 : vector<1x1x16x16xbf16> to vector<16x16xbf16>
    %cst_110 = arith.constant dense<0.000000e+00> : vector<64x16xf32>
    %183 = tpu.matmul %180, %182, %cst_110 {dimension_numbers = #tpu.dot_dimension_numbers<[1], [0], [0], [1], [0, 0, 1, 1], [], []>} : vector<64x16xbf16>, vector<16x16xbf16>, vector<64x16xf32> -> vector<64x16xf32>
    %184 = arith.addf %177, %183 : vector<64x16xf32>
    %185 = vector.extract_strided_slice %141 {offsets = [2, 0, 0], sizes = [8, 8, 16], strides = [1, 1, 1]} : vector<10x10x16xf32> to vector<8x8x16xf32>
    %186 = vector.shape_cast %185 : vector<8x8x16xf32> to vector<64x16xf32>
    %187 = arith.truncf %186 : vector<64x16xf32> to vector<64x16xbf16>
    %c2_111 = arith.constant 2 : index
    %c0_112 = arith.constant 0 : index
    %c0_113 = arith.constant 0 : index
    %c0_114 = arith.constant 0 : index
    %188 = vector.load %arg7[%c2_111, %c0_112, %c0_113, %c0_114] : memref<3x3x16x16xbf16, #tpu.memory_space<vmem>>, vector<1x1x16x16xbf16>
    %189 = vector.shape_cast %188 : vector<1x1x16x16xbf16> to vector<16x16xbf16>
    %cst_115 = arith.constant dense<0.000000e+00> : vector<64x16xf32>
    %190 = tpu.matmul %187, %189, %cst_115 {dimension_numbers = #tpu.dot_dimension_numbers<[1], [0], [0], [1], [0, 0, 1, 1], [], []>} : vector<64x16xbf16>, vector<16x16xbf16>, vector<64x16xf32> -> vector<64x16xf32>
    %191 = arith.addf %184, %190 : vector<64x16xf32>
    %192 = vector.extract_strided_slice %141 {offsets = [2, 1, 0], sizes = [8, 8, 16], strides = [1, 1, 1]} : vector<10x10x16xf32> to vector<8x8x16xf32>
    %193 = vector.shape_cast %192 : vector<8x8x16xf32> to vector<64x16xf32>
    %194 = arith.truncf %193 : vector<64x16xf32> to vector<64x16xbf16>
    %c2_116 = arith.constant 2 : index
    %c1_117 = arith.constant 1 : index
    %c0_118 = arith.constant 0 : index
    %c0_119 = arith.constant 0 : index
    %195 = vector.load %arg7[%c2_116, %c1_117, %c0_118, %c0_119] : memref<3x3x16x16xbf16, #tpu.memory_space<vmem>>, vector<1x1x16x16xbf16>
    %196 = vector.shape_cast %195 : vector<1x1x16x16xbf16> to vector<16x16xbf16>
    %cst_120 = arith.constant dense<0.000000e+00> : vector<64x16xf32>
    %197 = tpu.matmul %194, %196, %cst_120 {dimension_numbers = #tpu.dot_dimension_numbers<[1], [0], [0], [1], [0, 0, 1, 1], [], []>} : vector<64x16xbf16>, vector<16x16xbf16>, vector<64x16xf32> -> vector<64x16xf32>
    %198 = arith.addf %191, %197 : vector<64x16xf32>
    %199 = vector.extract_strided_slice %141 {offsets = [2, 2, 0], sizes = [8, 8, 16], strides = [1, 1, 1]} : vector<10x10x16xf32> to vector<8x8x16xf32>
    %200 = vector.shape_cast %199 : vector<8x8x16xf32> to vector<64x16xf32>
    %201 = arith.truncf %200 : vector<64x16xf32> to vector<64x16xbf16>
    %c2_121 = arith.constant 2 : index
    %c2_122 = arith.constant 2 : index
    %c0_123 = arith.constant 0 : index
    %c0_124 = arith.constant 0 : index
    %202 = vector.load %arg7[%c2_121, %c2_122, %c0_123, %c0_124] : memref<3x3x16x16xbf16, #tpu.memory_space<vmem>>, vector<1x1x16x16xbf16>
    %203 = vector.shape_cast %202 : vector<1x1x16x16xbf16> to vector<16x16xbf16>
    %cst_125 = arith.constant dense<0.000000e+00> : vector<64x16xf32>
    %204 = tpu.matmul %201, %203, %cst_125 {dimension_numbers = #tpu.dot_dimension_numbers<[1], [0], [0], [1], [0, 0, 1, 1], [], []>} : vector<64x16xbf16>, vector<16x16xbf16>, vector<64x16xf32> -> vector<64x16xf32>
    %205 = arith.addf %198, %204 : vector<64x16xf32>
    %c0_126 = arith.constant 0 : index
    %c0_127 = arith.constant 0 : index
    %206 = vector.load %arg9[%c0_126, %c0_127] : memref<1x16xf32, #tpu.memory_space<vmem>>, vector<1x16xf32>
    %207 = vector.broadcast %206 : vector<1x16xf32> to vector<64x16xf32>
    %208 = arith.addf %205, %207 : vector<64x16xf32>
    %209 = vector.shape_cast %208 : vector<64x16xf32> to vector<8x8x16xf32>
    %210 = arith.addf %209, %1 : vector<8x8x16xf32>
    %c0_128 = arith.constant 0 : index
    %c0_129 = arith.constant 0 : index
    %c0_130 = arith.constant 0 : index
    %c0_131 = arith.constant 0 : index
    %211 = vector.load %arg10[%c0_128, %c0_129, %c0_130, %c0_131] : memref<1x8x8x16xf32, #tpu.memory_space<vmem>>, vector<1x8x8x16xf32>
    %212 = vector.shape_cast %211 : vector<1x8x8x16xf32> to vector<8x8x16xf32>
    %213 = vector.shape_cast %210 : vector<8x8x16xf32> to vector<1x8x8x16xf32>
    tpu.vector_store %arg10[%c0_128, %c0_129, %c0_130, %c0_131], %213 {strides = array<i32>} : memref<1x8x8x16xf32, #tpu.memory_space<vmem>>, vector<1x8x8x16xf32>,
    return
  }
  func.func @transform_0(%arg0: i32) -> (i32, i32, i32, i32) {
    %c0_i32 = arith.constant 0 : i32
    %c0_i32_0 = arith.constant 0 : i32
    %c0_i32_1 = arith.constant 0 : i32
    %c0_i32_2 = arith.constant 0 : i32
    return %arg0, %c0_i32, %c0_i32_0, %c0_i32_1 : i32, i32, i32, i32
  }
  func.func @transform_1(%arg0: i32) -> (i32, i32, i32) {
    %c0_i32 = arith.constant 0 : i32
    %c0_i32_0 = arith.constant 0 : i32
    %c0_i32_1 = arith.constant 0 : i32
    %c0_i32_2 = arith.constant 0 : i32
    return %c0_i32, %c0_i32_0, %c0_i32_1 : i32, i32, i32
  }
  func.func @transform_2(%arg0: i32) -> (i32, i32, i32) {
    %c0_i32 = arith.constant 0 : i32
    %c0_i32_0 = arith.constant 0 : i32
    %c0_i32_1 = arith.constant 0 : i32
    %c0_i32_2 = arith.constant 0 : i32
    return %c0_i32, %c0_i32_0, %c0_i32_1 : i32, i32, i32
  }
  func.func @transform_3(%arg0: i32) -> (i32, i32, i32) {
    %c0_i32 = arith.constant 0 : i32
    %c0_i32_0 = arith.constant 0 : i32
    %c0_i32_1 = arith.constant 0 : i32
    %c0_i32_2 = arith.constant 0 : i32
    return %c0_i32, %c0_i32_0, %c0_i32_1 : i32, i32, i32
  }
  func.func @transform_4(%arg0: i32) -> (i32, i32, i32) {
    %c0_i32 = arith.constant 0 : i32
    %c0_i32_0 = arith.constant 0 : i32
    %c0_i32_1 = arith.constant 0 : i32
    %c0_i32_2 = arith.constant 0 : i32
    return %c0_i32, %c0_i32_0, %c0_i32_1 : i32, i32, i32
  }
  func.func @transform_5(%arg0: i32) -> (i32, i32, i32, i32) {
    %c0_i32 = arith.constant 0 : i32
    %c0_i32_0 = arith.constant 0 : i32
    %c0_i32_1 = arith.constant 0 : i32
    %c0_i32_2 = arith.constant 0 : i32
    %c0_i32_3 = arith.constant 0 : i32
    return %c0_i32, %c0_i32_0, %c0_i32_1, %c0_i32_2 : i32, i32, i32, i32
  }
  func.func @transform_6(%arg0: i32) -> (i32, i32, i32, i32) {
    %c0_i32 = arith.constant 0 : i32
    %c0_i32_0 = arith.constant 0 : i32
    %c0_i32_1 = arith.constant 0 : i32
    %c0_i32_2 = arith.constant 0 : i32
    %c0_i32_3 = arith.constant 0 : i32
    return %c0_i32, %c0_i32_0, %c0_i32_1, %c0_i32_2 : i32, i32, i32, i32
  }
  func.func @transform_7(%arg0: i32) -> (i32, i32) {
    %c0_i32 = arith.constant 0 : i32
    %c0_i32_0 = arith.constant 0 : i32
    %c0_i32_1 = arith.constant 0 : i32
    return %c0_i32, %c0_i32_0 : i32, i32
  }
  func.func @transform_8(%arg0: i32) -> (i32, i32) {
    %c0_i32 = arith.constant 0 : i32
    %c0_i32_0 = arith.constant 0 : i32
    %c0_i32_1 = arith.constant 0 : i32
    return %c0_i32, %c0_i32_0 : i32, i32
  }
  func.func @transform_9(%arg0: i32) -> (i32, i32, i32, i32) {
    %c0_i32 = arith.constant 0 : i32
    %c0_i32_0 = arith.constant 0 : i32
    %c0_i32_1 = arith.constant 0 : i32
    %c0_i32_2 = arith.constant 0 : i32
    return %arg0, %c0_i32, %c0_i32_0, %c0_i32_1 : i32, i32, i32, i32
  }
}

module attributes {stable_mosaic.version = 11 : i64} {
  func.func @_matmul_kernel(%arg0: i32, %arg1: i32, %arg2: i32, %arg3: memref<16x32xf32, #tpu.memory_space<vmem>>, %arg4: memref<32x96xbf16, #tpu.memory_space<vmem>>, %arg5: memref<1x96xf32, #tpu.memory_space<vmem>>, %arg6: memref<1x32xf32, #tpu.memory_space<vmem>>, %arg7: memref<1x32xf32, #tpu.memory_space<vmem>>, %arg8: memref<16x96xf32, #tpu.memory_space<vmem>>, %arg9: memref<16x96xf32, #tpu.memory_space<vmem>>) attributes {dimension_semantics = [#tpu.dimension_semantics<parallel>, #tpu.dimension_semantics<parallel>, #tpu.dimension_semantics<arbitrary>], iteration_bounds = array<i64: 1, 1, 1>, scalar_prefetch = 0 : i64, scratch_operands = 1 : i64, tpu.core_type = #tpu.core_type<tc>, window_params = [{transform_indices = @transform_0, window_bounds = array<i64: 16, 32>}, {transform_indices = @transform_1, window_bounds = array<i64: 32, 96>}, {transform_indices = @transform_2, window_bounds = array<i64: 1, 96>}, {pipeline_mode = #tpu.pipeline_mode<synchronous>, transform_indices = @transform_3, window_bounds = array<i64: 1, 32>}, {pipeline_mode = #tpu.pipeline_mode<synchronous>, transform_indices = @transform_4, window_bounds = array<i64: 1, 32>}, {transform_indices = @transform_5, window_bounds = array<i64: 16, 96>}]} {
    %c0_i32 = arith.constant 0 : i32
    %0 = arith.cmpi eq, %arg2, %c0_i32 : i32
    %1 = arith.extui %0 : i1 to i32
    %c0_i32_0 = arith.constant 0 : i32
    %2 = arith.cmpi ne, %1, %c0_i32_0 : i32
    scf.if %2 {
      %c0_22 = arith.constant 0 : index
      %c0_23 = arith.constant 0 : index
      %45 = vector.load %arg5[%c0_22, %c0_23] : memref<1x96xf32, #tpu.memory_space<vmem>>, vector<1x96xf32>
      %46 = vector.shape_cast %45 : vector<1x96xf32> to vector<1x96xf32>
      %47 = vector.broadcast %46 : vector<1x96xf32> to vector<16x96xf32>
      %c0_24 = arith.constant 0 : index
      %c0_25 = arith.constant 0 : index
      %48 = vector.load %arg9[%c0_24, %c0_25] : memref<16x96xf32, #tpu.memory_space<vmem>>, vector<16x96xf32>
      tpu.vector_store %arg9[%c0_24, %c0_25], %47 {strides = array<i32>} : memref<16x96xf32, #tpu.memory_space<vmem>>, vector<16x96xf32>,
    } else {
    }
    %c0 = arith.constant 0 : index
    %c0_1 = arith.constant 0 : index
    %3 = vector.load %arg3[%c0, %c0_1] : memref<16x32xf32, #tpu.memory_space<vmem>>, vector<16x32xf32>
    %cst = arith.constant dense<0.000000e+00> : vector<16xf32>
    %4 = vector.multi_reduction <add>, %3, %cst [1] : vector<16x32xf32> to vector<16xf32>
    %5 = vector.shape_cast %4 : vector<16xf32> to vector<16x1xf32>
    %cst_2 = arith.constant 3.200000e+01 : f32
    %6 = vector.broadcast %cst_2 : f32 to vector<16x1xf32>
    %7 = arith.divf %5, %6 : vector<16x1xf32>
    %8 = vector.broadcast %7 : vector<16x1xf32> to vector<16x32xf32>
    %9 = arith.subf %3, %8 : vector<16x32xf32>
    %10 = arith.mulf %9, %9 : vector<16x32xf32>
    %cst_3 = arith.constant dense<0.000000e+00> : vector<16xf32>
    %11 = vector.multi_reduction <add>, %10, %cst_3 [1] : vector<16x32xf32> to vector<16xf32>
    %12 = vector.shape_cast %11 : vector<16xf32> to vector<16x1xf32>
    %cst_4 = arith.constant 3.200000e+01 : f32
    %13 = vector.broadcast %cst_4 : f32 to vector<16x1xf32>
    %14 = arith.divf %12, %13 : vector<16x1xf32>
    %15 = vector.broadcast %7 : vector<16x1xf32> to vector<16x32xf32>
    %16 = arith.subf %3, %15 : vector<16x32xf32>
    %cst_5 = arith.constant 9.99999974E-6 : f32
    %17 = vector.broadcast %cst_5 : f32 to vector<16x1xf32>
    %18 = arith.addf %14, %17 : vector<16x1xf32>
    %19 = math.rsqrt %18 : vector<16x1xf32>
    %20 = vector.broadcast %19 : vector<16x1xf32> to vector<16x32xf32>
    %21 = arith.mulf %16, %20 : vector<16x32xf32>
    %c0_6 = arith.constant 0 : index
    %c0_7 = arith.constant 0 : index
    %22 = vector.load %arg6[%c0_6, %c0_7] : memref<1x32xf32, #tpu.memory_space<vmem>>, vector<1x32xf32>
    %23 = vector.broadcast %22 : vector<1x32xf32> to vector<16x32xf32>
    %24 = arith.mulf %21, %23 : vector<16x32xf32>
    %c0_8 = arith.constant 0 : index
    %c0_9 = arith.constant 0 : index
    %25 = vector.load %arg7[%c0_8, %c0_9] : memref<1x32xf32, #tpu.memory_space<vmem>>, vector<1x32xf32>
    %26 = vector.broadcast %25 : vector<1x32xf32> to vector<16x32xf32>
    %27 = arith.addf %24, %26 : vector<16x32xf32>
    %cst_10 = arith.constant 5.000000e-01 : f32
    %28 = vector.broadcast %cst_10 : f32 to vector<16x32xf32>
    %29 = arith.mulf %28, %27 : vector<16x32xf32>
    %cst_11 = arith.constant 1.41421354 : f32
    %30 = vector.broadcast %cst_11 : f32 to vector<16x32xf32>
    %31 = arith.divf %27, %30 : vector<16x32xf32>
    %32 = math.erf %31 : vector<16x32xf32>
    %cst_12 = arith.constant 1.000000e+00 : f32
    %33 = vector.broadcast %cst_12 : f32 to vector<16x32xf32>
    %34 = arith.addf %33, %32 : vector<16x32xf32>
    %35 = arith.mulf %29, %34 : vector<16x32xf32>
    %c0_13 = arith.constant 0 : index
    %c0_14 = arith.constant 0 : index
    %36 = vector.load %arg9[%c0_13, %c0_14] : memref<16x96xf32, #tpu.memory_space<vmem>>, vector<16x96xf32>
    %37 = arith.truncf %35 : vector<16x32xf32> to vector<16x32xbf16>
    %c0_15 = arith.constant 0 : index
    %c0_16 = arith.constant 0 : index
    %38 = vector.load %arg4[%c0_15, %c0_16] : memref<32x96xbf16, #tpu.memory_space<vmem>>, vector<32x96xbf16>
    %cst_17 = arith.constant dense<0.000000e+00> : vector<16x96xf32>
    %39 = tpu.matmul %37, %38, %cst_17 {dimension_numbers = #tpu.dot_dimension_numbers<[1], [0], [0], [1], [0, 0, 1, 1], [], []>} : vector<16x32xbf16>, vector<32x96xbf16>, vector<16x96xf32> -> vector<16x96xf32>
    %40 = arith.addf %36, %39 : vector<16x96xf32>
    %c0_18 = arith.constant 0 : index
    %c0_19 = arith.constant 0 : index
    %41 = vector.load %arg9[%c0_18, %c0_19] : memref<16x96xf32, #tpu.memory_space<vmem>>, vector<16x96xf32>
    tpu.vector_store %arg9[%c0_18, %c0_19], %40 {strides = array<i32>} : memref<16x96xf32, #tpu.memory_space<vmem>>, vector<16x96xf32>,
    %c0_i32_20 = arith.constant 0 : i32
    %42 = arith.cmpi eq, %arg2, %c0_i32_20 : i32
    %43 = arith.extui %42 : i1 to i32
    %c0_i32_21 = arith.constant 0 : i32
    %44 = arith.cmpi ne, %43, %c0_i32_21 : i32
    scf.if %44 {
      %c0_22 = arith.constant 0 : index
      %c0_23 = arith.constant 0 : index
      %45 = vector.load %arg9[%c0_22, %c0_23] : memref<16x96xf32, #tpu.memory_space<vmem>>, vector<16x96xf32>
      %c0_24 = arith.constant 0 : index
      %c0_25 = arith.constant 0 : index
      %46 = vector.load %arg8[%c0_24, %c0_25] : memref<16x96xf32, #tpu.memory_space<vmem>>, vector<16x96xf32>
      tpu.vector_store %arg8[%c0_24, %c0_25], %45 {strides = array<i32>} : memref<16x96xf32, #tpu.memory_space<vmem>>, vector<16x96xf32>,
    } else {
    }
    return
  }
  func.func @transform_0(%arg0: i32, %arg1: i32, %arg2: i32) -> (i32, i32) {
    %c0_i32 = arith.constant 0 : i32
    return %arg0, %arg2 : i32, i32
  }
  func.func @transform_1(%arg0: i32, %arg1: i32, %arg2: i32) -> (i32, i32) {
    %c0_i32 = arith.constant 0 : i32
    return %arg2, %arg1 : i32, i32
  }
  func.func @transform_2(%arg0: i32, %arg1: i32, %arg2: i32) -> (i32, i32) {
    %c0_i32 = arith.constant 0 : i32
    %c0_i32_0 = arith.constant 0 : i32
    return %c0_i32, %arg1 : i32, i32
  }
  func.func @transform_3(%arg0: i32, %arg1: i32, %arg2: i32) -> (i32, i32) {
    %c0_i32 = arith.constant 0 : i32
    %c0_i32_0 = arith.constant 0 : i32
    %c0_i32_1 = arith.constant 0 : i32
    return %c0_i32, %c0_i32_0 : i32, i32
  }
  func.func @transform_4(%arg0: i32, %arg1: i32, %arg2: i32) -> (i32, i32) {
    %c0_i32 = arith.constant 0 : i32
    %c0_i32_0 = arith.constant 0 : i32
    %c0_i32_1 = arith.constant 0 : i32
    return %c0_i32, %c0_i32_0 : i32, i32
  }
  func.func @transform_5(%arg0: i32, %arg1: i32, %arg2: i32) -> (i32, i32) {
    %c0_i32 = arith.constant 0 : i32
    return %arg0, %arg1 : i32, i32
  }
}

module attributes {stable_mosaic.version = 11 : i64} {
  func.func @_bigru_kernel(%arg0: i32, %arg1: memref<8x2x96xf32, #tpu.memory_space<vmem>>, %arg2: memref<8x2x96xf32, #tpu.memory_space<vmem>>, %arg3: memref<32x96xf32, #tpu.memory_space<vmem>>, %arg4: memref<32x96xf32, #tpu.memory_space<vmem>>, %arg5: memref<1x96xf32, #tpu.memory_space<vmem>>, %arg6: memref<1x96xf32, #tpu.memory_space<vmem>>, %arg7: memref<8x2x32xf32, #tpu.memory_space<vmem>>, %arg8: memref<8x2x32xf32, #tpu.memory_space<vmem>>, %arg9: memref<2x2x32xf32, #tpu.memory_space<vmem>>) attributes {dimension_semantics = [#tpu.dimension_semantics<arbitrary>], iteration_bounds = array<i64: 1>, scalar_prefetch = 0 : i64, scratch_operands = 1 : i64, tpu.core_type = #tpu.core_type<tc>, window_params = [{transform_indices = @transform_0, window_bounds = array<i64: 8, 2, 96>}, {transform_indices = @transform_1, window_bounds = array<i64: 8, 2, 96>}, {pipeline_mode = #tpu.pipeline_mode<synchronous>, transform_indices = @transform_2, window_bounds = array<i64: 32, 96>}, {pipeline_mode = #tpu.pipeline_mode<synchronous>, transform_indices = @transform_3, window_bounds = array<i64: 32, 96>}, {pipeline_mode = #tpu.pipeline_mode<synchronous>, transform_indices = @transform_4, window_bounds = array<i64: 1, 96>}, {pipeline_mode = #tpu.pipeline_mode<synchronous>, transform_indices = @transform_5, window_bounds = array<i64: 1, 96>}, {transform_indices = @transform_6, window_bounds = array<i64: 8, 2, 32>}, {transform_indices = @transform_7, window_bounds = array<i64: 8, 2, 32>}]} {
    %c0_i32 = arith.constant 0 : i32
    %0 = arith.cmpi eq, %arg0, %c0_i32 : i32
    %1 = arith.extui %0 : i1 to i32
    %c0_i32_0 = arith.constant 0 : i32
    %2 = arith.cmpi ne, %1, %c0_i32_0 : i32
    scf.if %2 {
      %cst_139 = arith.constant 0.000000e+00 : f32
      %505 = vector.broadcast %cst_139 : f32 to vector<2x2x32xf32>
      %c0_140 = arith.constant 0 : index
      %c0_141 = arith.constant 0 : index
      %c0_142 = arith.constant 0 : index
      %506 = vector.load %arg9[%c0_140, %c0_141, %c0_142] : memref<2x2x32xf32, #tpu.memory_space<vmem>>, vector<2x2x32xf32>
      tpu.vector_store %arg9[%c0_140, %c0_141, %c0_142], %505 {strides = array<i32>} : memref<2x2x32xf32, #tpu.memory_space<vmem>>, vector<2x2x32xf32>,
    } else {
    }
    %c0 = arith.constant 0 : index
    %c0_1 = arith.constant 0 : index
    %3 = vector.load %arg3[%c0, %c0_1] : memref<32x96xf32, #tpu.memory_space<vmem>>, vector<32x96xf32>
    %c0_2 = arith.constant 0 : index
    %c0_3 = arith.constant 0 : index
    %4 = vector.load %arg4[%c0_2, %c0_3] : memref<32x96xf32, #tpu.memory_space<vmem>>, vector<32x96xf32>
    %c0_4 = arith.constant 0 : index
    %c0_5 = arith.constant 0 : index
    %5 = vector.load %arg5[%c0_4, %c0_5] : memref<1x96xf32, #tpu.memory_space<vmem>>, vector<1x96xf32>
    %c0_6 = arith.constant 0 : index
    %c0_7 = arith.constant 0 : index
    %6 = vector.load %arg6[%c0_6, %c0_7] : memref<1x96xf32, #tpu.memory_space<vmem>>, vector<1x96xf32>
    %c0_8 = arith.constant 0 : index
    %c0_9 = arith.constant 0 : index
    %c0_10 = arith.constant 0 : index
    %7 = vector.load %arg9[%c0_8, %c0_9, %c0_10] : memref<2x2x32xf32, #tpu.memory_space<vmem>>, vector<1x2x32xf32>
    %8 = vector.shape_cast %7 : vector<1x2x32xf32> to vector<2x32xf32>
    %c1 = arith.constant 1 : index
    %c0_11 = arith.constant 0 : index
    %c0_12 = arith.constant 0 : index
    %9 = vector.load %arg9[%c1, %c0_11, %c0_12] : memref<2x2x32xf32, #tpu.memory_space<vmem>>, vector<1x2x32xf32>
    %10 = vector.shape_cast %9 : vector<1x2x32xf32> to vector<2x32xf32>
    %c0_i32_13 = arith.constant 0 : i32
    %11 = arith.index_cast %c0_i32_13 : i32 to index
    %c0_14 = arith.constant 0 : index
    %c0_15 = arith.constant 0 : index
    %12 = vector.load %arg1[%11, %c0_14, %c0_15] : memref<8x2x96xf32, #tpu.memory_space<vmem>>, vector<1x2x96xf32>
    %13 = vector.shape_cast %12 : vector<1x2x96xf32> to vector<2x96xf32>
    %cst = arith.constant dense<0.000000e+00> : vector<2x96xf32>
    %14 = tpu.matmul %8, %3, %cst {dimension_numbers = #tpu.dot_dimension_numbers<[1], [0], [0], [1], [0, 0, 1, 1], [], []>} : vector<2x32xf32>, vector<32x96xf32>, vector<2x96xf32> -> vector<2x96xf32>
    %15 = vector.broadcast %5 : vector<1x96xf32> to vector<2x96xf32>
    %16 = arith.addf %14, %15 : vector<2x96xf32>
    %17 = vector.extract_strided_slice %13 {offsets = [0, 0], sizes = [2, 64], strides = [1, 1]} : vector<2x96xf32> to vector<2x64xf32>
    %18 = vector.extract_strided_slice %16 {offsets = [0, 0], sizes = [2, 64], strides = [1, 1]} : vector<2x96xf32> to vector<2x64xf32>
    %19 = arith.addf %17, %18 : vector<2x64xf32>
    %20 = arith.negf %19 : vector<2x64xf32>
    %21 = math.exp %20 : vector<2x64xf32>
    %cst_16 = arith.constant 1.000000e+00 : f32
    %22 = vector.broadcast %cst_16 : f32 to vector<2x64xf32>
    %23 = arith.addf %22, %21 : vector<2x64xf32>
    %24 = arith.divf %22, %23 : vector<2x64xf32>
    %25 = vector.extract_strided_slice %24 {offsets = [0, 0], sizes = [2, 32], strides = [1, 1]} : vector<2x64xf32> to vector<2x32xf32>
    %26 = vector.extract_strided_slice %24 {offsets = [0, 32], sizes = [2, 32], strides = [1, 1]} : vector<2x64xf32> to vector<2x32xf32>
    %27 = vector.extract_strided_slice %13 {offsets = [0, 64], sizes = [2, 32], strides = [1, 1]} : vector<2x96xf32> to vector<2x32xf32>
    %28 = vector.extract_strided_slice %16 {offsets = [0, 64], sizes = [2, 32], strides = [1, 1]} : vector<2x96xf32> to vector<2x32xf32>
    %29 = arith.mulf %25, %28 : vector<2x32xf32>
    %30 = arith.addf %27, %29 : vector<2x32xf32>
    %31 = math.tanh %30 : vector<2x32xf32>
    %cst_17 = arith.constant 1.000000e+00 : f32
    %32 = vector.broadcast %cst_17 : f32 to vector<2x32xf32>
    %33 = arith.subf %32, %26 : vector<2x32xf32>
    %34 = arith.mulf %33, %31 : vector<2x32xf32>
    %35 = arith.mulf %26, %8 : vector<2x32xf32>
    %36 = arith.addf %34, %35 : vector<2x32xf32>
    %37 = arith.index_cast %c0_i32_13 : i32 to index
    %c0_18 = arith.constant 0 : index
    %c0_19 = arith.constant 0 : index
    %38 = vector.load %arg7[%37, %c0_18, %c0_19] : memref<8x2x32xf32, #tpu.memory_space<vmem>>, vector<1x2x32xf32>
    %39 = vector.shape_cast %38 : vector<1x2x32xf32> to vector<2x32xf32>
    %40 = vector.shape_cast %36 : vector<2x32xf32> to vector<1x2x32xf32>
    tpu.vector_store %arg7[%37, %c0_18, %c0_19], %40 {strides = array<i32>} : memref<8x2x32xf32, #tpu.memory_space<vmem>>, vector<1x2x32xf32>,
    %c7_i32 = arith.constant 7 : i32
    %41 = arith.subi %c7_i32, %c0_i32_13 : i32
    %42 = arith.index_cast %41 : i32 to index
    %c0_20 = arith.constant 0 : index
    %c0_21 = arith.constant 0 : index
    %43 = vector.load %arg2[%42, %c0_20, %c0_21] : memref<8x2x96xf32, #tpu.memory_space<vmem>>, vector<1x2x96xf32>
    %44 = vector.shape_cast %43 : vector<1x2x96xf32> to vector<2x96xf32>
    %cst_22 = arith.constant dense<0.000000e+00> : vector<2x96xf32>
    %45 = tpu.matmul %10, %4, %cst_22 {dimension_numbers = #tpu.dot_dimension_numbers<[1], [0], [0], [1], [0, 0, 1, 1], [], []>} : vector<2x32xf32>, vector<32x96xf32>, vector<2x96xf32> -> vector<2x96xf32>
    %46 = vector.broadcast %6 : vector<1x96xf32> to vector<2x96xf32>
    %47 = arith.addf %45, %46 : vector<2x96xf32>
    %48 = vector.extract_strided_slice %44 {offsets = [0, 0], sizes = [2, 64], strides = [1, 1]} : vector<2x96xf32> to vector<2x64xf32>
    %49 = vector.extract_strided_slice %47 {offsets = [0, 0], sizes = [2, 64], strides = [1, 1]} : vector<2x96xf32> to vector<2x64xf32>
    %50 = arith.addf %48, %49 : vector<2x64xf32>
    %51 = arith.negf %50 : vector<2x64xf32>
    %52 = math.exp %51 : vector<2x64xf32>
    %cst_23 = arith.constant 1.000000e+00 : f32
    %53 = vector.broadcast %cst_23 : f32 to vector<2x64xf32>
    %54 = arith.addf %53, %52 : vector<2x64xf32>
    %55 = arith.divf %53, %54 : vector<2x64xf32>
    %56 = vector.extract_strided_slice %55 {offsets = [0, 0], sizes = [2, 32], strides = [1, 1]} : vector<2x64xf32> to vector<2x32xf32>
    %57 = vector.extract_strided_slice %55 {offsets = [0, 32], sizes = [2, 32], strides = [1, 1]} : vector<2x64xf32> to vector<2x32xf32>
    %58 = vector.extract_strided_slice %44 {offsets = [0, 64], sizes = [2, 32], strides = [1, 1]} : vector<2x96xf32> to vector<2x32xf32>
    %59 = vector.extract_strided_slice %47 {offsets = [0, 64], sizes = [2, 32], strides = [1, 1]} : vector<2x96xf32> to vector<2x32xf32>
    %60 = arith.mulf %56, %59 : vector<2x32xf32>
    %61 = arith.addf %58, %60 : vector<2x32xf32>
    %62 = math.tanh %61 : vector<2x32xf32>
    %cst_24 = arith.constant 1.000000e+00 : f32
    %63 = vector.broadcast %cst_24 : f32 to vector<2x32xf32>
    %64 = arith.subf %63, %57 : vector<2x32xf32>
    %65 = arith.mulf %64, %62 : vector<2x32xf32>
    %66 = arith.mulf %57, %10 : vector<2x32xf32>
    %67 = arith.addf %65, %66 : vector<2x32xf32>
    %68 = arith.index_cast %41 : i32 to index
    %c0_25 = arith.constant 0 : index
    %c0_26 = arith.constant 0 : index
    %69 = vector.load %arg8[%68, %c0_25, %c0_26] : memref<8x2x32xf32, #tpu.memory_space<vmem>>, vector<1x2x32xf32>
    %70 = vector.shape_cast %69 : vector<1x2x32xf32> to vector<2x32xf32>
    %71 = vector.shape_cast %67 : vector<2x32xf32> to vector<1x2x32xf32>
    tpu.vector_store %arg8[%68, %c0_25, %c0_26], %71 {strides = array<i32>} : memref<8x2x32xf32, #tpu.memory_space<vmem>>, vector<1x2x32xf32>,
    %c1_i32 = arith.constant 1 : i32
    %72 = arith.index_cast %c1_i32 : i32 to index
    %c0_27 = arith.constant 0 : index
    %c0_28 = arith.constant 0 : index
    %73 = vector.load %arg1[%72, %c0_27, %c0_28] : memref<8x2x96xf32, #tpu.memory_space<vmem>>, vector<1x2x96xf32>
    %74 = vector.shape_cast %73 : vector<1x2x96xf32> to vector<2x96xf32>
    %cst_29 = arith.constant dense<0.000000e+00> : vector<2x96xf32>
    %75 = tpu.matmul %36, %3, %cst_29 {dimension_numbers = #tpu.dot_dimension_numbers<[1], [0], [0], [1], [0, 0, 1, 1], [], []>} : vector<2x32xf32>, vector<32x96xf32>, vector<2x96xf32> -> vector<2x96xf32>
    %76 = vector.broadcast %5 : vector<1x96xf32> to vector<2x96xf32>
    %77 = arith.addf %75, %76 : vector<2x96xf32>
    %78 = vector.extract_strided_slice %74 {offsets = [0, 0], sizes = [2, 64], strides = [1, 1]} : vector<2x96xf32> to vector<2x64xf32>
    %79 = vector.extract_strided_slice %77 {offsets = [0, 0], sizes = [2, 64], strides = [1, 1]} : vector<2x96xf32> to vector<2x64xf32>
    %80 = arith.addf %78, %79 : vector<2x64xf32>
    %81 = arith.negf %80 : vector<2x64xf32>
    %82 = math.exp %81 : vector<2x64xf32>
    %cst_30 = arith.constant 1.000000e+00 : f32
    %83 = vector.broadcast %cst_30 : f32 to vector<2x64xf32>
    %84 = arith.addf %83, %82 : vector<2x64xf32>
    %85 = arith.divf %83, %84 : vector<2x64xf32>
    %86 = vector.extract_strided_slice %85 {offsets = [0, 0], sizes = [2, 32], strides = [1, 1]} : vector<2x64xf32> to vector<2x32xf32>
    %87 = vector.extract_strided_slice %85 {offsets = [0, 32], sizes = [2, 32], strides = [1, 1]} : vector<2x64xf32> to vector<2x32xf32>
    %88 = vector.extract_strided_slice %74 {offsets = [0, 64], sizes = [2, 32], strides = [1, 1]} : vector<2x96xf32> to vector<2x32xf32>
    %89 = vector.extract_strided_slice %77 {offsets = [0, 64], sizes = [2, 32], strides = [1, 1]} : vector<2x96xf32> to vector<2x32xf32>
    %90 = arith.mulf %86, %89 : vector<2x32xf32>
    %91 = arith.addf %88, %90 : vector<2x32xf32>
    %92 = math.tanh %91 : vector<2x32xf32>
    %cst_31 = arith.constant 1.000000e+00 : f32
    %93 = vector.broadcast %cst_31 : f32 to vector<2x32xf32>
    %94 = arith.subf %93, %87 : vector<2x32xf32>
    %95 = arith.mulf %94, %92 : vector<2x32xf32>
    %96 = arith.mulf %87, %36 : vector<2x32xf32>
    %97 = arith.addf %95, %96 : vector<2x32xf32>
    %98 = arith.index_cast %c1_i32 : i32 to index
    %c0_32 = arith.constant 0 : index
    %c0_33 = arith.constant 0 : index
    %99 = vector.load %arg7[%98, %c0_32, %c0_33] : memref<8x2x32xf32, #tpu.memory_space<vmem>>, vector<1x2x32xf32>
    %100 = vector.shape_cast %99 : vector<1x2x32xf32> to vector<2x32xf32>
    %101 = vector.shape_cast %97 : vector<2x32xf32> to vector<1x2x32xf32>
    tpu.vector_store %arg7[%98, %c0_32, %c0_33], %101 {strides = array<i32>} : memref<8x2x32xf32, #tpu.memory_space<vmem>>, vector<1x2x32xf32>,
    %c7_i32_34 = arith.constant 7 : i32
    %102 = arith.subi %c7_i32_34, %c1_i32 : i32
    %103 = arith.index_cast %102 : i32 to index
    %c0_35 = arith.constant 0 : index
    %c0_36 = arith.constant 0 : index
    %104 = vector.load %arg2[%103, %c0_35, %c0_36] : memref<8x2x96xf32, #tpu.memory_space<vmem>>, vector<1x2x96xf32>
    %105 = vector.shape_cast %104 : vector<1x2x96xf32> to vector<2x96xf32>
    %cst_37 = arith.constant dense<0.000000e+00> : vector<2x96xf32>
    %106 = tpu.matmul %67, %4, %cst_37 {dimension_numbers = #tpu.dot_dimension_numbers<[1], [0], [0], [1], [0, 0, 1, 1], [], []>} : vector<2x32xf32>, vector<32x96xf32>, vector<2x96xf32> -> vector<2x96xf32>
    %107 = vector.broadcast %6 : vector<1x96xf32> to vector<2x96xf32>
    %108 = arith.addf %106, %107 : vector<2x96xf32>
    %109 = vector.extract_strided_slice %105 {offsets = [0, 0], sizes = [2, 64], strides = [1, 1]} : vector<2x96xf32> to vector<2x64xf32>
    %110 = vector.extract_strided_slice %108 {offsets = [0, 0], sizes = [2, 64], strides = [1, 1]} : vector<2x96xf32> to vector<2x64xf32>
    %111 = arith.addf %109, %110 : vector<2x64xf32>
    %112 = arith.negf %111 : vector<2x64xf32>
    %113 = math.exp %112 : vector<2x64xf32>
    %cst_38 = arith.constant 1.000000e+00 : f32
    %114 = vector.broadcast %cst_38 : f32 to vector<2x64xf32>
    %115 = arith.addf %114, %113 : vector<2x64xf32>
    %116 = arith.divf %114, %115 : vector<2x64xf32>
    %117 = vector.extract_strided_slice %116 {offsets = [0, 0], sizes = [2, 32], strides = [1, 1]} : vector<2x64xf32> to vector<2x32xf32>
    %118 = vector.extract_strided_slice %116 {offsets = [0, 32], sizes = [2, 32], strides = [1, 1]} : vector<2x64xf32> to vector<2x32xf32>
    %119 = vector.extract_strided_slice %105 {offsets = [0, 64], sizes = [2, 32], strides = [1, 1]} : vector<2x96xf32> to vector<2x32xf32>
    %120 = vector.extract_strided_slice %108 {offsets = [0, 64], sizes = [2, 32], strides = [1, 1]} : vector<2x96xf32> to vector<2x32xf32>
    %121 = arith.mulf %117, %120 : vector<2x32xf32>
    %122 = arith.addf %119, %121 : vector<2x32xf32>
    %123 = math.tanh %122 : vector<2x32xf32>
    %cst_39 = arith.constant 1.000000e+00 : f32
    %124 = vector.broadcast %cst_39 : f32 to vector<2x32xf32>
    %125 = arith.subf %124, %118 : vector<2x32xf32>
    %126 = arith.mulf %125, %123 : vector<2x32xf32>
    %127 = arith.mulf %118, %67 : vector<2x32xf32>
    %128 = arith.addf %126, %127 : vector<2x32xf32>
    %129 = arith.index_cast %102 : i32 to index
    %c0_40 = arith.constant 0 : index
    %c0_41 = arith.constant 0 : index
    %130 = vector.load %arg8[%129, %c0_40, %c0_41] : memref<8x2x32xf32, #tpu.memory_space<vmem>>, vector<1x2x32xf32>
    %131 = vector.shape_cast %130 : vector<1x2x32xf32> to vector<2x32xf32>
    %132 = vector.shape_cast %128 : vector<2x32xf32> to vector<1x2x32xf32>
    tpu.vector_store %arg8[%129, %c0_40, %c0_41], %132 {strides = array<i32>} : memref<8x2x32xf32, #tpu.memory_space<vmem>>, vector<1x2x32xf32>,
    %c2_i32 = arith.constant 2 : i32
    %133 = arith.index_cast %c2_i32 : i32 to index
    %c0_42 = arith.constant 0 : index
    %c0_43 = arith.constant 0 : index
    %134 = vector.load %arg1[%133, %c0_42, %c0_43] : memref<8x2x96xf32, #tpu.memory_space<vmem>>, vector<1x2x96xf32>
    %135 = vector.shape_cast %134 : vector<1x2x96xf32> to vector<2x96xf32>
    %cst_44 = arith.constant dense<0.000000e+00> : vector<2x96xf32>
    %136 = tpu.matmul %97, %3, %cst_44 {dimension_numbers = #tpu.dot_dimension_numbers<[1], [0], [0], [1], [0, 0, 1, 1], [], []>} : vector<2x32xf32>, vector<32x96xf32>, vector<2x96xf32> -> vector<2x96xf32>
    %137 = vector.broadcast %5 : vector<1x96xf32> to vector<2x96xf32>
    %138 = arith.addf %136, %137 : vector<2x96xf32>
    %139 = vector.extract_strided_slice %135 {offsets = [0, 0], sizes = [2, 64], strides = [1, 1]} : vector<2x96xf32> to vector<2x64xf32>
    %140 = vector.extract_strided_slice %138 {offsets = [0, 0], sizes = [2, 64], strides = [1, 1]} : vector<2x96xf32> to vector<2x64xf32>
    %141 = arith.addf %139, %140 : vector<2x64xf32>
    %142 = arith.negf %141 : vector<2x64xf32>
    %143 = math.exp %142 : vector<2x64xf32>
    %cst_45 = arith.constant 1.000000e+00 : f32
    %144 = vector.broadcast %cst_45 : f32 to vector<2x64xf32>
    %145 = arith.addf %144, %143 : vector<2x64xf32>
    %146 = arith.divf %144, %145 : vector<2x64xf32>
    %147 = vector.extract_strided_slice %146 {offsets = [0, 0], sizes = [2, 32], strides = [1, 1]} : vector<2x64xf32> to vector<2x32xf32>
    %148 = vector.extract_strided_slice %146 {offsets = [0, 32], sizes = [2, 32], strides = [1, 1]} : vector<2x64xf32> to vector<2x32xf32>
    %149 = vector.extract_strided_slice %135 {offsets = [0, 64], sizes = [2, 32], strides = [1, 1]} : vector<2x96xf32> to vector<2x32xf32>
    %150 = vector.extract_strided_slice %138 {offsets = [0, 64], sizes = [2, 32], strides = [1, 1]} : vector<2x96xf32> to vector<2x32xf32>
    %151 = arith.mulf %147, %150 : vector<2x32xf32>
    %152 = arith.addf %149, %151 : vector<2x32xf32>
    %153 = math.tanh %152 : vector<2x32xf32>
    %cst_46 = arith.constant 1.000000e+00 : f32
    %154 = vector.broadcast %cst_46 : f32 to vector<2x32xf32>
    %155 = arith.subf %154, %148 : vector<2x32xf32>
    %156 = arith.mulf %155, %153 : vector<2x32xf32>
    %157 = arith.mulf %148, %97 : vector<2x32xf32>
    %158 = arith.addf %156, %157 : vector<2x32xf32>
    %159 = arith.index_cast %c2_i32 : i32 to index
    %c0_47 = arith.constant 0 : index
    %c0_48 = arith.constant 0 : index
    %160 = vector.load %arg7[%159, %c0_47, %c0_48] : memref<8x2x32xf32, #tpu.memory_space<vmem>>, vector<1x2x32xf32>
    %161 = vector.shape_cast %160 : vector<1x2x32xf32> to vector<2x32xf32>
    %162 = vector.shape_cast %158 : vector<2x32xf32> to vector<1x2x32xf32>
    tpu.vector_store %arg7[%159, %c0_47, %c0_48], %162 {strides = array<i32>} : memref<8x2x32xf32, #tpu.memory_space<vmem>>, vector<1x2x32xf32>,
    %c7_i32_49 = arith.constant 7 : i32
    %163 = arith.subi %c7_i32_49, %c2_i32 : i32
    %164 = arith.index_cast %163 : i32 to index
    %c0_50 = arith.constant 0 : index
    %c0_51 = arith.constant 0 : index
    %165 = vector.load %arg2[%164, %c0_50, %c0_51] : memref<8x2x96xf32, #tpu.memory_space<vmem>>, vector<1x2x96xf32>
    %166 = vector.shape_cast %165 : vector<1x2x96xf32> to vector<2x96xf32>
    %cst_52 = arith.constant dense<0.000000e+00> : vector<2x96xf32>
    %167 = tpu.matmul %128, %4, %cst_52 {dimension_numbers = #tpu.dot_dimension_numbers<[1], [0], [0], [1], [0, 0, 1, 1], [], []>} : vector<2x32xf32>, vector<32x96xf32>, vector<2x96xf32> -> vector<2x96xf32>
    %168 = vector.broadcast %6 : vector<1x96xf32> to vector<2x96xf32>
    %169 = arith.addf %167, %168 : vector<2x96xf32>
    %170 = vector.extract_strided_slice %166 {offsets = [0, 0], sizes = [2, 64], strides = [1, 1]} : vector<2x96xf32> to vector<2x64xf32>
    %171 = vector.extract_strided_slice %169 {offsets = [0, 0], sizes = [2, 64], strides = [1, 1]} : vector<2x96xf32> to vector<2x64xf32>
    %172 = arith.addf %170, %171 : vector<2x64xf32>
    %173 = arith.negf %172 : vector<2x64xf32>
    %174 = math.exp %173 : vector<2x64xf32>
    %cst_53 = arith.constant 1.000000e+00 : f32
    %175 = vector.broadcast %cst_53 : f32 to vector<2x64xf32>
    %176 = arith.addf %175, %174 : vector<2x64xf32>
    %177 = arith.divf %175, %176 : vector<2x64xf32>
    %178 = vector.extract_strided_slice %177 {offsets = [0, 0], sizes = [2, 32], strides = [1, 1]} : vector<2x64xf32> to vector<2x32xf32>
    %179 = vector.extract_strided_slice %177 {offsets = [0, 32], sizes = [2, 32], strides = [1, 1]} : vector<2x64xf32> to vector<2x32xf32>
    %180 = vector.extract_strided_slice %166 {offsets = [0, 64], sizes = [2, 32], strides = [1, 1]} : vector<2x96xf32> to vector<2x32xf32>
    %181 = vector.extract_strided_slice %169 {offsets = [0, 64], sizes = [2, 32], strides = [1, 1]} : vector<2x96xf32> to vector<2x32xf32>
    %182 = arith.mulf %178, %181 : vector<2x32xf32>
    %183 = arith.addf %180, %182 : vector<2x32xf32>
    %184 = math.tanh %183 : vector<2x32xf32>
    %cst_54 = arith.constant 1.000000e+00 : f32
    %185 = vector.broadcast %cst_54 : f32 to vector<2x32xf32>
    %186 = arith.subf %185, %179 : vector<2x32xf32>
    %187 = arith.mulf %186, %184 : vector<2x32xf32>
    %188 = arith.mulf %179, %128 : vector<2x32xf32>
    %189 = arith.addf %187, %188 : vector<2x32xf32>
    %190 = arith.index_cast %163 : i32 to index
    %c0_55 = arith.constant 0 : index
    %c0_56 = arith.constant 0 : index
    %191 = vector.load %arg8[%190, %c0_55, %c0_56] : memref<8x2x32xf32, #tpu.memory_space<vmem>>, vector<1x2x32xf32>
    %192 = vector.shape_cast %191 : vector<1x2x32xf32> to vector<2x32xf32>
    %193 = vector.shape_cast %189 : vector<2x32xf32> to vector<1x2x32xf32>
    tpu.vector_store %arg8[%190, %c0_55, %c0_56], %193 {strides = array<i32>} : memref<8x2x32xf32, #tpu.memory_space<vmem>>, vector<1x2x32xf32>,
    %c3_i32 = arith.constant 3 : i32
    %194 = arith.index_cast %c3_i32 : i32 to index
    %c0_57 = arith.constant 0 : index
    %c0_58 = arith.constant 0 : index
    %195 = vector.load %arg1[%194, %c0_57, %c0_58] : memref<8x2x96xf32, #tpu.memory_space<vmem>>, vector<1x2x96xf32>
    %196 = vector.shape_cast %195 : vector<1x2x96xf32> to vector<2x96xf32>
    %cst_59 = arith.constant dense<0.000000e+00> : vector<2x96xf32>
    %197 = tpu.matmul %158, %3, %cst_59 {dimension_numbers = #tpu.dot_dimension_numbers<[1], [0], [0], [1], [0, 0, 1, 1], [], []>} : vector<2x32xf32>, vector<32x96xf32>, vector<2x96xf32> -> vector<2x96xf32>
    %198 = vector.broadcast %5 : vector<1x96xf32> to vector<2x96xf32>
    %199 = arith.addf %197, %198 : vector<2x96xf32>
    %200 = vector.extract_strided_slice %196 {offsets = [0, 0], sizes = [2, 64], strides = [1, 1]} : vector<2x96xf32> to vector<2x64xf32>
    %201 = vector.extract_strided_slice %199 {offsets = [0, 0], sizes = [2, 64], strides = [1, 1]} : vector<2x96xf32> to vector<2x64xf32>
    %202 = arith.addf %200, %201 : vector<2x64xf32>
    %203 = arith.negf %202 : vector<2x64xf32>
    %204 = math.exp %203 : vector<2x64xf32>
    %cst_60 = arith.constant 1.000000e+00 : f32
    %205 = vector.broadcast %cst_60 : f32 to vector<2x64xf32>
    %206 = arith.addf %205, %204 : vector<2x64xf32>
    %207 = arith.divf %205, %206 : vector<2x64xf32>
    %208 = vector.extract_strided_slice %207 {offsets = [0, 0], sizes = [2, 32], strides = [1, 1]} : vector<2x64xf32> to vector<2x32xf32>
    %209 = vector.extract_strided_slice %207 {offsets = [0, 32], sizes = [2, 32], strides = [1, 1]} : vector<2x64xf32> to vector<2x32xf32>
    %210 = vector.extract_strided_slice %196 {offsets = [0, 64], sizes = [2, 32], strides = [1, 1]} : vector<2x96xf32> to vector<2x32xf32>
    %211 = vector.extract_strided_slice %199 {offsets = [0, 64], sizes = [2, 32], strides = [1, 1]} : vector<2x96xf32> to vector<2x32xf32>
    %212 = arith.mulf %208, %211 : vector<2x32xf32>
    %213 = arith.addf %210, %212 : vector<2x32xf32>
    %214 = math.tanh %213 : vector<2x32xf32>
    %cst_61 = arith.constant 1.000000e+00 : f32
    %215 = vector.broadcast %cst_61 : f32 to vector<2x32xf32>
    %216 = arith.subf %215, %209 : vector<2x32xf32>
    %217 = arith.mulf %216, %214 : vector<2x32xf32>
    %218 = arith.mulf %209, %158 : vector<2x32xf32>
    %219 = arith.addf %217, %218 : vector<2x32xf32>
    %220 = arith.index_cast %c3_i32 : i32 to index
    %c0_62 = arith.constant 0 : index
    %c0_63 = arith.constant 0 : index
    %221 = vector.load %arg7[%220, %c0_62, %c0_63] : memref<8x2x32xf32, #tpu.memory_space<vmem>>, vector<1x2x32xf32>
    %222 = vector.shape_cast %221 : vector<1x2x32xf32> to vector<2x32xf32>
    %223 = vector.shape_cast %219 : vector<2x32xf32> to vector<1x2x32xf32>
    tpu.vector_store %arg7[%220, %c0_62, %c0_63], %223 {strides = array<i32>} : memref<8x2x32xf32, #tpu.memory_space<vmem>>, vector<1x2x32xf32>,
    %c7_i32_64 = arith.constant 7 : i32
    %224 = arith.subi %c7_i32_64, %c3_i32 : i32
    %225 = arith.index_cast %224 : i32 to index
    %c0_65 = arith.constant 0 : index
    %c0_66 = arith.constant 0 : index
    %226 = vector.load %arg2[%225, %c0_65, %c0_66] : memref<8x2x96xf32, #tpu.memory_space<vmem>>, vector<1x2x96xf32>
    %227 = vector.shape_cast %226 : vector<1x2x96xf32> to vector<2x96xf32>
    %cst_67 = arith.constant dense<0.000000e+00> : vector<2x96xf32>
    %228 = tpu.matmul %189, %4, %cst_67 {dimension_numbers = #tpu.dot_dimension_numbers<[1], [0], [0], [1], [0, 0, 1, 1], [], []>} : vector<2x32xf32>, vector<32x96xf32>, vector<2x96xf32> -> vector<2x96xf32>
    %229 = vector.broadcast %6 : vector<1x96xf32> to vector<2x96xf32>
    %230 = arith.addf %228, %229 : vector<2x96xf32>
    %231 = vector.extract_strided_slice %227 {offsets = [0, 0], sizes = [2, 64], strides = [1, 1]} : vector<2x96xf32> to vector<2x64xf32>
    %232 = vector.extract_strided_slice %230 {offsets = [0, 0], sizes = [2, 64], strides = [1, 1]} : vector<2x96xf32> to vector<2x64xf32>
    %233 = arith.addf %231, %232 : vector<2x64xf32>
    %234 = arith.negf %233 : vector<2x64xf32>
    %235 = math.exp %234 : vector<2x64xf32>
    %cst_68 = arith.constant 1.000000e+00 : f32
    %236 = vector.broadcast %cst_68 : f32 to vector<2x64xf32>
    %237 = arith.addf %236, %235 : vector<2x64xf32>
    %238 = arith.divf %236, %237 : vector<2x64xf32>
    %239 = vector.extract_strided_slice %238 {offsets = [0, 0], sizes = [2, 32], strides = [1, 1]} : vector<2x64xf32> to vector<2x32xf32>
    %240 = vector.extract_strided_slice %238 {offsets = [0, 32], sizes = [2, 32], strides = [1, 1]} : vector<2x64xf32> to vector<2x32xf32>
    %241 = vector.extract_strided_slice %227 {offsets = [0, 64], sizes = [2, 32], strides = [1, 1]} : vector<2x96xf32> to vector<2x32xf32>
    %242 = vector.extract_strided_slice %230 {offsets = [0, 64], sizes = [2, 32], strides = [1, 1]} : vector<2x96xf32> to vector<2x32xf32>
    %243 = arith.mulf %239, %242 : vector<2x32xf32>
    %244 = arith.addf %241, %243 : vector<2x32xf32>
    %245 = math.tanh %244 : vector<2x32xf32>
    %cst_69 = arith.constant 1.000000e+00 : f32
    %246 = vector.broadcast %cst_69 : f32 to vector<2x32xf32>
    %247 = arith.subf %246, %240 : vector<2x32xf32>
    %248 = arith.mulf %247, %245 : vector<2x32xf32>
    %249 = arith.mulf %240, %189 : vector<2x32xf32>
    %250 = arith.addf %248, %249 : vector<2x32xf32>
    %251 = arith.index_cast %224 : i32 to index
    %c0_70 = arith.constant 0 : index
    %c0_71 = arith.constant 0 : index
    %252 = vector.load %arg8[%251, %c0_70, %c0_71] : memref<8x2x32xf32, #tpu.memory_space<vmem>>, vector<1x2x32xf32>
    %253 = vector.shape_cast %252 : vector<1x2x32xf32> to vector<2x32xf32>
    %254 = vector.shape_cast %250 : vector<2x32xf32> to vector<1x2x32xf32>
    tpu.vector_store %arg8[%251, %c0_70, %c0_71], %254 {strides = array<i32>} : memref<8x2x32xf32, #tpu.memory_space<vmem>>, vector<1x2x32xf32>,
    %c4_i32 = arith.constant 4 : i32
    %255 = arith.index_cast %c4_i32 : i32 to index
    %c0_72 = arith.constant 0 : index
    %c0_73 = arith.constant 0 : index
    %256 = vector.load %arg1[%255, %c0_72, %c0_73] : memref<8x2x96xf32, #tpu.memory_space<vmem>>, vector<1x2x96xf32>
    %257 = vector.shape_cast %256 : vector<1x2x96xf32> to vector<2x96xf32>
    %cst_74 = arith.constant dense<0.000000e+00> : vector<2x96xf32>
    %258 = tpu.matmul %219, %3, %cst_74 {dimension_numbers = #tpu.dot_dimension_numbers<[1], [0], [0], [1], [0, 0, 1, 1], [], []>} : vector<2x32xf32>, vector<32x96xf32>, vector<2x96xf32> -> vector<2x96xf32>
    %259 = vector.broadcast %5 : vector<1x96xf32> to vector<2x96xf32>
    %260 = arith.addf %258, %259 : vector<2x96xf32>
    %261 = vector.extract_strided_slice %257 {offsets = [0, 0], sizes = [2, 64], strides = [1, 1]} : vector<2x96xf32> to vector<2x64xf32>
    %262 = vector.extract_strided_slice %260 {offsets = [0, 0], sizes = [2, 64], strides = [1, 1]} : vector<2x96xf32> to vector<2x64xf32>
    %263 = arith.addf %261, %262 : vector<2x64xf32>
    %264 = arith.negf %263 : vector<2x64xf32>
    %265 = math.exp %264 : vector<2x64xf32>
    %cst_75 = arith.constant 1.000000e+00 : f32
    %266 = vector.broadcast %cst_75 : f32 to vector<2x64xf32>
    %267 = arith.addf %266, %265 : vector<2x64xf32>
    %268 = arith.divf %266, %267 : vector<2x64xf32>
    %269 = vector.extract_strided_slice %268 {offsets = [0, 0], sizes = [2, 32], strides = [1, 1]} : vector<2x64xf32> to vector<2x32xf32>
    %270 = vector.extract_strided_slice %268 {offsets = [0, 32], sizes = [2, 32], strides = [1, 1]} : vector<2x64xf32> to vector<2x32xf32>
    %271 = vector.extract_strided_slice %257 {offsets = [0, 64], sizes = [2, 32], strides = [1, 1]} : vector<2x96xf32> to vector<2x32xf32>
    %272 = vector.extract_strided_slice %260 {offsets = [0, 64], sizes = [2, 32], strides = [1, 1]} : vector<2x96xf32> to vector<2x32xf32>
    %273 = arith.mulf %269, %272 : vector<2x32xf32>
    %274 = arith.addf %271, %273 : vector<2x32xf32>
    %275 = math.tanh %274 : vector<2x32xf32>
    %cst_76 = arith.constant 1.000000e+00 : f32
    %276 = vector.broadcast %cst_76 : f32 to vector<2x32xf32>
    %277 = arith.subf %276, %270 : vector<2x32xf32>
    %278 = arith.mulf %277, %275 : vector<2x32xf32>
    %279 = arith.mulf %270, %219 : vector<2x32xf32>
    %280 = arith.addf %278, %279 : vector<2x32xf32>
    %281 = arith.index_cast %c4_i32 : i32 to index
    %c0_77 = arith.constant 0 : index
    %c0_78 = arith.constant 0 : index
    %282 = vector.load %arg7[%281, %c0_77, %c0_78] : memref<8x2x32xf32, #tpu.memory_space<vmem>>, vector<1x2x32xf32>
    %283 = vector.shape_cast %282 : vector<1x2x32xf32> to vector<2x32xf32>
    %284 = vector.shape_cast %280 : vector<2x32xf32> to vector<1x2x32xf32>
    tpu.vector_store %arg7[%281, %c0_77, %c0_78], %284 {strides = array<i32>} : memref<8x2x32xf32, #tpu.memory_space<vmem>>, vector<1x2x32xf32>,
    %c7_i32_79 = arith.constant 7 : i32
    %285 = arith.subi %c7_i32_79, %c4_i32 : i32
    %286 = arith.index_cast %285 : i32 to index
    %c0_80 = arith.constant 0 : index
    %c0_81 = arith.constant 0 : index
    %287 = vector.load %arg2[%286, %c0_80, %c0_81] : memref<8x2x96xf32, #tpu.memory_space<vmem>>, vector<1x2x96xf32>
    %288 = vector.shape_cast %287 : vector<1x2x96xf32> to vector<2x96xf32>
    %cst_82 = arith.constant dense<0.000000e+00> : vector<2x96xf32>
    %289 = tpu.matmul %250, %4, %cst_82 {dimension_numbers = #tpu.dot_dimension_numbers<[1], [0], [0], [1], [0, 0, 1, 1], [], []>} : vector<2x32xf32>, vector<32x96xf32>, vector<2x96xf32> -> vector<2x96xf32>
    %290 = vector.broadcast %6 : vector<1x96xf32> to vector<2x96xf32>
    %291 = arith.addf %289, %290 : vector<2x96xf32>
    %292 = vector.extract_strided_slice %288 {offsets = [0, 0], sizes = [2, 64], strides = [1, 1]} : vector<2x96xf32> to vector<2x64xf32>
    %293 = vector.extract_strided_slice %291 {offsets = [0, 0], sizes = [2, 64], strides = [1, 1]} : vector<2x96xf32> to vector<2x64xf32>
    %294 = arith.addf %292, %293 : vector<2x64xf32>
    %295 = arith.negf %294 : vector<2x64xf32>
    %296 = math.exp %295 : vector<2x64xf32>
    %cst_83 = arith.constant 1.000000e+00 : f32
    %297 = vector.broadcast %cst_83 : f32 to vector<2x64xf32>
    %298 = arith.addf %297, %296 : vector<2x64xf32>
    %299 = arith.divf %297, %298 : vector<2x64xf32>
    %300 = vector.extract_strided_slice %299 {offsets = [0, 0], sizes = [2, 32], strides = [1, 1]} : vector<2x64xf32> to vector<2x32xf32>
    %301 = vector.extract_strided_slice %299 {offsets = [0, 32], sizes = [2, 32], strides = [1, 1]} : vector<2x64xf32> to vector<2x32xf32>
    %302 = vector.extract_strided_slice %288 {offsets = [0, 64], sizes = [2, 32], strides = [1, 1]} : vector<2x96xf32> to vector<2x32xf32>
    %303 = vector.extract_strided_slice %291 {offsets = [0, 64], sizes = [2, 32], strides = [1, 1]} : vector<2x96xf32> to vector<2x32xf32>
    %304 = arith.mulf %300, %303 : vector<2x32xf32>
    %305 = arith.addf %302, %304 : vector<2x32xf32>
    %306 = math.tanh %305 : vector<2x32xf32>
    %cst_84 = arith.constant 1.000000e+00 : f32
    %307 = vector.broadcast %cst_84 : f32 to vector<2x32xf32>
    %308 = arith.subf %307, %301 : vector<2x32xf32>
    %309 = arith.mulf %308, %306 : vector<2x32xf32>
    %310 = arith.mulf %301, %250 : vector<2x32xf32>
    %311 = arith.addf %309, %310 : vector<2x32xf32>
    %312 = arith.index_cast %285 : i32 to index
    %c0_85 = arith.constant 0 : index
    %c0_86 = arith.constant 0 : index
    %313 = vector.load %arg8[%312, %c0_85, %c0_86] : memref<8x2x32xf32, #tpu.memory_space<vmem>>, vector<1x2x32xf32>
    %314 = vector.shape_cast %313 : vector<1x2x32xf32> to vector<2x32xf32>
    %315 = vector.shape_cast %311 : vector<2x32xf32> to vector<1x2x32xf32>
    tpu.vector_store %arg8[%312, %c0_85, %c0_86], %315 {strides = array<i32>} : memref<8x2x32xf32, #tpu.memory_space<vmem>>, vector<1x2x32xf32>,
    %c5_i32 = arith.constant 5 : i32
    %316 = arith.index_cast %c5_i32 : i32 to index
    %c0_87 = arith.constant 0 : index
    %c0_88 = arith.constant 0 : index
    %317 = vector.load %arg1[%316, %c0_87, %c0_88] : memref<8x2x96xf32, #tpu.memory_space<vmem>>, vector<1x2x96xf32>
    %318 = vector.shape_cast %317 : vector<1x2x96xf32> to vector<2x96xf32>
    %cst_89 = arith.constant dense<0.000000e+00> : vector<2x96xf32>
    %319 = tpu.matmul %280, %3, %cst_89 {dimension_numbers = #tpu.dot_dimension_numbers<[1], [0], [0], [1], [0, 0, 1, 1], [], []>} : vector<2x32xf32>, vector<32x96xf32>, vector<2x96xf32> -> vector<2x96xf32>
    %320 = vector.broadcast %5 : vector<1x96xf32> to vector<2x96xf32>
    %321 = arith.addf %319, %320 : vector<2x96xf32>
    %322 = vector.extract_strided_slice %318 {offsets = [0, 0], sizes = [2, 64], strides = [1, 1]} : vector<2x96xf32> to vector<2x64xf32>
    %323 = vector.extract_strided_slice %321 {offsets = [0, 0], sizes = [2, 64], strides = [1, 1]} : vector<2x96xf32> to vector<2x64xf32>
    %324 = arith.addf %322, %323 : vector<2x64xf32>
    %325 = arith.negf %324 : vector<2x64xf32>
    %326 = math.exp %325 : vector<2x64xf32>
    %cst_90 = arith.constant 1.000000e+00 : f32
    %327 = vector.broadcast %cst_90 : f32 to vector<2x64xf32>
    %328 = arith.addf %327, %326 : vector<2x64xf32>
    %329 = arith.divf %327, %328 : vector<2x64xf32>
    %330 = vector.extract_strided_slice %329 {offsets = [0, 0], sizes = [2, 32], strides = [1, 1]} : vector<2x64xf32> to vector<2x32xf32>
    %331 = vector.extract_strided_slice %329 {offsets = [0, 32], sizes = [2, 32], strides = [1, 1]} : vector<2x64xf32> to vector<2x32xf32>
    %332 = vector.extract_strided_slice %318 {offsets = [0, 64], sizes = [2, 32], strides = [1, 1]} : vector<2x96xf32> to vector<2x32xf32>
    %333 = vector.extract_strided_slice %321 {offsets = [0, 64], sizes = [2, 32], strides = [1, 1]} : vector<2x96xf32> to vector<2x32xf32>
    %334 = arith.mulf %330, %333 : vector<2x32xf32>
    %335 = arith.addf %332, %334 : vector<2x32xf32>
    %336 = math.tanh %335 : vector<2x32xf32>
    %cst_91 = arith.constant 1.000000e+00 : f32
    %337 = vector.broadcast %cst_91 : f32 to vector<2x32xf32>
    %338 = arith.subf %337, %331 : vector<2x32xf32>
    %339 = arith.mulf %338, %336 : vector<2x32xf32>
    %340 = arith.mulf %331, %280 : vector<2x32xf32>
    %341 = arith.addf %339, %340 : vector<2x32xf32>
    %342 = arith.index_cast %c5_i32 : i32 to index
    %c0_92 = arith.constant 0 : index
    %c0_93 = arith.constant 0 : index
    %343 = vector.load %arg7[%342, %c0_92, %c0_93] : memref<8x2x32xf32, #tpu.memory_space<vmem>>, vector<1x2x32xf32>
    %344 = vector.shape_cast %343 : vector<1x2x32xf32> to vector<2x32xf32>
    %345 = vector.shape_cast %341 : vector<2x32xf32> to vector<1x2x32xf32>
    tpu.vector_store %arg7[%342, %c0_92, %c0_93], %345 {strides = array<i32>} : memref<8x2x32xf32, #tpu.memory_space<vmem>>, vector<1x2x32xf32>,
    %c7_i32_94 = arith.constant 7 : i32
    %346 = arith.subi %c7_i32_94, %c5_i32 : i32
    %347 = arith.index_cast %346 : i32 to index
    %c0_95 = arith.constant 0 : index
    %c0_96 = arith.constant 0 : index
    %348 = vector.load %arg2[%347, %c0_95, %c0_96] : memref<8x2x96xf32, #tpu.memory_space<vmem>>, vector<1x2x96xf32>
    %349 = vector.shape_cast %348 : vector<1x2x96xf32> to vector<2x96xf32>
    %cst_97 = arith.constant dense<0.000000e+00> : vector<2x96xf32>
    %350 = tpu.matmul %311, %4, %cst_97 {dimension_numbers = #tpu.dot_dimension_numbers<[1], [0], [0], [1], [0, 0, 1, 1], [], []>} : vector<2x32xf32>, vector<32x96xf32>, vector<2x96xf32> -> vector<2x96xf32>
    %351 = vector.broadcast %6 : vector<1x96xf32> to vector<2x96xf32>
    %352 = arith.addf %350, %351 : vector<2x96xf32>
    %353 = vector.extract_strided_slice %349 {offsets = [0, 0], sizes = [2, 64], strides = [1, 1]} : vector<2x96xf32> to vector<2x64xf32>
    %354 = vector.extract_strided_slice %352 {offsets = [0, 0], sizes = [2, 64], strides = [1, 1]} : vector<2x96xf32> to vector<2x64xf32>
    %355 = arith.addf %353, %354 : vector<2x64xf32>
    %356 = arith.negf %355 : vector<2x64xf32>
    %357 = math.exp %356 : vector<2x64xf32>
    %cst_98 = arith.constant 1.000000e+00 : f32
    %358 = vector.broadcast %cst_98 : f32 to vector<2x64xf32>
    %359 = arith.addf %358, %357 : vector<2x64xf32>
    %360 = arith.divf %358, %359 : vector<2x64xf32>
    %361 = vector.extract_strided_slice %360 {offsets = [0, 0], sizes = [2, 32], strides = [1, 1]} : vector<2x64xf32> to vector<2x32xf32>
    %362 = vector.extract_strided_slice %360 {offsets = [0, 32], sizes = [2, 32], strides = [1, 1]} : vector<2x64xf32> to vector<2x32xf32>
    %363 = vector.extract_strided_slice %349 {offsets = [0, 64], sizes = [2, 32], strides = [1, 1]} : vector<2x96xf32> to vector<2x32xf32>
    %364 = vector.extract_strided_slice %352 {offsets = [0, 64], sizes = [2, 32], strides = [1, 1]} : vector<2x96xf32> to vector<2x32xf32>
    %365 = arith.mulf %361, %364 : vector<2x32xf32>
    %366 = arith.addf %363, %365 : vector<2x32xf32>
    %367 = math.tanh %366 : vector<2x32xf32>
    %cst_99 = arith.constant 1.000000e+00 : f32
    %368 = vector.broadcast %cst_99 : f32 to vector<2x32xf32>
    %369 = arith.subf %368, %362 : vector<2x32xf32>
    %370 = arith.mulf %369, %367 : vector<2x32xf32>
    %371 = arith.mulf %362, %311 : vector<2x32xf32>
    %372 = arith.addf %370, %371 : vector<2x32xf32>
    %373 = arith.index_cast %346 : i32 to index
    %c0_100 = arith.constant 0 : index
    %c0_101 = arith.constant 0 : index
    %374 = vector.load %arg8[%373, %c0_100, %c0_101] : memref<8x2x32xf32, #tpu.memory_space<vmem>>, vector<1x2x32xf32>
    %375 = vector.shape_cast %374 : vector<1x2x32xf32> to vector<2x32xf32>
    %376 = vector.shape_cast %372 : vector<2x32xf32> to vector<1x2x32xf32>
    tpu.vector_store %arg8[%373, %c0_100, %c0_101], %376 {strides = array<i32>} : memref<8x2x32xf32, #tpu.memory_space<vmem>>, vector<1x2x32xf32>,
    %c6_i32 = arith.constant 6 : i32
    %377 = arith.index_cast %c6_i32 : i32 to index
    %c0_102 = arith.constant 0 : index
    %c0_103 = arith.constant 0 : index
    %378 = vector.load %arg1[%377, %c0_102, %c0_103] : memref<8x2x96xf32, #tpu.memory_space<vmem>>, vector<1x2x96xf32>
    %379 = vector.shape_cast %378 : vector<1x2x96xf32> to vector<2x96xf32>
    %cst_104 = arith.constant dense<0.000000e+00> : vector<2x96xf32>
    %380 = tpu.matmul %341, %3, %cst_104 {dimension_numbers = #tpu.dot_dimension_numbers<[1], [0], [0], [1], [0, 0, 1, 1], [], []>} : vector<2x32xf32>, vector<32x96xf32>, vector<2x96xf32> -> vector<2x96xf32>
    %381 = vector.broadcast %5 : vector<1x96xf32> to vector<2x96xf32>
    %382 = arith.addf %380, %381 : vector<2x96xf32>
    %383 = vector.extract_strided_slice %379 {offsets = [0, 0], sizes = [2, 64], strides = [1, 1]} : vector<2x96xf32> to vector<2x64xf32>
    %384 = vector.extract_strided_slice %382 {offsets = [0, 0], sizes = [2, 64], strides = [1, 1]} : vector<2x96xf32> to vector<2x64xf32>
    %385 = arith.addf %383, %384 : vector<2x64xf32>
    %386 = arith.negf %385 : vector<2x64xf32>
    %387 = math.exp %386 : vector<2x64xf32>
    %cst_105 = arith.constant 1.000000e+00 : f32
    %388 = vector.broadcast %cst_105 : f32 to vector<2x64xf32>
    %389 = arith.addf %388, %387 : vector<2x64xf32>
    %390 = arith.divf %388, %389 : vector<2x64xf32>
    %391 = vector.extract_strided_slice %390 {offsets = [0, 0], sizes = [2, 32], strides = [1, 1]} : vector<2x64xf32> to vector<2x32xf32>
    %392 = vector.extract_strided_slice %390 {offsets = [0, 32], sizes = [2, 32], strides = [1, 1]} : vector<2x64xf32> to vector<2x32xf32>
    %393 = vector.extract_strided_slice %379 {offsets = [0, 64], sizes = [2, 32], strides = [1, 1]} : vector<2x96xf32> to vector<2x32xf32>
    %394 = vector.extract_strided_slice %382 {offsets = [0, 64], sizes = [2, 32], strides = [1, 1]} : vector<2x96xf32> to vector<2x32xf32>
    %395 = arith.mulf %391, %394 : vector<2x32xf32>
    %396 = arith.addf %393, %395 : vector<2x32xf32>
    %397 = math.tanh %396 : vector<2x32xf32>
    %cst_106 = arith.constant 1.000000e+00 : f32
    %398 = vector.broadcast %cst_106 : f32 to vector<2x32xf32>
    %399 = arith.subf %398, %392 : vector<2x32xf32>
    %400 = arith.mulf %399, %397 : vector<2x32xf32>
    %401 = arith.mulf %392, %341 : vector<2x32xf32>
    %402 = arith.addf %400, %401 : vector<2x32xf32>
    %403 = arith.index_cast %c6_i32 : i32 to index
    %c0_107 = arith.constant 0 : index
    %c0_108 = arith.constant 0 : index
    %404 = vector.load %arg7[%403, %c0_107, %c0_108] : memref<8x2x32xf32, #tpu.memory_space<vmem>>, vector<1x2x32xf32>
    %405 = vector.shape_cast %404 : vector<1x2x32xf32> to vector<2x32xf32>
    %406 = vector.shape_cast %402 : vector<2x32xf32> to vector<1x2x32xf32>
    tpu.vector_store %arg7[%403, %c0_107, %c0_108], %406 {strides = array<i32>} : memref<8x2x32xf32, #tpu.memory_space<vmem>>, vector<1x2x32xf32>,
    %c7_i32_109 = arith.constant 7 : i32
    %407 = arith.subi %c7_i32_109, %c6_i32 : i32
    %408 = arith.index_cast %407 : i32 to index
    %c0_110 = arith.constant 0 : index
    %c0_111 = arith.constant 0 : index
    %409 = vector.load %arg2[%408, %c0_110, %c0_111] : memref<8x2x96xf32, #tpu.memory_space<vmem>>, vector<1x2x96xf32>
    %410 = vector.shape_cast %409 : vector<1x2x96xf32> to vector<2x96xf32>
    %cst_112 = arith.constant dense<0.000000e+00> : vector<2x96xf32>
    %411 = tpu.matmul %372, %4, %cst_112 {dimension_numbers = #tpu.dot_dimension_numbers<[1], [0], [0], [1], [0, 0, 1, 1], [], []>} : vector<2x32xf32>, vector<32x96xf32>, vector<2x96xf32> -> vector<2x96xf32>
    %412 = vector.broadcast %6 : vector<1x96xf32> to vector<2x96xf32>
    %413 = arith.addf %411, %412 : vector<2x96xf32>
    %414 = vector.extract_strided_slice %410 {offsets = [0, 0], sizes = [2, 64], strides = [1, 1]} : vector<2x96xf32> to vector<2x64xf32>
    %415 = vector.extract_strided_slice %413 {offsets = [0, 0], sizes = [2, 64], strides = [1, 1]} : vector<2x96xf32> to vector<2x64xf32>
    %416 = arith.addf %414, %415 : vector<2x64xf32>
    %417 = arith.negf %416 : vector<2x64xf32>
    %418 = math.exp %417 : vector<2x64xf32>
    %cst_113 = arith.constant 1.000000e+00 : f32
    %419 = vector.broadcast %cst_113 : f32 to vector<2x64xf32>
    %420 = arith.addf %419, %418 : vector<2x64xf32>
    %421 = arith.divf %419, %420 : vector<2x64xf32>
    %422 = vector.extract_strided_slice %421 {offsets = [0, 0], sizes = [2, 32], strides = [1, 1]} : vector<2x64xf32> to vector<2x32xf32>
    %423 = vector.extract_strided_slice %421 {offsets = [0, 32], sizes = [2, 32], strides = [1, 1]} : vector<2x64xf32> to vector<2x32xf32>
    %424 = vector.extract_strided_slice %410 {offsets = [0, 64], sizes = [2, 32], strides = [1, 1]} : vector<2x96xf32> to vector<2x32xf32>
    %425 = vector.extract_strided_slice %413 {offsets = [0, 64], sizes = [2, 32], strides = [1, 1]} : vector<2x96xf32> to vector<2x32xf32>
    %426 = arith.mulf %422, %425 : vector<2x32xf32>
    %427 = arith.addf %424, %426 : vector<2x32xf32>
    %428 = math.tanh %427 : vector<2x32xf32>
    %cst_114 = arith.constant 1.000000e+00 : f32
    %429 = vector.broadcast %cst_114 : f32 to vector<2x32xf32>
    %430 = arith.subf %429, %423 : vector<2x32xf32>
    %431 = arith.mulf %430, %428 : vector<2x32xf32>
    %432 = arith.mulf %423, %372 : vector<2x32xf32>
    %433 = arith.addf %431, %432 : vector<2x32xf32>
    %434 = arith.index_cast %407 : i32 to index
    %c0_115 = arith.constant 0 : index
    %c0_116 = arith.constant 0 : index
    %435 = vector.load %arg8[%434, %c0_115, %c0_116] : memref<8x2x32xf32, #tpu.memory_space<vmem>>, vector<1x2x32xf32>
    %436 = vector.shape_cast %435 : vector<1x2x32xf32> to vector<2x32xf32>
    %437 = vector.shape_cast %433 : vector<2x32xf32> to vector<1x2x32xf32>
    tpu.vector_store %arg8[%434, %c0_115, %c0_116], %437 {strides = array<i32>} : memref<8x2x32xf32, #tpu.memory_space<vmem>>, vector<1x2x32xf32>,
    %c7_i32_117 = arith.constant 7 : i32
    %438 = arith.index_cast %c7_i32_117 : i32 to index
    %c0_118 = arith.constant 0 : index
    %c0_119 = arith.constant 0 : index
    %439 = vector.load %arg1[%438, %c0_118, %c0_119] : memref<8x2x96xf32, #tpu.memory_space<vmem>>, vector<1x2x96xf32>
    %440 = vector.shape_cast %439 : vector<1x2x96xf32> to vector<2x96xf32>
    %cst_120 = arith.constant dense<0.000000e+00> : vector<2x96xf32>
    %441 = tpu.matmul %402, %3, %cst_120 {dimension_numbers = #tpu.dot_dimension_numbers<[1], [0], [0], [1], [0, 0, 1, 1], [], []>} : vector<2x32xf32>, vector<32x96xf32>, vector<2x96xf32> -> vector<2x96xf32>
    %442 = vector.broadcast %5 : vector<1x96xf32> to vector<2x96xf32>
    %443 = arith.addf %441, %442 : vector<2x96xf32>
    %444 = vector.extract_strided_slice %440 {offsets = [0, 0], sizes = [2, 64], strides = [1, 1]} : vector<2x96xf32> to vector<2x64xf32>
    %445 = vector.extract_strided_slice %443 {offsets = [0, 0], sizes = [2, 64], strides = [1, 1]} : vector<2x96xf32> to vector<2x64xf32>
    %446 = arith.addf %444, %445 : vector<2x64xf32>
    %447 = arith.negf %446 : vector<2x64xf32>
    %448 = math.exp %447 : vector<2x64xf32>
    %cst_121 = arith.constant 1.000000e+00 : f32
    %449 = vector.broadcast %cst_121 : f32 to vector<2x64xf32>
    %450 = arith.addf %449, %448 : vector<2x64xf32>
    %451 = arith.divf %449, %450 : vector<2x64xf32>
    %452 = vector.extract_strided_slice %451 {offsets = [0, 0], sizes = [2, 32], strides = [1, 1]} : vector<2x64xf32> to vector<2x32xf32>
    %453 = vector.extract_strided_slice %451 {offsets = [0, 32], sizes = [2, 32], strides = [1, 1]} : vector<2x64xf32> to vector<2x32xf32>
    %454 = vector.extract_strided_slice %440 {offsets = [0, 64], sizes = [2, 32], strides = [1, 1]} : vector<2x96xf32> to vector<2x32xf32>
    %455 = vector.extract_strided_slice %443 {offsets = [0, 64], sizes = [2, 32], strides = [1, 1]} : vector<2x96xf32> to vector<2x32xf32>
    %456 = arith.mulf %452, %455 : vector<2x32xf32>
    %457 = arith.addf %454, %456 : vector<2x32xf32>
    %458 = math.tanh %457 : vector<2x32xf32>
    %cst_122 = arith.constant 1.000000e+00 : f32
    %459 = vector.broadcast %cst_122 : f32 to vector<2x32xf32>
    %460 = arith.subf %459, %453 : vector<2x32xf32>
    %461 = arith.mulf %460, %458 : vector<2x32xf32>
    %462 = arith.mulf %453, %402 : vector<2x32xf32>
    %463 = arith.addf %461, %462 : vector<2x32xf32>
    %464 = arith.index_cast %c7_i32_117 : i32 to index
    %c0_123 = arith.constant 0 : index
    %c0_124 = arith.constant 0 : index
    %465 = vector.load %arg7[%464, %c0_123, %c0_124] : memref<8x2x32xf32, #tpu.memory_space<vmem>>, vector<1x2x32xf32>
    %466 = vector.shape_cast %465 : vector<1x2x32xf32> to vector<2x32xf32>
    %467 = vector.shape_cast %463 : vector<2x32xf32> to vector<1x2x32xf32>
    tpu.vector_store %arg7[%464, %c0_123, %c0_124], %467 {strides = array<i32>} : memref<8x2x32xf32, #tpu.memory_space<vmem>>, vector<1x2x32xf32>,
    %c7_i32_125 = arith.constant 7 : i32
    %468 = arith.subi %c7_i32_125, %c7_i32_117 : i32
    %469 = arith.index_cast %468 : i32 to index
    %c0_126 = arith.constant 0 : index
    %c0_127 = arith.constant 0 : index
    %470 = vector.load %arg2[%469, %c0_126, %c0_127] : memref<8x2x96xf32, #tpu.memory_space<vmem>>, vector<1x2x96xf32>
    %471 = vector.shape_cast %470 : vector<1x2x96xf32> to vector<2x96xf32>
    %cst_128 = arith.constant dense<0.000000e+00> : vector<2x96xf32>
    %472 = tpu.matmul %433, %4, %cst_128 {dimension_numbers = #tpu.dot_dimension_numbers<[1], [0], [0], [1], [0, 0, 1, 1], [], []>} : vector<2x32xf32>, vector<32x96xf32>, vector<2x96xf32> -> vector<2x96xf32>
    %473 = vector.broadcast %6 : vector<1x96xf32> to vector<2x96xf32>
    %474 = arith.addf %472, %473 : vector<2x96xf32>
    %475 = vector.extract_strided_slice %471 {offsets = [0, 0], sizes = [2, 64], strides = [1, 1]} : vector<2x96xf32> to vector<2x64xf32>
    %476 = vector.extract_strided_slice %474 {offsets = [0, 0], sizes = [2, 64], strides = [1, 1]} : vector<2x96xf32> to vector<2x64xf32>
    %477 = arith.addf %475, %476 : vector<2x64xf32>
    %478 = arith.negf %477 : vector<2x64xf32>
    %479 = math.exp %478 : vector<2x64xf32>
    %cst_129 = arith.constant 1.000000e+00 : f32
    %480 = vector.broadcast %cst_129 : f32 to vector<2x64xf32>
    %481 = arith.addf %480, %479 : vector<2x64xf32>
    %482 = arith.divf %480, %481 : vector<2x64xf32>
    %483 = vector.extract_strided_slice %482 {offsets = [0, 0], sizes = [2, 32], strides = [1, 1]} : vector<2x64xf32> to vector<2x32xf32>
    %484 = vector.extract_strided_slice %482 {offsets = [0, 32], sizes = [2, 32], strides = [1, 1]} : vector<2x64xf32> to vector<2x32xf32>
    %485 = vector.extract_strided_slice %471 {offsets = [0, 64], sizes = [2, 32], strides = [1, 1]} : vector<2x96xf32> to vector<2x32xf32>
    %486 = vector.extract_strided_slice %474 {offsets = [0, 64], sizes = [2, 32], strides = [1, 1]} : vector<2x96xf32> to vector<2x32xf32>
    %487 = arith.mulf %483, %486 : vector<2x32xf32>
    %488 = arith.addf %485, %487 : vector<2x32xf32>
    %489 = math.tanh %488 : vector<2x32xf32>
    %cst_130 = arith.constant 1.000000e+00 : f32
    %490 = vector.broadcast %cst_130 : f32 to vector<2x32xf32>
    %491 = arith.subf %490, %484 : vector<2x32xf32>
    %492 = arith.mulf %491, %489 : vector<2x32xf32>
    %493 = arith.mulf %484, %433 : vector<2x32xf32>
    %494 = arith.addf %492, %493 : vector<2x32xf32>
    %495 = arith.index_cast %468 : i32 to index
    %c0_131 = arith.constant 0 : index
    %c0_132 = arith.constant 0 : index
    %496 = vector.load %arg8[%495, %c0_131, %c0_132] : memref<8x2x32xf32, #tpu.memory_space<vmem>>, vector<1x2x32xf32>
    %497 = vector.shape_cast %496 : vector<1x2x32xf32> to vector<2x32xf32>
    %498 = vector.shape_cast %494 : vector<2x32xf32> to vector<1x2x32xf32>
    tpu.vector_store %arg8[%495, %c0_131, %c0_132], %498 {strides = array<i32>} : memref<8x2x32xf32, #tpu.memory_space<vmem>>, vector<1x2x32xf32>,
    %c8_i32 = arith.constant 8 : i32
    %c0_133 = arith.constant 0 : index
    %c0_134 = arith.constant 0 : index
    %c0_135 = arith.constant 0 : index
    %499 = vector.load %arg9[%c0_133, %c0_134, %c0_135] : memref<2x2x32xf32, #tpu.memory_space<vmem>>, vector<1x2x32xf32>
    %500 = vector.shape_cast %499 : vector<1x2x32xf32> to vector<2x32xf32>
    %501 = vector.shape_cast %463 : vector<2x32xf32> to vector<1x2x32xf32>
    tpu.vector_store %arg9[%c0_133, %c0_134, %c0_135], %501 {strides = array<i32>} : memref<2x2x32xf32, #tpu.memory_space<vmem>>, vector<1x2x32xf32>,
    %c1_136 = arith.constant 1 : index
    %c0_137 = arith.constant 0 : index
    %c0_138 = arith.constant 0 : index
    %502 = vector.load %arg9[%c1_136, %c0_137, %c0_138] : memref<2x2x32xf32, #tpu.memory_space<vmem>>, vector<1x2x32xf32>
    %503 = vector.shape_cast %502 : vector<1x2x32xf32> to vector<2x32xf32>
    %504 = vector.shape_cast %494 : vector<2x32xf32> to vector<1x2x32xf32>
    tpu.vector_store %arg9[%c1_136, %c0_137, %c0_138], %504 {strides = array<i32>} : memref<2x2x32xf32, #tpu.memory_space<vmem>>, vector<1x2x32xf32>,
    return
  }
  func.func @transform_0(%arg0: i32) -> (i32, i32, i32) {
    %c0_i32 = arith.constant 0 : i32
    %c0_i32_0 = arith.constant 0 : i32
    %c0_i32_1 = arith.constant 0 : i32
    return %arg0, %c0_i32, %c0_i32_0 : i32, i32, i32
  }
  func.func @transform_1(%arg0: i32) -> (i32, i32, i32) {
    %c0_i32 = arith.constant 0 : i32
    %0 = arith.subi %c0_i32, %arg0 : i32
    %c0_i32_0 = arith.constant 0 : i32
    %c0_i32_1 = arith.constant 0 : i32
    %c0_i32_2 = arith.constant 0 : i32
    return %0, %c0_i32_0, %c0_i32_1 : i32, i32, i32
  }
  func.func @transform_2(%arg0: i32) -> (i32, i32) {
    %c0_i32 = arith.constant 0 : i32
    %c0_i32_0 = arith.constant 0 : i32
    %c0_i32_1 = arith.constant 0 : i32
    return %c0_i32, %c0_i32_0 : i32, i32
  }
  func.func @transform_3(%arg0: i32) -> (i32, i32) {
    %c0_i32 = arith.constant 0 : i32
    %c0_i32_0 = arith.constant 0 : i32
    %c0_i32_1 = arith.constant 0 : i32
    return %c0_i32, %c0_i32_0 : i32, i32
  }
  func.func @transform_4(%arg0: i32) -> (i32, i32) {
    %c0_i32 = arith.constant 0 : i32
    %c0_i32_0 = arith.constant 0 : i32
    %c0_i32_1 = arith.constant 0 : i32
    return %c0_i32, %c0_i32_0 : i32, i32
  }
  func.func @transform_5(%arg0: i32) -> (i32, i32) {
    %c0_i32 = arith.constant 0 : i32
    %c0_i32_0 = arith.constant 0 : i32
    %c0_i32_1 = arith.constant 0 : i32
    return %c0_i32, %c0_i32_0 : i32, i32
  }
  func.func @transform_6(%arg0: i32) -> (i32, i32, i32) {
    %c0_i32 = arith.constant 0 : i32
    %c0_i32_0 = arith.constant 0 : i32
    %c0_i32_1 = arith.constant 0 : i32
    return %arg0, %c0_i32, %c0_i32_0 : i32, i32, i32
  }
  func.func @transform_7(%arg0: i32) -> (i32, i32, i32) {
    %c0_i32 = arith.constant 0 : i32
    %0 = arith.subi %c0_i32, %arg0 : i32
    %c0_i32_0 = arith.constant 0 : i32
    %c0_i32_1 = arith.constant 0 : i32
    %c0_i32_2 = arith.constant 0 : i32
    return %0, %c0_i32_0, %c0_i32_1 : i32, i32, i32
  }
}

module attributes {stable_mosaic.version = 11 : i64} {
  func.func @_matmul_kernel(%arg0: i32, %arg1: i32, %arg2: i32, %arg3: memref<16x64xf32, #tpu.memory_space<vmem>>, %arg4: memref<64x96xbf16, #tpu.memory_space<vmem>>, %arg5: memref<1x96xf32, #tpu.memory_space<vmem>>, %arg6: memref<1x64xf32, #tpu.memory_space<vmem>>, %arg7: memref<1x64xf32, #tpu.memory_space<vmem>>, %arg8: memref<16x96xf32, #tpu.memory_space<vmem>>, %arg9: memref<16x96xf32, #tpu.memory_space<vmem>>) attributes {dimension_semantics = [#tpu.dimension_semantics<parallel>, #tpu.dimension_semantics<parallel>, #tpu.dimension_semantics<arbitrary>], iteration_bounds = array<i64: 1, 1, 1>, scalar_prefetch = 0 : i64, scratch_operands = 1 : i64, tpu.core_type = #tpu.core_type<tc>, window_params = [{transform_indices = @transform_0, window_bounds = array<i64: 16, 64>}, {transform_indices = @transform_1, window_bounds = array<i64: 64, 96>}, {transform_indices = @transform_2, window_bounds = array<i64: 1, 96>}, {pipeline_mode = #tpu.pipeline_mode<synchronous>, transform_indices = @transform_3, window_bounds = array<i64: 1, 64>}, {pipeline_mode = #tpu.pipeline_mode<synchronous>, transform_indices = @transform_4, window_bounds = array<i64: 1, 64>}, {transform_indices = @transform_5, window_bounds = array<i64: 16, 96>}]} {
    %c0_i32 = arith.constant 0 : i32
    %0 = arith.cmpi eq, %arg2, %c0_i32 : i32
    %1 = arith.extui %0 : i1 to i32
    %c0_i32_0 = arith.constant 0 : i32
    %2 = arith.cmpi ne, %1, %c0_i32_0 : i32
    scf.if %2 {
      %c0_22 = arith.constant 0 : index
      %c0_23 = arith.constant 0 : index
      %45 = vector.load %arg5[%c0_22, %c0_23] : memref<1x96xf32, #tpu.memory_space<vmem>>, vector<1x96xf32>
      %46 = vector.shape_cast %45 : vector<1x96xf32> to vector<1x96xf32>
      %47 = vector.broadcast %46 : vector<1x96xf32> to vector<16x96xf32>
      %c0_24 = arith.constant 0 : index
      %c0_25 = arith.constant 0 : index
      %48 = vector.load %arg9[%c0_24, %c0_25] : memref<16x96xf32, #tpu.memory_space<vmem>>, vector<16x96xf32>
      tpu.vector_store %arg9[%c0_24, %c0_25], %47 {strides = array<i32>} : memref<16x96xf32, #tpu.memory_space<vmem>>, vector<16x96xf32>,
    } else {
    }
    %c0 = arith.constant 0 : index
    %c0_1 = arith.constant 0 : index
    %3 = vector.load %arg3[%c0, %c0_1] : memref<16x64xf32, #tpu.memory_space<vmem>>, vector<16x64xf32>
    %cst = arith.constant dense<0.000000e+00> : vector<16xf32>
    %4 = vector.multi_reduction <add>, %3, %cst [1] : vector<16x64xf32> to vector<16xf32>
    %5 = vector.shape_cast %4 : vector<16xf32> to vector<16x1xf32>
    %cst_2 = arith.constant 6.400000e+01 : f32
    %6 = vector.broadcast %cst_2 : f32 to vector<16x1xf32>
    %7 = arith.divf %5, %6 : vector<16x1xf32>
    %8 = vector.broadcast %7 : vector<16x1xf32> to vector<16x64xf32>
    %9 = arith.subf %3, %8 : vector<16x64xf32>
    %10 = arith.mulf %9, %9 : vector<16x64xf32>
    %cst_3 = arith.constant dense<0.000000e+00> : vector<16xf32>
    %11 = vector.multi_reduction <add>, %10, %cst_3 [1] : vector<16x64xf32> to vector<16xf32>
    %12 = vector.shape_cast %11 : vector<16xf32> to vector<16x1xf32>
    %cst_4 = arith.constant 6.400000e+01 : f32
    %13 = vector.broadcast %cst_4 : f32 to vector<16x1xf32>
    %14 = arith.divf %12, %13 : vector<16x1xf32>
    %15 = vector.broadcast %7 : vector<16x1xf32> to vector<16x64xf32>
    %16 = arith.subf %3, %15 : vector<16x64xf32>
    %cst_5 = arith.constant 9.99999974E-6 : f32
    %17 = vector.broadcast %cst_5 : f32 to vector<16x1xf32>
    %18 = arith.addf %14, %17 : vector<16x1xf32>
    %19 = math.rsqrt %18 : vector<16x1xf32>
    %20 = vector.broadcast %19 : vector<16x1xf32> to vector<16x64xf32>
    %21 = arith.mulf %16, %20 : vector<16x64xf32>
    %c0_6 = arith.constant 0 : index
    %c0_7 = arith.constant 0 : index
    %22 = vector.load %arg6[%c0_6, %c0_7] : memref<1x64xf32, #tpu.memory_space<vmem>>, vector<1x64xf32>
    %23 = vector.broadcast %22 : vector<1x64xf32> to vector<16x64xf32>
    %24 = arith.mulf %21, %23 : vector<16x64xf32>
    %c0_8 = arith.constant 0 : index
    %c0_9 = arith.constant 0 : index
    %25 = vector.load %arg7[%c0_8, %c0_9] : memref<1x64xf32, #tpu.memory_space<vmem>>, vector<1x64xf32>
    %26 = vector.broadcast %25 : vector<1x64xf32> to vector<16x64xf32>
    %27 = arith.addf %24, %26 : vector<16x64xf32>
    %cst_10 = arith.constant 5.000000e-01 : f32
    %28 = vector.broadcast %cst_10 : f32 to vector<16x64xf32>
    %29 = arith.mulf %28, %27 : vector<16x64xf32>
    %cst_11 = arith.constant 1.41421354 : f32
    %30 = vector.broadcast %cst_11 : f32 to vector<16x64xf32>
    %31 = arith.divf %27, %30 : vector<16x64xf32>
    %32 = math.erf %31 : vector<16x64xf32>
    %cst_12 = arith.constant 1.000000e+00 : f32
    %33 = vector.broadcast %cst_12 : f32 to vector<16x64xf32>
    %34 = arith.addf %33, %32 : vector<16x64xf32>
    %35 = arith.mulf %29, %34 : vector<16x64xf32>
    %c0_13 = arith.constant 0 : index
    %c0_14 = arith.constant 0 : index
    %36 = vector.load %arg9[%c0_13, %c0_14] : memref<16x96xf32, #tpu.memory_space<vmem>>, vector<16x96xf32>
    %37 = arith.truncf %35 : vector<16x64xf32> to vector<16x64xbf16>
    %c0_15 = arith.constant 0 : index
    %c0_16 = arith.constant 0 : index
    %38 = vector.load %arg4[%c0_15, %c0_16] : memref<64x96xbf16, #tpu.memory_space<vmem>>, vector<64x96xbf16>
    %cst_17 = arith.constant dense<0.000000e+00> : vector<16x96xf32>
    %39 = tpu.matmul %37, %38, %cst_17 {dimension_numbers = #tpu.dot_dimension_numbers<[1], [0], [0], [1], [0, 0, 1, 1], [], []>} : vector<16x64xbf16>, vector<64x96xbf16>, vector<16x96xf32> -> vector<16x96xf32>
    %40 = arith.addf %36, %39 : vector<16x96xf32>
    %c0_18 = arith.constant 0 : index
    %c0_19 = arith.constant 0 : index
    %41 = vector.load %arg9[%c0_18, %c0_19] : memref<16x96xf32, #tpu.memory_space<vmem>>, vector<16x96xf32>
    tpu.vector_store %arg9[%c0_18, %c0_19], %40 {strides = array<i32>} : memref<16x96xf32, #tpu.memory_space<vmem>>, vector<16x96xf32>,
    %c0_i32_20 = arith.constant 0 : i32
    %42 = arith.cmpi eq, %arg2, %c0_i32_20 : i32
    %43 = arith.extui %42 : i1 to i32
    %c0_i32_21 = arith.constant 0 : i32
    %44 = arith.cmpi ne, %43, %c0_i32_21 : i32
    scf.if %44 {
      %c0_22 = arith.constant 0 : index
      %c0_23 = arith.constant 0 : index
      %45 = vector.load %arg9[%c0_22, %c0_23] : memref<16x96xf32, #tpu.memory_space<vmem>>, vector<16x96xf32>
      %c0_24 = arith.constant 0 : index
      %c0_25 = arith.constant 0 : index
      %46 = vector.load %arg8[%c0_24, %c0_25] : memref<16x96xf32, #tpu.memory_space<vmem>>, vector<16x96xf32>
      tpu.vector_store %arg8[%c0_24, %c0_25], %45 {strides = array<i32>} : memref<16x96xf32, #tpu.memory_space<vmem>>, vector<16x96xf32>,
    } else {
    }
    return
  }
  func.func @transform_0(%arg0: i32, %arg1: i32, %arg2: i32) -> (i32, i32) {
    %c0_i32 = arith.constant 0 : i32
    return %arg0, %arg2 : i32, i32
  }
  func.func @transform_1(%arg0: i32, %arg1: i32, %arg2: i32) -> (i32, i32) {
    %c0_i32 = arith.constant 0 : i32
    return %arg2, %arg1 : i32, i32
  }
  func.func @transform_2(%arg0: i32, %arg1: i32, %arg2: i32) -> (i32, i32) {
    %c0_i32 = arith.constant 0 : i32
    %c0_i32_0 = arith.constant 0 : i32
    return %c0_i32, %arg1 : i32, i32
  }
  func.func @transform_3(%arg0: i32, %arg1: i32, %arg2: i32) -> (i32, i32) {
    %c0_i32 = arith.constant 0 : i32
    %c0_i32_0 = arith.constant 0 : i32
    %c0_i32_1 = arith.constant 0 : i32
    return %c0_i32, %c0_i32_0 : i32, i32
  }
  func.func @transform_4(%arg0: i32, %arg1: i32, %arg2: i32) -> (i32, i32) {
    %c0_i32 = arith.constant 0 : i32
    %c0_i32_0 = arith.constant 0 : i32
    %c0_i32_1 = arith.constant 0 : i32
    return %c0_i32, %c0_i32_0 : i32, i32
  }
  func.func @transform_5(%arg0: i32, %arg1: i32, %arg2: i32) -> (i32, i32) {
    %c0_i32 = arith.constant 0 : i32
    return %arg0, %arg1 : i32, i32
  }
}

module attributes {stable_mosaic.version = 11 : i64} {
  func.func @_bigru_kernel(%arg0: i32, %arg1: memref<2x8x96xf32, #tpu.memory_space<vmem>>, %arg2: memref<2x8x96xf32, #tpu.memory_space<vmem>>, %arg3: memref<32x96xf32, #tpu.memory_space<vmem>>, %arg4: memref<32x96xf32, #tpu.memory_space<vmem>>, %arg5: memref<1x96xf32, #tpu.memory_space<vmem>>, %arg6: memref<1x96xf32, #tpu.memory_space<vmem>>, %arg7: memref<2x8x32xf32, #tpu.memory_space<vmem>>, %arg8: memref<2x8x32xf32, #tpu.memory_space<vmem>>, %arg9: memref<2x8x32xf32, #tpu.memory_space<vmem>>) attributes {dimension_semantics = [#tpu.dimension_semantics<arbitrary>], iteration_bounds = array<i64: 1>, scalar_prefetch = 0 : i64, scratch_operands = 1 : i64, tpu.core_type = #tpu.core_type<tc>, window_params = [{transform_indices = @transform_0, window_bounds = array<i64: 2, 8, 96>}, {transform_indices = @transform_1, window_bounds = array<i64: 2, 8, 96>}, {pipeline_mode = #tpu.pipeline_mode<synchronous>, transform_indices = @transform_2, window_bounds = array<i64: 32, 96>}, {pipeline_mode = #tpu.pipeline_mode<synchronous>, transform_indices = @transform_3, window_bounds = array<i64: 32, 96>}, {pipeline_mode = #tpu.pipeline_mode<synchronous>, transform_indices = @transform_4, window_bounds = array<i64: 1, 96>}, {pipeline_mode = #tpu.pipeline_mode<synchronous>, transform_indices = @transform_5, window_bounds = array<i64: 1, 96>}, {transform_indices = @transform_6, window_bounds = array<i64: 2, 8, 32>}, {transform_indices = @transform_7, window_bounds = array<i64: 2, 8, 32>}]} {
    %c0_i32 = arith.constant 0 : i32
    %0 = arith.cmpi eq, %arg0, %c0_i32 : i32
    %1 = arith.extui %0 : i1 to i32
    %c0_i32_0 = arith.constant 0 : i32
    %2 = arith.cmpi ne, %1, %c0_i32_0 : i32
    scf.if %2 {
      %cst_49 = arith.constant 0.000000e+00 : f32
      %139 = vector.broadcast %cst_49 : f32 to vector<2x8x32xf32>
      %c0_50 = arith.constant 0 : index
      %c0_51 = arith.constant 0 : index
      %c0_52 = arith.constant 0 : index
      %140 = vector.load %arg9[%c0_50, %c0_51, %c0_52] : memref<2x8x32xf32, #tpu.memory_space<vmem>>, vector<2x8x32xf32>
      tpu.vector_store %arg9[%c0_50, %c0_51, %c0_52], %139 {strides = array<i32>} : memref<2x8x32xf32, #tpu.memory_space<vmem>>, vector<2x8x32xf32>,
    } else {
    }
    %c0 = arith.constant 0 : index
    %c0_1 = arith.constant 0 : index
    %3 = vector.load %arg3[%c0, %c0_1] : memref<32x96xf32, #tpu.memory_space<vmem>>, vector<32x96xf32>
    %c0_2 = arith.constant 0 : index
    %c0_3 = arith.constant 0 : index
    %4 = vector.load %arg4[%c0_2, %c0_3] : memref<32x96xf32, #tpu.memory_space<vmem>>, vector<32x96xf32>
    %c0_4 = arith.constant 0 : index
    %c0_5 = arith.constant 0 : index
    %5 = vector.load %arg5[%c0_4, %c0_5] : memref<1x96xf32, #tpu.memory_space<vmem>>, vector<1x96xf32>
    %c0_6 = arith.constant 0 : index
    %c0_7 = arith.constant 0 : index
    %6 = vector.load %arg6[%c0_6, %c0_7] : memref<1x96xf32, #tpu.memory_space<vmem>>, vector<1x96xf32>
    %c0_8 = arith.constant 0 : index
    %c0_9 = arith.constant 0 : index
    %c0_10 = arith.constant 0 : index
    %7 = vector.load %arg9[%c0_8, %c0_9, %c0_10] : memref<2x8x32xf32, #tpu.memory_space<vmem>>, vector<1x8x32xf32>
    %8 = vector.shape_cast %7 : vector<1x8x32xf32> to vector<8x32xf32>
    %c1 = arith.constant 1 : index
    %c0_11 = arith.constant 0 : index
    %c0_12 = arith.constant 0 : index
    %9 = vector.load %arg9[%c1, %c0_11, %c0_12] : memref<2x8x32xf32, #tpu.memory_space<vmem>>, vector<1x8x32xf32>
    %10 = vector.shape_cast %9 : vector<1x8x32xf32> to vector<8x32xf32>
    %c0_i32_13 = arith.constant 0 : i32
    %11 = arith.index_cast %c0_i32_13 : i32 to index
    %c0_14 = arith.constant 0 : index
    %c0_15 = arith.constant 0 : index
    %12 = vector.load %arg1[%11, %c0_14, %c0_15] : memref<2x8x96xf32, #tpu.memory_space<vmem>>, vector<1x8x96xf32>
    %13 = vector.shape_cast %12 : vector<1x8x96xf32> to vector<8x96xf32>
    %cst = arith.constant dense<0.000000e+00> : vector<8x96xf32>
    %14 = tpu.matmul %8, %3, %cst {dimension_numbers = #tpu.dot_dimension_numbers<[1], [0], [0], [1], [0, 0, 1, 1], [], []>} : vector<8x32xf32>, vector<32x96xf32>, vector<8x96xf32> -> vector<8x96xf32>
    %15 = vector.broadcast %5 : vector<1x96xf32> to vector<8x96xf32>
    %16 = arith.addf %14, %15 : vector<8x96xf32>
    %17 = vector.extract_strided_slice %13 {offsets = [0, 0], sizes = [8, 64], strides = [1, 1]} : vector<8x96xf32> to vector<8x64xf32>
    %18 = vector.extract_strided_slice %16 {offsets = [0, 0], sizes = [8, 64], strides = [1, 1]} : vector<8x96xf32> to vector<8x64xf32>
    %19 = arith.addf %17, %18 : vector<8x64xf32>
    %20 = arith.negf %19 : vector<8x64xf32>
    %21 = math.exp %20 : vector<8x64xf32>
    %cst_16 = arith.constant 1.000000e+00 : f32
    %22 = vector.broadcast %cst_16 : f32 to vector<8x64xf32>
    %23 = arith.addf %22, %21 : vector<8x64xf32>
    %24 = arith.divf %22, %23 : vector<8x64xf32>
    %25 = vector.extract_strided_slice %24 {offsets = [0, 0], sizes = [8, 32], strides = [1, 1]} : vector<8x64xf32> to vector<8x32xf32>
    %26 = vector.extract_strided_slice %24 {offsets = [0, 32], sizes = [8, 32], strides = [1, 1]} : vector<8x64xf32> to vector<8x32xf32>
    %27 = vector.extract_strided_slice %13 {offsets = [0, 64], sizes = [8, 32], strides = [1, 1]} : vector<8x96xf32> to vector<8x32xf32>
    %28 = vector.extract_strided_slice %16 {offsets = [0, 64], sizes = [8, 32], strides = [1, 1]} : vector<8x96xf32> to vector<8x32xf32>
    %29 = arith.mulf %25, %28 : vector<8x32xf32>
    %30 = arith.addf %27, %29 : vector<8x32xf32>
    %31 = math.tanh %30 : vector<8x32xf32>
    %cst_17 = arith.constant 1.000000e+00 : f32
    %32 = vector.broadcast %cst_17 : f32 to vector<8x32xf32>
    %33 = arith.subf %32, %26 : vector<8x32xf32>
    %34 = arith.mulf %33, %31 : vector<8x32xf32>
    %35 = arith.mulf %26, %8 : vector<8x32xf32>
    %36 = arith.addf %34, %35 : vector<8x32xf32>
    %37 = arith.index_cast %c0_i32_13 : i32 to index
    %c0_18 = arith.constant 0 : index
    %c0_19 = arith.constant 0 : index
    %38 = vector.load %arg7[%37, %c0_18, %c0_19] : memref<2x8x32xf32, #tpu.memory_space<vmem>>, vector<1x8x32xf32>
    %39 = vector.shape_cast %38 : vector<1x8x32xf32> to vector<8x32xf32>
    %40 = vector.shape_cast %36 : vector<8x32xf32> to vector<1x8x32xf32>
    tpu.vector_store %arg7[%37, %c0_18, %c0_19], %40 {strides = array<i32>} : memref<2x8x32xf32, #tpu.memory_space<vmem>>, vector<1x8x32xf32>,
    %c1_i32 = arith.constant 1 : i32
    %41 = arith.subi %c1_i32, %c0_i32_13 : i32
    %42 = arith.index_cast %41 : i32 to index
    %c0_20 = arith.constant 0 : index
    %c0_21 = arith.constant 0 : index
    %43 = vector.load %arg2[%42, %c0_20, %c0_21] : memref<2x8x96xf32, #tpu.memory_space<vmem>>, vector<1x8x96xf32>
    %44 = vector.shape_cast %43 : vector<1x8x96xf32> to vector<8x96xf32>
    %cst_22 = arith.constant dense<0.000000e+00> : vector<8x96xf32>
    %45 = tpu.matmul %10, %4, %cst_22 {dimension_numbers = #tpu.dot_dimension_numbers<[1], [0], [0], [1], [0, 0, 1, 1], [], []>} : vector<8x32xf32>, vector<32x96xf32>, vector<8x96xf32> -> vector<8x96xf32>
    %46 = vector.broadcast %6 : vector<1x96xf32> to vector<8x96xf32>
    %47 = arith.addf %45, %46 : vector<8x96xf32>
    %48 = vector.extract_strided_slice %44 {offsets = [0, 0], sizes = [8, 64], strides = [1, 1]} : vector<8x96xf32> to vector<8x64xf32>
    %49 = vector.extract_strided_slice %47 {offsets = [0, 0], sizes = [8, 64], strides = [1, 1]} : vector<8x96xf32> to vector<8x64xf32>
    %50 = arith.addf %48, %49 : vector<8x64xf32>
    %51 = arith.negf %50 : vector<8x64xf32>
    %52 = math.exp %51 : vector<8x64xf32>
    %cst_23 = arith.constant 1.000000e+00 : f32
    %53 = vector.broadcast %cst_23 : f32 to vector<8x64xf32>
    %54 = arith.addf %53, %52 : vector<8x64xf32>
    %55 = arith.divf %53, %54 : vector<8x64xf32>
    %56 = vector.extract_strided_slice %55 {offsets = [0, 0], sizes = [8, 32], strides = [1, 1]} : vector<8x64xf32> to vector<8x32xf32>
    %57 = vector.extract_strided_slice %55 {offsets = [0, 32], sizes = [8, 32], strides = [1, 1]} : vector<8x64xf32> to vector<8x32xf32>
    %58 = vector.extract_strided_slice %44 {offsets = [0, 64], sizes = [8, 32], strides = [1, 1]} : vector<8x96xf32> to vector<8x32xf32>
    %59 = vector.extract_strided_slice %47 {offsets = [0, 64], sizes = [8, 32], strides = [1, 1]} : vector<8x96xf32> to vector<8x32xf32>
    %60 = arith.mulf %56, %59 : vector<8x32xf32>
    %61 = arith.addf %58, %60 : vector<8x32xf32>
    %62 = math.tanh %61 : vector<8x32xf32>
    %cst_24 = arith.constant 1.000000e+00 : f32
    %63 = vector.broadcast %cst_24 : f32 to vector<8x32xf32>
    %64 = arith.subf %63, %57 : vector<8x32xf32>
    %65 = arith.mulf %64, %62 : vector<8x32xf32>
    %66 = arith.mulf %57, %10 : vector<8x32xf32>
    %67 = arith.addf %65, %66 : vector<8x32xf32>
    %68 = arith.index_cast %41 : i32 to index
    %c0_25 = arith.constant 0 : index
    %c0_26 = arith.constant 0 : index
    %69 = vector.load %arg8[%68, %c0_25, %c0_26] : memref<2x8x32xf32, #tpu.memory_space<vmem>>, vector<1x8x32xf32>
    %70 = vector.shape_cast %69 : vector<1x8x32xf32> to vector<8x32xf32>
    %71 = vector.shape_cast %67 : vector<8x32xf32> to vector<1x8x32xf32>
    tpu.vector_store %arg8[%68, %c0_25, %c0_26], %71 {strides = array<i32>} : memref<2x8x32xf32, #tpu.memory_space<vmem>>, vector<1x8x32xf32>,
    %c1_i32_27 = arith.constant 1 : i32
    %72 = arith.index_cast %c1_i32_27 : i32 to index
    %c0_28 = arith.constant 0 : index
    %c0_29 = arith.constant 0 : index
    %73 = vector.load %arg1[%72, %c0_28, %c0_29] : memref<2x8x96xf32, #tpu.memory_space<vmem>>, vector<1x8x96xf32>
    %74 = vector.shape_cast %73 : vector<1x8x96xf32> to vector<8x96xf32>
    %cst_30 = arith.constant dense<0.000000e+00> : vector<8x96xf32>
    %75 = tpu.matmul %36, %3, %cst_30 {dimension_numbers = #tpu.dot_dimension_numbers<[1], [0], [0], [1], [0, 0, 1, 1], [], []>} : vector<8x32xf32>, vector<32x96xf32>, vector<8x96xf32> -> vector<8x96xf32>
    %76 = vector.broadcast %5 : vector<1x96xf32> to vector<8x96xf32>
    %77 = arith.addf %75, %76 : vector<8x96xf32>
    %78 = vector.extract_strided_slice %74 {offsets = [0, 0], sizes = [8, 64], strides = [1, 1]} : vector<8x96xf32> to vector<8x64xf32>
    %79 = vector.extract_strided_slice %77 {offsets = [0, 0], sizes = [8, 64], strides = [1, 1]} : vector<8x96xf32> to vector<8x64xf32>
    %80 = arith.addf %78, %79 : vector<8x64xf32>
    %81 = arith.negf %80 : vector<8x64xf32>
    %82 = math.exp %81 : vector<8x64xf32>
    %cst_31 = arith.constant 1.000000e+00 : f32
    %83 = vector.broadcast %cst_31 : f32 to vector<8x64xf32>
    %84 = arith.addf %83, %82 : vector<8x64xf32>
    %85 = arith.divf %83, %84 : vector<8x64xf32>
    %86 = vector.extract_strided_slice %85 {offsets = [0, 0], sizes = [8, 32], strides = [1, 1]} : vector<8x64xf32> to vector<8x32xf32>
    %87 = vector.extract_strided_slice %85 {offsets = [0, 32], sizes = [8, 32], strides = [1, 1]} : vector<8x64xf32> to vector<8x32xf32>
    %88 = vector.extract_strided_slice %74 {offsets = [0, 64], sizes = [8, 32], strides = [1, 1]} : vector<8x96xf32> to vector<8x32xf32>
    %89 = vector.extract_strided_slice %77 {offsets = [0, 64], sizes = [8, 32], strides = [1, 1]} : vector<8x96xf32> to vector<8x32xf32>
    %90 = arith.mulf %86, %89 : vector<8x32xf32>
    %91 = arith.addf %88, %90 : vector<8x32xf32>
    %92 = math.tanh %91 : vector<8x32xf32>
    %cst_32 = arith.constant 1.000000e+00 : f32
    %93 = vector.broadcast %cst_32 : f32 to vector<8x32xf32>
    %94 = arith.subf %93, %87 : vector<8x32xf32>
    %95 = arith.mulf %94, %92 : vector<8x32xf32>
    %96 = arith.mulf %87, %36 : vector<8x32xf32>
    %97 = arith.addf %95, %96 : vector<8x32xf32>
    %98 = arith.index_cast %c1_i32_27 : i32 to index
    %c0_33 = arith.constant 0 : index
    %c0_34 = arith.constant 0 : index
    %99 = vector.load %arg7[%98, %c0_33, %c0_34] : memref<2x8x32xf32, #tpu.memory_space<vmem>>, vector<1x8x32xf32>
    %100 = vector.shape_cast %99 : vector<1x8x32xf32> to vector<8x32xf32>
    %101 = vector.shape_cast %97 : vector<8x32xf32> to vector<1x8x32xf32>
    tpu.vector_store %arg7[%98, %c0_33, %c0_34], %101 {strides = array<i32>} : memref<2x8x32xf32, #tpu.memory_space<vmem>>, vector<1x8x32xf32>,
    %c1_i32_35 = arith.constant 1 : i32
    %102 = arith.subi %c1_i32_35, %c1_i32_27 : i32
    %103 = arith.index_cast %102 : i32 to index
    %c0_36 = arith.constant 0 : index
    %c0_37 = arith.constant 0 : index
    %104 = vector.load %arg2[%103, %c0_36, %c0_37] : memref<2x8x96xf32, #tpu.memory_space<vmem>>, vector<1x8x96xf32>
    %105 = vector.shape_cast %104 : vector<1x8x96xf32> to vector<8x96xf32>
    %cst_38 = arith.constant dense<0.000000e+00> : vector<8x96xf32>
    %106 = tpu.matmul %67, %4, %cst_38 {dimension_numbers = #tpu.dot_dimension_numbers<[1], [0], [0], [1], [0, 0, 1, 1], [], []>} : vector<8x32xf32>, vector<32x96xf32>, vector<8x96xf32> -> vector<8x96xf32>
    %107 = vector.broadcast %6 : vector<1x96xf32> to vector<8x96xf32>
    %108 = arith.addf %106, %107 : vector<8x96xf32>
    %109 = vector.extract_strided_slice %105 {offsets = [0, 0], sizes = [8, 64], strides = [1, 1]} : vector<8x96xf32> to vector<8x64xf32>
    %110 = vector.extract_strided_slice %108 {offsets = [0, 0], sizes = [8, 64], strides = [1, 1]} : vector<8x96xf32> to vector<8x64xf32>
    %111 = arith.addf %109, %110 : vector<8x64xf32>
    %112 = arith.negf %111 : vector<8x64xf32>
    %113 = math.exp %112 : vector<8x64xf32>
    %cst_39 = arith.constant 1.000000e+00 : f32
    %114 = vector.broadcast %cst_39 : f32 to vector<8x64xf32>
    %115 = arith.addf %114, %113 : vector<8x64xf32>
    %116 = arith.divf %114, %115 : vector<8x64xf32>
    %117 = vector.extract_strided_slice %116 {offsets = [0, 0], sizes = [8, 32], strides = [1, 1]} : vector<8x64xf32> to vector<8x32xf32>
    %118 = vector.extract_strided_slice %116 {offsets = [0, 32], sizes = [8, 32], strides = [1, 1]} : vector<8x64xf32> to vector<8x32xf32>
    %119 = vector.extract_strided_slice %105 {offsets = [0, 64], sizes = [8, 32], strides = [1, 1]} : vector<8x96xf32> to vector<8x32xf32>
    %120 = vector.extract_strided_slice %108 {offsets = [0, 64], sizes = [8, 32], strides = [1, 1]} : vector<8x96xf32> to vector<8x32xf32>
    %121 = arith.mulf %117, %120 : vector<8x32xf32>
    %122 = arith.addf %119, %121 : vector<8x32xf32>
    %123 = math.tanh %122 : vector<8x32xf32>
    %cst_40 = arith.constant 1.000000e+00 : f32
    %124 = vector.broadcast %cst_40 : f32 to vector<8x32xf32>
    %125 = arith.subf %124, %118 : vector<8x32xf32>
    %126 = arith.mulf %125, %123 : vector<8x32xf32>
    %127 = arith.mulf %118, %67 : vector<8x32xf32>
    %128 = arith.addf %126, %127 : vector<8x32xf32>
    %129 = arith.index_cast %102 : i32 to index
    %c0_41 = arith.constant 0 : index
    %c0_42 = arith.constant 0 : index
    %130 = vector.load %arg8[%129, %c0_41, %c0_42] : memref<2x8x32xf32, #tpu.memory_space<vmem>>, vector<1x8x32xf32>
    %131 = vector.shape_cast %130 : vector<1x8x32xf32> to vector<8x32xf32>
    %132 = vector.shape_cast %128 : vector<8x32xf32> to vector<1x8x32xf32>
    tpu.vector_store %arg8[%129, %c0_41, %c0_42], %132 {strides = array<i32>} : memref<2x8x32xf32, #tpu.memory_space<vmem>>, vector<1x8x32xf32>,
    %c2_i32 = arith.constant 2 : i32
    %c0_43 = arith.constant 0 : index
    %c0_44 = arith.constant 0 : index
    %c0_45 = arith.constant 0 : index
    %133 = vector.load %arg9[%c0_43, %c0_44, %c0_45] : memref<2x8x32xf32, #tpu.memory_space<vmem>>, vector<1x8x32xf32>
    %134 = vector.shape_cast %133 : vector<1x8x32xf32> to vector<8x32xf32>
    %135 = vector.shape_cast %97 : vector<8x32xf32> to vector<1x8x32xf32>
    tpu.vector_store %arg9[%c0_43, %c0_44, %c0_45], %135 {strides = array<i32>} : memref<2x8x32xf32, #tpu.memory_space<vmem>>, vector<1x8x32xf32>,
    %c1_46 = arith.constant 1 : index
    %c0_47 = arith.constant 0 : index
    %c0_48 = arith.constant 0 : index
    %136 = vector.load %arg9[%c1_46, %c0_47, %c0_48] : memref<2x8x32xf32, #tpu.memory_space<vmem>>, vector<1x8x32xf32>
    %137 = vector.shape_cast %136 : vector<1x8x32xf32> to vector<8x32xf32>
    %138 = vector.shape_cast %128 : vector<8x32xf32> to vector<1x8x32xf32>
    tpu.vector_store %arg9[%c1_46, %c0_47, %c0_48], %138 {strides = array<i32>} : memref<2x8x32xf32, #tpu.memory_space<vmem>>, vector<1x8x32xf32>,
    return
  }
  func.func @transform_0(%arg0: i32) -> (i32, i32, i32) {
    %c0_i32 = arith.constant 0 : i32
    %c0_i32_0 = arith.constant 0 : i32
    %c0_i32_1 = arith.constant 0 : i32
    return %arg0, %c0_i32, %c0_i32_0 : i32, i32, i32
  }
  func.func @transform_1(%arg0: i32) -> (i32, i32, i32) {
    %c0_i32 = arith.constant 0 : i32
    %0 = arith.subi %c0_i32, %arg0 : i32
    %c0_i32_0 = arith.constant 0 : i32
    %c0_i32_1 = arith.constant 0 : i32
    %c0_i32_2 = arith.constant 0 : i32
    return %0, %c0_i32_0, %c0_i32_1 : i32, i32, i32
  }
  func.func @transform_2(%arg0: i32) -> (i32, i32) {
    %c0_i32 = arith.constant 0 : i32
    %c0_i32_0 = arith.constant 0 : i32
    %c0_i32_1 = arith.constant 0 : i32
    return %c0_i32, %c0_i32_0 : i32, i32
  }
  func.func @transform_3(%arg0: i32) -> (i32, i32) {
    %c0_i32 = arith.constant 0 : i32
    %c0_i32_0 = arith.constant 0 : i32
    %c0_i32_1 = arith.constant 0 : i32
    return %c0_i32, %c0_i32_0 : i32, i32
  }
  func.func @transform_4(%arg0: i32) -> (i32, i32) {
    %c0_i32 = arith.constant 0 : i32
    %c0_i32_0 = arith.constant 0 : i32
    %c0_i32_1 = arith.constant 0 : i32
    return %c0_i32, %c0_i32_0 : i32, i32
  }
  func.func @transform_5(%arg0: i32) -> (i32, i32) {
    %c0_i32 = arith.constant 0 : i32
    %c0_i32_0 = arith.constant 0 : i32
    %c0_i32_1 = arith.constant 0 : i32
    return %c0_i32, %c0_i32_0 : i32, i32
  }
  func.func @transform_6(%arg0: i32) -> (i32, i32, i32) {
    %c0_i32 = arith.constant 0 : i32
    %c0_i32_0 = arith.constant 0 : i32
    %c0_i32_1 = arith.constant 0 : i32
    return %arg0, %c0_i32, %c0_i32_0 : i32, i32, i32
  }
  func.func @transform_7(%arg0: i32) -> (i32, i32, i32) {
    %c0_i32 = arith.constant 0 : i32
    %0 = arith.subi %c0_i32, %arg0 : i32
    %c0_i32_0 = arith.constant 0 : i32
    %c0_i32_1 = arith.constant 0 : i32
    %c0_i32_2 = arith.constant 0 : i32
    return %0, %c0_i32_0, %c0_i32_1 : i32, i32, i32
  }
}

module attributes {stable_mosaic.version = 11 : i64} {
  func.func @_matmul_kernel(%arg0: i32, %arg1: i32, %arg2: i32, %arg3: memref<16x64xf32, #tpu.memory_space<vmem>>, %arg4: memref<64x32xbf16, #tpu.memory_space<vmem>>, %arg5: memref<1x32xf32, #tpu.memory_space<vmem>>, %arg6: memref<16x32xbf16, #tpu.memory_space<vmem>>, %arg7: memref<16x32xf32, #tpu.memory_space<vmem>>) attributes {dimension_semantics = [#tpu.dimension_semantics<parallel>, #tpu.dimension_semantics<parallel>, #tpu.dimension_semantics<arbitrary>], iteration_bounds = array<i64: 1, 1, 1>, scalar_prefetch = 0 : i64, scratch_operands = 1 : i64, tpu.core_type = #tpu.core_type<tc>, window_params = [{transform_indices = @transform_0, window_bounds = array<i64: 16, 64>}, {transform_indices = @transform_1, window_bounds = array<i64: 64, 32>}, {transform_indices = @transform_2, window_bounds = array<i64: 1, 32>}, {transform_indices = @transform_3, window_bounds = array<i64: 16, 32>}]} {
    %c0_i32 = arith.constant 0 : i32
    %0 = arith.cmpi eq, %arg2, %c0_i32 : i32
    %1 = arith.extui %0 : i1 to i32
    %c0_i32_0 = arith.constant 0 : i32
    %2 = arith.cmpi ne, %1, %c0_i32_0 : i32
    scf.if %2 {
      %c0_10 = arith.constant 0 : index
      %c0_11 = arith.constant 0 : index
      %13 = vector.load %arg5[%c0_10, %c0_11] : memref<1x32xf32, #tpu.memory_space<vmem>>, vector<1x32xf32>
      %14 = vector.shape_cast %13 : vector<1x32xf32> to vector<1x32xf32>
      %15 = vector.broadcast %14 : vector<1x32xf32> to vector<16x32xf32>
      %c0_12 = arith.constant 0 : index
      %c0_13 = arith.constant 0 : index
      %16 = vector.load %arg7[%c0_12, %c0_13] : memref<16x32xf32, #tpu.memory_space<vmem>>, vector<16x32xf32>
      tpu.vector_store %arg7[%c0_12, %c0_13], %15 {strides = array<i32>} : memref<16x32xf32, #tpu.memory_space<vmem>>, vector<16x32xf32>,
    } else {
    }
    %c0 = arith.constant 0 : index
    %c0_1 = arith.constant 0 : index
    %3 = vector.load %arg3[%c0, %c0_1] : memref<16x64xf32, #tpu.memory_space<vmem>>, vector<16x64xf32>
    %c0_2 = arith.constant 0 : index
    %c0_3 = arith.constant 0 : index
    %4 = vector.load %arg7[%c0_2, %c0_3] : memref<16x32xf32, #tpu.memory_space<vmem>>, vector<16x32xf32>
    %5 = arith.truncf %3 : vector<16x64xf32> to vector<16x64xbf16>
    %c0_4 = arith.constant 0 : index
    %c0_5 = arith.constant 0 : index
    %6 = vector.load %arg4[%c0_4, %c0_5] : memref<64x32xbf16, #tpu.memory_space<vmem>>, vector<64x32xbf16>
    %cst = arith.constant dense<0.000000e+00> : vector<16x32xf32>
    %7 = tpu.matmul %5, %6, %cst {dimension_numbers = #tpu.dot_dimension_numbers<[1], [0], [0], [1], [0, 0, 1, 1], [], []>} : vector<16x64xbf16>, vector<64x32xbf16>, vector<16x32xf32> -> vector<16x32xf32>
    %8 = arith.addf %4, %7 : vector<16x32xf32>
    %c0_6 = arith.constant 0 : index
    %c0_7 = arith.constant 0 : index
    %9 = vector.load %arg7[%c0_6, %c0_7] : memref<16x32xf32, #tpu.memory_space<vmem>>, vector<16x32xf32>
    tpu.vector_store %arg7[%c0_6, %c0_7], %8 {strides = array<i32>} : memref<16x32xf32, #tpu.memory_space<vmem>>, vector<16x32xf32>,
    %c0_i32_8 = arith.constant 0 : i32
    %10 = arith.cmpi eq, %arg2, %c0_i32_8 : i32
    %11 = arith.extui %10 : i1 to i32
    %c0_i32_9 = arith.constant 0 : i32
    %12 = arith.cmpi ne, %11, %c0_i32_9 : i32
    scf.if %12 {
      %c0_10 = arith.constant 0 : index
      %c0_11 = arith.constant 0 : index
      %13 = vector.load %arg7[%c0_10, %c0_11] : memref<16x32xf32, #tpu.memory_space<vmem>>, vector<16x32xf32>
      %cst_12 = arith.constant 5.000000e-01 : f32
      %14 = vector.broadcast %cst_12 : f32 to vector<16x32xf32>
      %15 = arith.mulf %14, %13 : vector<16x32xf32>
      %cst_13 = arith.constant 1.41421354 : f32
      %16 = vector.broadcast %cst_13 : f32 to vector<16x32xf32>
      %17 = arith.divf %13, %16 : vector<16x32xf32>
      %18 = math.erf %17 : vector<16x32xf32>
      %cst_14 = arith.constant 1.000000e+00 : f32
      %19 = vector.broadcast %cst_14 : f32 to vector<16x32xf32>
      %20 = arith.addf %19, %18 : vector<16x32xf32>
      %21 = arith.mulf %15, %20 : vector<16x32xf32>
      %22 = arith.truncf %21 : vector<16x32xf32> to vector<16x32xbf16>
      %c0_15 = arith.constant 0 : index
      %c0_16 = arith.constant 0 : index
      %23 = vector.load %arg6[%c0_15, %c0_16] : memref<16x32xbf16, #tpu.memory_space<vmem>>, vector<16x32xbf16>
      tpu.vector_store %arg6[%c0_15, %c0_16], %22 {strides = array<i32>} : memref<16x32xbf16, #tpu.memory_space<vmem>>, vector<16x32xbf16>,
    } else {
    }
    return
  }
  func.func @transform_0(%arg0: i32, %arg1: i32, %arg2: i32) -> (i32, i32) {
    %c0_i32 = arith.constant 0 : i32
    return %arg0, %arg2 : i32, i32
  }
  func.func @transform_1(%arg0: i32, %arg1: i32, %arg2: i32) -> (i32, i32) {
    %c0_i32 = arith.constant 0 : i32
    return %arg2, %arg1 : i32, i32
  }
  func.func @transform_2(%arg0: i32, %arg1: i32, %arg2: i32) -> (i32, i32) {
    %c0_i32 = arith.constant 0 : i32
    %c0_i32_0 = arith.constant 0 : i32
    return %c0_i32, %arg1 : i32, i32
  }
  func.func @transform_3(%arg0: i32, %arg1: i32, %arg2: i32) -> (i32, i32) {
    %c0_i32 = arith.constant 0 : i32
    return %arg0, %arg1 : i32, i32
  }
}

module attributes {stable_mosaic.version = 11 : i64} {
  func.func @_matmul_kernel(%arg0: i32, %arg1: i32, %arg2: i32, %arg3: memref<16x32xbf16, #tpu.memory_space<vmem>>, %arg4: memref<32x10xbf16, #tpu.memory_space<vmem>>, %arg5: memref<1x10xf32, #tpu.memory_space<vmem>>, %arg6: memref<16x10xf32, #tpu.memory_space<vmem>>, %arg7: memref<16x10xf32, #tpu.memory_space<vmem>>) attributes {dimension_semantics = [#tpu.dimension_semantics<parallel>, #tpu.dimension_semantics<parallel>, #tpu.dimension_semantics<arbitrary>], iteration_bounds = array<i64: 1, 1, 1>, scalar_prefetch = 0 : i64, scratch_operands = 1 : i64, tpu.core_type = #tpu.core_type<tc>, window_params = [{transform_indices = @transform_0, window_bounds = array<i64: 16, 32>}, {transform_indices = @transform_1, window_bounds = array<i64: 32, 10>}, {transform_indices = @transform_2, window_bounds = array<i64: 1, 10>}, {transform_indices = @transform_3, window_bounds = array<i64: 16, 10>}]} {
    %c0_i32 = arith.constant 0 : i32
    %0 = arith.cmpi eq, %arg2, %c0_i32 : i32
    %1 = arith.extui %0 : i1 to i32
    %c0_i32_0 = arith.constant 0 : i32
    %2 = arith.cmpi ne, %1, %c0_i32_0 : i32
    scf.if %2 {
      %c0_10 = arith.constant 0 : index
      %c0_11 = arith.constant 0 : index
      %12 = vector.load %arg5[%c0_10, %c0_11] : memref<1x10xf32, #tpu.memory_space<vmem>>, vector<1x10xf32>
      %13 = vector.shape_cast %12 : vector<1x10xf32> to vector<1x10xf32>
      %14 = vector.broadcast %13 : vector<1x10xf32> to vector<16x10xf32>
      %c0_12 = arith.constant 0 : index
      %c0_13 = arith.constant 0 : index
      %15 = vector.load %arg7[%c0_12, %c0_13] : memref<16x10xf32, #tpu.memory_space<vmem>>, vector<16x10xf32>
      tpu.vector_store %arg7[%c0_12, %c0_13], %14 {strides = array<i32>} : memref<16x10xf32, #tpu.memory_space<vmem>>, vector<16x10xf32>,
    } else {
    }
    %c0 = arith.constant 0 : index
    %c0_1 = arith.constant 0 : index
    %3 = vector.load %arg3[%c0, %c0_1] : memref<16x32xbf16, #tpu.memory_space<vmem>>, vector<16x32xbf16>
    %c0_2 = arith.constant 0 : index
    %c0_3 = arith.constant 0 : index
    %4 = vector.load %arg7[%c0_2, %c0_3] : memref<16x10xf32, #tpu.memory_space<vmem>>, vector<16x10xf32>
    %c0_4 = arith.constant 0 : index
    %c0_5 = arith.constant 0 : index
    %5 = vector.load %arg4[%c0_4, %c0_5] : memref<32x10xbf16, #tpu.memory_space<vmem>>, vector<32x10xbf16>
    %cst = arith.constant dense<0.000000e+00> : vector<16x10xf32>
    %6 = tpu.matmul %3, %5, %cst {dimension_numbers = #tpu.dot_dimension_numbers<[1], [0], [0], [1], [0, 0, 1, 1], [], []>} : vector<16x32xbf16>, vector<32x10xbf16>, vector<16x10xf32> -> vector<16x10xf32>
    %7 = arith.addf %4, %6 : vector<16x10xf32>
    %c0_6 = arith.constant 0 : index
    %c0_7 = arith.constant 0 : index
    %8 = vector.load %arg7[%c0_6, %c0_7] : memref<16x10xf32, #tpu.memory_space<vmem>>, vector<16x10xf32>
    tpu.vector_store %arg7[%c0_6, %c0_7], %7 {strides = array<i32>} : memref<16x10xf32, #tpu.memory_space<vmem>>, vector<16x10xf32>,
    %c0_i32_8 = arith.constant 0 : i32
    %9 = arith.cmpi eq, %arg2, %c0_i32_8 : i32
    %10 = arith.extui %9 : i1 to i32
    %c0_i32_9 = arith.constant 0 : i32
    %11 = arith.cmpi ne, %10, %c0_i32_9 : i32
    scf.if %11 {
      %c0_10 = arith.constant 0 : index
      %c0_11 = arith.constant 0 : index
      %12 = vector.load %arg7[%c0_10, %c0_11] : memref<16x10xf32, #tpu.memory_space<vmem>>, vector<16x10xf32>
      %c0_12 = arith.constant 0 : index
      %c0_13 = arith.constant 0 : index
      %13 = vector.load %arg6[%c0_12, %c0_13] : memref<16x10xf32, #tpu.memory_space<vmem>>, vector<16x10xf32>
      tpu.vector_store %arg6[%c0_12, %c0_13], %12 {strides = array<i32>} : memref<16x10xf32, #tpu.memory_space<vmem>>, vector<16x10xf32>,
    } else {
    }
    return
  }
  func.func @transform_0(%arg0: i32, %arg1: i32, %arg2: i32) -> (i32, i32) {
    %c0_i32 = arith.constant 0 : i32
    return %arg0, %arg2 : i32, i32
  }
  func.func @transform_1(%arg0: i32, %arg1: i32, %arg2: i32) -> (i32, i32) {
    %c0_i32 = arith.constant 0 : i32
    return %arg2, %arg1 : i32, i32
  }
  func.func @transform_2(%arg0: i32, %arg1: i32, %arg2: i32) -> (i32, i32) {
    %c0_i32 = arith.constant 0 : i32
    %c0_i32_0 = arith.constant 0 : i32
    return %c0_i32, %arg1 : i32, i32
  }
  func.func @transform_3(%arg0: i32, %arg1: i32, %arg2: i32) -> (i32, i32) {
    %c0_i32 = arith.constant 0 : i32
    return %arg0, %arg1 : i32, i32
  }
}

</mosaic_0001>

<bundles_post_ra>
// kernel: speech_recognition_forward.12
= control target key start
LH: loop header
LB: loop body
LE: loop exit
PB: predicated region body
PF: predicated region fallthrough
CT: control target
= control target key end

     0   :  { %s646_s12 = smov 0   ;;  %s648_s13 = smov 0   ;;  %s719_s0 = inlined_call_operand.vmem [shape: f32[128,9], index: 0, kind: input, shape index: {}]   ;;  %s720_s1 = inlined_call_operand.vmem [shape: bf16[9,16], index: 1, kind: input, shape index: {}]   ;;  %s721_s2 = inlined_call_operand.vmem [shape: f32[1,16], index: 2, kind: input, shape index: {}]   ;;  %s722_s3 = inlined_call_operand.vmem [shape: f32[128,16], index: 3, kind: output, shape index: {}]  }
   0x1   :  { %s650_s14 = smov 0  }
   0x2 LB: > { %s32_s15 = sadd.s32 1, %s619_s13  ;;  %p545_p0 = scmp.ge.s32.totalorder %s623_s14, 1  ;;  %s623_s14 = sphi %s650_s14, %s13_s14   ;;  %s619_s13 = sphi %s648_s13, %s724_s13   ;;  %s615_s12 = sphi %s646_s12, %s723_s12  }
   0x3   : > { %p34_p1 = scmp.ge.s32.totalorder %s32_s15, 2  ;;  %p188_p2 = scmp.lt.s32.totalorder %s623_s14, 3 }
   0x5   : > { %s726_s15 = smov (%p34_p1, %s32_s15), 0  ;;  %p189_p3 = pnand %p545_p0, %p188_p2 }
   0x6   : > { %v600_v0 = vld [vmem:[%s720_s1] sm:$0x1f] (!%p189_p3)   ;;  %vm320_vm0 = vcmask (!%p189_p3), 1043456   ;;  %vm321_vm1 = vcmask (!%p189_p3), 1044480   ;;  %s546_s18 = sshll.u32 (!%p189_p3), %s615_s12, 3  ;;  %v625_v1 = vmov (!%p189_p3), 65535  }
   0x7   : > { %192 = sbr.rel (%p189_p3) target bundleno = 248 (0xf8), region = 32  ;;  %v322_v2 = vsel (!%p189_p3), %vm320_vm0, 4294967295, %v625_v1  ;;  %p230_p4 = scmp.lt.s32.totalorder (!%p189_p3), %s546_s18, 15  ;;  %v550_v3 = vld [vmem:[%s721_s2] ss:$0 sm:$0xff] (!%p189_p3)  ;;  %vm271_vm2 = vcmask (!%p189_p3), 130048  }
   0x8   : > { %v323_v4 = vsel (!%p189_p3), %vm321_vm1, %v322_v2, 0  ;;  %274 = vst.msk [vmem:[#allocation2 + $0x10] sm:$0xff] (!%p189_p3), %vm271_vm2, %v550_v3  ;;  %272 = vst.msk [vmem:[#allocation2] sm:$0xff] (!%p189_p3), %vm271_vm2, %v550_v3  ;;  %vm307_vm3 = vcmask (!%p189_p3), 72704  }
   0x9   : > { %273 = vst.msk [vmem:[#allocation2 + $0x8] sm:$0xff] (!%p189_p3), %vm271_vm2, %v550_v3  ;;  %275 = vst.msk [vmem:[#allocation2 + $0x18] sm:$0xff] (!%p189_p3), %vm271_vm2, %v550_v3  ;;  %v325_v5 = vand.u32 (!%p189_p3), %v600_v0, %v323_v4 }
   0xa   : > { %276 = vst.msk [vmem:[#allocation2 + $0x20] sm:$0xff] (!%p189_p3), %vm271_vm2, %v550_v3  ;;  %277 = vst.msk [vmem:[#allocation2 + $0x28] sm:$0xff] (!%p189_p3), %vm271_vm2, %v550_v3 }
   0xb   : > { %278 = vst.msk [vmem:[#allocation2 + $0x30] sm:$0xff] (!%p189_p3), %vm271_vm2, %v550_v3  ;;  %279 = vst.msk [vmem:[#allocation2 + $0x38] sm:$0xff] (!%p189_p3), %vm271_vm2, %v550_v3  ;;  %563 = vmatprep.subr.bf16.mxu0 (!%p189_p3), %v325_v5  ;;  %573 = vmatprep.subr.bf16.mxu1 (!%p189_p3), %v325_v5 }
   0xc   : > { %564 = vmatpush3.bf16.msra.mxu0 (!%p189_p3), %v325_v5  ;;  %574 = vmatpush3.bf16.msra.mxu1 (!%p189_p3), %v325_v5 }
   0xe   : > { %s728_s18 = smov (!%p230_p4, %s546_s18), 15 }
   0xf   : > { %s547_s21 = sshll.u32 %s728_s18, 3  ;;  %v290_v18 = vld [vmem:[#allocation2 + $0x10] sm:$0xff]  ;;  %v288_v20 = vld [vmem:[#allocation2] sm:$0xff] }
  0x10   : > { %s236_s24 = scalar_lea.vmem %s719_s0, %s547_s21  ;;  %v291_v23 = vld [vmem:[#allocation2 + $0x18] sm:$0xff]  ;;  %v289_v28 = vld [vmem:[#allocation2 + $0x8] sm:$0xff]  ;;  %s257_s27 = scalar_lea.vmem %s722_s3, %s547_s21 }
  0x11   : > { %v280_v6 = vld [vmem:[%s236_s24] sm:$0xff]  ;;  %v281_v7 = vld [vmem:[%s236_s24 + $0x8] sm:$0xff]  ;;  %v282_v11 = vld [vmem:[%s236_s24 + $0x10] sm:$0xff] }
  0x12   : > { %v284_v8 = vld [vmem:[%s236_s24 + $0x20] sm:$0xff]  ;;  %v296_v9 = vpack.c.bf16 %v281_v7, %v280_v6  ;;  %v285_v10 = vld [vmem:[%s236_s24 + $0x28] sm:$0xff]  ;;  %v283_v12 = vld [vmem:[%s236_s24 + $0x18] sm:$0xff] }
  0x13   : > { %v298_v13 = vpack.c.bf16 %v285_v10, %v284_v8  ;;  %v297_v14 = vpack.c.bf16 %v283_v12, %v282_v11  ;;  %v286_v15 = vld [vmem:[%s236_s24 + $0x30] sm:$0xff]  ;;  %v287_v16 = vld [vmem:[%s236_s24 + $0x38] sm:$0xff]  ;;  %v292_v22 = vld [vmem:[#allocation2 + $0x20] sm:$0xff] }
  0x14   : > { %565 = vmatprep.mubr.msk.bf16.mxu0 %vm307_vm3, %v296_v9  ;;  %v299_v17 = vpack.c.bf16 %v287_v16, %v286_v15  ;;  %v294_v19 = vld [vmem:[#allocation2 + $0x30] sm:$0xff]  ;;  %v295_v27 = vld [vmem:[#allocation2 + $0x38] sm:$0xff]  ;;  %v293_v33 = vld [vmem:[#allocation2 + $0x28] sm:$0xff] }
  0x15   : > { %569 = vmatprep.mubr.msk.bf16.mxu1 %vm307_vm3, %v298_v13  ;;  %566 = vmatmul.mubr.msk.bf16.vlgmr.msra.gmra.mrb[0].mxu0 %vm307_vm3, %v297_v14 }
  0x16   : > { %570 = vmatmul.mubr.msk.bf16.vlgmr.msra.gmra.mrb[0].mxu1 %vm307_vm3, %v299_v17 }
  0xe8   : > { %v567_v21 = vpop.f32.mrb[0].mxu0 }
  0xe9   : > { %v394_v24 = vadd.f32 %v567_v21, %v290_v18  ;;  %v571_v25 = vpop.f32.mrb[0].mxu1  ;;  %v361_v26 = vpop.f32.mrb[1].mxu0 }
  0xea   : > { %v398_v29 = vadd.f32 %v571_v25, %v294_v19  ;;  %v392_v30 = vadd.f32 %v361_v26, %v288_v20  ;;  %v377_v31 = vpop.f32.mrb[1].mxu1  ;;  %v568_v32 = vpop.f32.mrb[2].mxu0 }
  0xeb   : > { %403 = vst.msk [vmem:[#allocation2 + $0x10] sm:$0xff] %vm271_vm2, %v394_v24  ;;  %v396_v34 = vadd.f32 %v377_v31, %v292_v22  ;;  %v395_v35 = vadd.f32 %v568_v32, %v291_v23  ;;  %v572_v36 = vpop.f32.mrb[2].mxu1  ;;  %v364_v37 = vpop.f32.mrb[3].mxu0 }
  0xec   : > { %407 = vst.msk [vmem:[#allocation2 + $0x30] sm:$0xff] %vm271_vm2, %v398_v29  ;;  %401 = vst.msk [vmem:[#allocation2] sm:$0xff] %vm271_vm2, %v392_v30  ;;  %v399_v38 = vadd.f32 %v572_v36, %v295_v27  ;;  %v393_v39 = vadd.f32 %v364_v37, %v289_v28  ;;  %v380_v40 = vpop.f32.mrb[3].mxu1 }
  0xed   : > { %405 = vst.msk [vmem:[#allocation2 + $0x20] sm:$0xff] %vm271_vm2, %v396_v34  ;;  %404 = vst.msk [vmem:[#allocation2 + $0x18] sm:$0xff] %vm271_vm2, %v395_v35  ;;  %v397_v41 = vadd.f32 %v380_v40, %v293_v33 }
  0xee   : > { %408 = vst.msk [vmem:[#allocation2 + $0x38] sm:$0xff] %vm271_vm2, %v399_v38  ;;  %402 = vst.msk [vmem:[#allocation2 + $0x8] sm:$0xff] %vm271_vm2, %v393_v39 }
  0xef   : > { %406 = vst.msk [vmem:[#allocation2 + $0x28] sm:$0xff] %vm271_vm2, %v397_v41 }
  0xf2   : > { %v414_v42 = vld [vmem:[#allocation2 + $0x10] sm:$0xff] }
  0xf3   : > { %422 = vst.msk [vmem:[%s257_s27 + $0x10] sm:$0xff] %vm271_vm2, %v414_v42  ;;  %v418_v43 = vld [vmem:[#allocation2 + $0x30] sm:$0xff]  ;;  %v412_v44 = vld [vmem:[#allocation2] sm:$0xff] }
  0xf4   : > { %426 = vst.msk [vmem:[%s257_s27 + $0x30] sm:$0xff] %vm271_vm2, %v418_v43  ;;  %420 = vst.msk [vmem:[%s257_s27] sm:$0xff] %vm271_vm2, %v412_v44  ;;  %v416_v45 = vld [vmem:[#allocation2 + $0x20] sm:$0xff]  ;;  %v415_v46 = vld [vmem:[#allocation2 + $0x18] sm:$0xff] }
  0xf5   : > { %424 = vst.msk [vmem:[%s257_s27 + $0x20] sm:$0xff] %vm271_vm2, %v416_v45  ;;  %423 = vst.msk [vmem:[%s257_s27 + $0x18] sm:$0xff] %vm271_vm2, %v415_v46  ;;  %v419_v47 = vld [vmem:[#allocation2 + $0x38] sm:$0xff]  ;;  %v413_v48 = vld [vmem:[#allocation2 + $0x8] sm:$0xff] }
  0xf6   : > { %427 = vst.msk [vmem:[%s257_s27 + $0x38] sm:$0xff] %vm271_vm2, %v419_v47  ;;  %421 = vst.msk [vmem:[%s257_s27 + $0x8] sm:$0xff] %vm271_vm2, %v413_v48  ;;  %v417_v49 = vld [vmem:[#allocation2 + $0x28] sm:$0xff] }
  0xf7   : > { %425 = vst.msk [vmem:[%s257_s27 + $0x28] sm:$0xff] %vm271_vm2, %v417_v49 }
  0xf8 PF: > { %s13_s14 = sadd.s32 1, %s623_s14   ;;  %s723_s12 = smov %s619_s13 }
  0xf9   : > { %p10_p5 = scmp.ge.s32.totalorder %s13_s14, 4   ;;  %s724_s13 = smov %s726_s15 }
  0xfb   :  { %12 = sbr.rel (!%p10_p5) target bundleno = 2 (0x2), region = 76 }

// kernel: speech_recognition_forward.15
= control target key start
LH: loop header
LB: loop body
LE: loop exit
PB: predicated region body
PF: predicated region fallthrough
CT: control target
= control target key end

     0   :  { %v203_v0 = vmov 0.0   ;;  %vm204_vm0 = vmmov 0   ;;  %vm26_vm1 = vcmask 261120   ;;  %s270_s1 = inlined_call_operand.vmem [shape: bf16[128,32], index: 1, kind: input, shape index: {}]   ;;  %s271_s2 = inlined_call_operand.vmem [shape: f32[1,32], index: 2, kind: input, shape index: {}]   ;;  %s272_s0 = inlined_call_operand.vmem [shape: f32[16,128], index: 0, kind: input, shape index: {}]   ;;  %s273_s3 = inlined_call_operand.vmem [shape: f32[16,32], index: 3, kind: output, shape index: {}]  }
   0x1   :  { %173 = vmatprep.subr.bf16.mxu0 %v203_v0  ;;  %v195_v1 = vld [vmem:[%s270_s1] sm:$0xff]   ;;  %189 = vmatprep.mubr.msk.bf16.mxu0 %vm204_vm0, %v203_v0  ;;  %v196_v2 = vld [vmem:[%s270_s1 + $0x8] sm:$0xff]   ;;  %v197_v3 = vld [vmem:[%s270_s1 + $0x10] sm:$0xff]  }
   0x2   :  { %174 = vmatpush3.bf16.msra.mxu0 %v195_v1  ;;  %v155_v4 = vld [vmem:[%s271_s2] ss:$0 sm:$0xff]  ;;  %v198_v5 = vld [vmem:[%s270_s1 + $0x18] sm:$0xff]   ;;  %v200_v7 = vld [vmem:[%s270_s1 + $0x28] sm:$0xff]  }
   0x3   :  { %175 = vmatprep.subr.bf16.mxu0 %v203_v0  ;;  %27 = vst.msk [vmem:[#allocation2] sm:$0xff] %vm26_vm1, %v155_v4  ;;  %28 = vst.msk [vmem:[#allocation2 + $0x8] sm:$0xff] %vm26_vm1, %v155_v4  ;;  %v199_v6 = vld [vmem:[%s270_s1 + $0x20] sm:$0xff]   ;;  %v201_v8 = vld [vmem:[%s270_s1 + $0x30] sm:$0xff]  }
   0x4   :  { %v202_v9 = vld [vmem:[%s270_s1 + $0x38] sm:$0xff]   ;;  %v29_v10 = vld [vmem:[%s272_s0] sm:$0xff]  ;;  %v30_v11 = vld [vmem:[%s272_s0 + $0x8] sm:$0xff] }
   0x5   :  { %v33_v12 = vpack.c.bf16 %v30_v11, %v29_v10 }
   0x6   :  { %176 = vmatpush3.bf16.msra.mxu0 %v196_v2 }
   0x7   :  { %177 = vmatprep.subr.bf16.mxu0 %v203_v0 }
   0xa   :  { %178 = vmatpush3.bf16.msra.mxu0 %v197_v3  ;;  %v31_v13 = vld [vmem:[#allocation2] sm:$0xff]  ;;  %v32_v15 = vld [vmem:[#allocation2 + $0x8] sm:$0xff] }
   0xb   :  { %179 = vmatprep.subr.bf16.mxu0 %v203_v0 }
   0xe   :  { %180 = vmatpush3.bf16.msra.mxu0 %v198_v5 }
   0xf   :  { %181 = vmatprep.subr.bf16.mxu0 %v203_v0 }
  0x12   :  { %182 = vmatpush3.bf16.msra.mxu0 %v199_v6 }
  0x13   :  { %183 = vmatprep.subr.bf16.mxu0 %v203_v0 }
  0x16   :  { %184 = vmatpush3.bf16.msra.mxu0 %v200_v7 }
  0x17   :  { %185 = vmatprep.subr.bf16.mxu0 %v203_v0 }
  0x1a   :  { %186 = vmatpush3.bf16.msra.mxu0 %v201_v8 }
  0x1b   :  { %187 = vmatprep.subr.bf16.mxu0 %v203_v0 }
  0x1e   :  { %188 = vmatpush3.bf16.msra.mxu0 %v202_v9 }
  0x21   :  { %190 = vmatmul.mubr.bf16.vlgmr.msra.gmra.mrb[0].mxu0 %v33_v12 }
  0xf4   :  { %v132_v14 = vpop.f32.mrb[0].mxu0 }
  0xf5   :  { %v139_v16 = vadd.f32 %v132_v14, %v31_v13  ;;  %v191_v17 = vpop.f32.mrb[1].mxu0 }
  0xf6   :  { %v135_v18 = vpop.f32.mrb[2].mxu0 }
  0xf7   :  { %142 = vst.msk [vmem:[#allocation2] sm:$0xff] %vm26_vm1, %v139_v16  ;;  %v140_v19 = vadd.f32 %v135_v18, %v32_v15  ;;  %v192_v20 = vpop.f32.mrb[3].mxu0 }
  0xf9   :  { %143 = vst.msk [vmem:[#allocation2 + $0x8] sm:$0xff] %vm26_vm1, %v140_v19 }
  0xfe   :  { %v147_v21 = vld [vmem:[#allocation2] sm:$0xff] }
  0xff   :  { %149 = vst.msk [vmem:[%s273_s3] sm:$0xff] %vm26_vm1, %v147_v21 }
 0x100   :  { %v148_v22 = vld [vmem:[#allocation2 + $0x8] sm:$0xff] }
 0x101   :  { %150 = vst.msk [vmem:[%s273_s3 + $0x8] sm:$0xff] %vm26_vm1, %v148_v22 }

// kernel: speech_recognition_forward.17
= control target key start
LH: loop header
LB: loop body
LE: loop exit
PB: predicated region body
PF: predicated region fallthrough
CT: control target
= control target key end

     0   :  { %vm37_vm0 = vcmask 261120   ;;  %v202_v14 = vmov 0.0   ;;  %vm203_vm1 = vmmov 0   ;;  %vm32_vm2 = vcmask 785408   ;;  %s272_s0 = inlined_call_operand.vmem [shape: f32[16,32], index: 0, kind: input, shape index: {}]   ;;  %s273_s1 = inlined_call_operand.vmem [shape: bf16[32,96], index: 1, kind: input, shape index: {}]   ;;  %s274_s2 = inlined_call_operand.vmem [shape: f32[1,96], index: 2, kind: input, shape index: {}]   ;;  %s275_s3 = inlined_call_operand.vmem [shape: f32[1,32], index: 3, kind: input, shape index: {}]   ;;  %s276_s4 = inlined_call_operand.vmem [shape: f32[1,32], index: 4, kind: input, shape index: {}]   ;;  %s277_s5 = inlined_call_operand.vmem [shape: f32[16,96], index: 5, kind: output, shape index: {}]  }
   0x1   :  { %v35_v0 = vld [vmem:[%s272_s0] sm:$0xff]  ;;  %v36_v1 = vld [vmem:[%s272_s0 + $0x8] sm:$0xff]  ;;  %182 = vmatprep.subr.bf16.mxu0 %v202_v14  ;;  %186 = vmatprep.mubr.msk.bf16.mxu0 %vm203_vm1, %v202_v14 }
   0x2   :  { %v38_v2 = vsel %vm37_vm0, %v35_v0, 0.0  ;;  %v41_v3 = vsel %vm37_vm0, %v36_v1, 0.0  ;;  %v192_v15 = vld [vmem:[%s273_s1] sm:$0xff]   ;;  %v193_v16 = vld [vmem:[%s273_s1 + $0x8] sm:$0xff]  }
   0x3   :  { %39 = vadd.xlane.f32.xlu0 %v38_v2  ;;  %183 = vmatpush3.bf16.msra.mxu0 %v192_v15  ;;  %v173_v17 = vld [vmem:[%s274_s2] ss:$0 sm:$0xff] }
   0x4   :  { %184 = vmatprep.subr.bf16.mxu0 %v202_v14  ;;  %33 = vst.msk [vmem:[#allocation2] sm:$0xff] %vm32_vm2, %v173_v17  ;;  %34 = vst.msk [vmem:[#allocation2 + $0x8] sm:$0xff] %vm32_vm2, %v173_v17  ;;  %v174_v25 = vld [vmem:[%s275_s3] ss:$0 sm:$0xff] }
   0x5   :  { %v175_v27 = vld [vmem:[%s276_s4] ss:$0 sm:$0xff] }
   0x7   :  { %42 = vadd.xlane.f32.xlu0 %v41_v3  ;;  %185 = vmatpush3.bf16.msra.mxu0 %v193_v16 }
   0xb   :  { %v94_v45 = vld [vmem:[#allocation2] sm:$0xff]  ;;  %v95_v47 = vld [vmem:[#allocation2 + $0x8] sm:$0xff] }
  0x90   :  { %v40_v4 = vpop.xlane.xlu0 %39 }
  0x91   :  { %v45_v5 = vmul.f32 0.03125, %v40_v4 }
  0x93   :  { %v47_v6 = vsub.f32 %v35_v0, %v45_v5 }
  0x94   :  { %v43_v7 = vpop.xlane.xlu0 %42 }
  0x95   :  { %v46_v8 = vmul.f32 0.03125, %v43_v7  ;;  %v49_v9 = vmul.f32 %v47_v6, %v47_v6 }
  0x97   :  { %v48_v10 = vsub.f32 %v36_v1, %v46_v8  ;;  %v51_v11 = vsel %vm37_vm0, %v49_v9, 0.0 }
  0x98   :  { %52 = vadd.xlane.f32.xlu1 %v51_v11 }
  0x99   :  { %v50_v12 = vmul.f32 %v48_v10, %v48_v10 }
  0x9b   :  { %v54_v13 = vsel %vm37_vm0, %v50_v12, 0.0 }
  0x9c   :  { %55 = vadd.xlane.f32.xlu1 %v54_v13 }
 0x125   :  { %v53_v18 = vpop.xlane.xlu1 %52 }
 0x126   :  { %v57_v19 = vmul.f32 0.03125, %v53_v18 }
 0x128   :  { %v59_v20 = vadd.f32 1e-05, %v57_v19 }
 0x129   :  { %v56_v21 = vpop.xlane.xlu1 %55 }
 0x12a   :  { %194 = vrsqrt.f32 %v59_v20  ;;  %v58_v22 = vmul.f32 0.03125, %v56_v21 }
 0x12c   :  { %v60_v23 = vadd.f32 1e-05, %v58_v22 }
 0x12e   :  { %196 = vrsqrt.f32 %v60_v23 }
 0x134   :  { %v195_v24 = vpop.eup %194 }
 0x135   :  { %v63_v26 = vmul.f32 %v195_v24, %v47_v6 }
 0x137   :  { %v72_v28 = vmul.f32 %v174_v25, %v63_v26 }
 0x138   :  { %v197_v29 = vpop.eup %196 }
 0x139   :  { %v64_v30 = vmul.f32 %v197_v29, %v48_v10  ;;  %v81_v31 = vadd.f32 %v175_v27, %v72_v28 }
 0x13b   :  { %v73_v32 = vmul.f32 %v174_v25, %v64_v30  ;;  %v86_v33 = vmul.f32 0.70710677, %v81_v31  ;;  %v83_v39 = vmul.f32 0.5, %v81_v31 }
 0x13d   :  { %v82_v34 = vadd.f32 %v175_v27, %v73_v32  ;;  %198 = verf.f32 %v86_v33 }
 0x13f   :  { %v87_v35 = vmul.f32 0.70710677, %v82_v34  ;;  %v84_v40 = vmul.f32 0.5, %v82_v34 }
 0x141   :  { %200 = verf.f32 %v87_v35 }
 0x147   :  { %v199_v36 = vpop.eup %198 }
 0x148   :  { %v90_v37 = vadd.f32 1.0, %v199_v36 }
 0x14a   :  { %v92_v42 = vmul.f32 %v90_v37, %v83_v39 }
 0x14b   :  { %v201_v38 = vpop.eup %200 }
 0x14c   :  { %v91_v41 = vadd.f32 1.0, %v201_v38 }
 0x14e   :  { %v93_v43 = vmul.f32 %v91_v41, %v84_v40 }
 0x150   :  { %v96_v44 = vpack.c.bf16 %v93_v43, %v92_v42 }
 0x152   :  { %187 = vmatmul.mubr.msk.bf16.vlgmr.msra.gmra.mrb[0].mxu0 %vm37_vm0, %v96_v44 }
 0x225   :  { %v150_v46 = vpop.f32.mrb[0].mxu0 }
 0x226   :  { %v157_v48 = vadd.f32 %v150_v46, %v94_v45  ;;  %v188_v49 = vpop.f32.mrb[1].mxu0 }
 0x227   :  { %v153_v50 = vpop.f32.mrb[2].mxu0 }
 0x228   :  { %160 = vst.msk [vmem:[#allocation2] sm:$0xff] %vm32_vm2, %v157_v48  ;;  %v158_v51 = vadd.f32 %v153_v50, %v95_v47  ;;  %v189_v52 = vpop.f32.mrb[3].mxu0 }
 0x22a   :  { %161 = vst.msk [vmem:[#allocation2 + $0x8] sm:$0xff] %vm32_vm2, %v158_v51 }
 0x22f   :  { %v165_v53 = vld [vmem:[#allocation2] sm:$0xff] }
 0x230   :  { %167 = vst.msk [vmem:[%s277_s5] sm:$0xff] %vm32_vm2, %v165_v53 }
 0x231   :  { %v166_v54 = vld [vmem:[#allocation2 + $0x8] sm:$0xff] }
 0x232   :  { %168 = vst.msk [vmem:[%s277_s5 + $0x8] sm:$0xff] %vm32_vm2, %v166_v54 }

// kernel: speech_recognition_forward.13
= control target key start
LH: loop header
LB: loop body
LE: loop exit
PB: predicated region body
PF: predicated region fallthrough
CT: control target
= control target key end

     0   :  { %s3499_s30 = smov 0   ;;  %s4248_s0 = inlined_call_operand.vmem [shape: f32[2,8,8,16], index: 0, kind: input, shape index: {}]   ;;  %s4249_s1 = inlined_call_operand.vmem [shape: f32[1,8,16], index: 1, kind: input, shape index: {}]   ;;  %s4250_s2 = inlined_call_operand.vmem [shape: f32[1,8,16], index: 2, kind: input, shape index: {}]   ;;  %s4251_s3 = inlined_call_operand.vmem [shape: f32[1,8,16], index: 3, kind: input, shape index: {}]   ;;  %s4252_s4 = inlined_call_operand.vmem [shape: f32[1,8,16], index: 4, kind: input, shape index: {}]   ;;  %s4253_s5 = inlined_call_operand.vmem [shape: bf16[3,3,16,16], index: 5, kind: input, shape index: {}]   ;;  %s4254_s6 = inlined_call_operand.vmem [shape: bf16[3,3,16,16], index: 6, kind: input, shape index: {}]   ;;  %s4255_s7 = inlined_call_operand.vmem [shape: f32[1,16], index: 7, kind: input, shape index: {}]   ;;  %s4256_s8 = inlined_call_operand.vmem [shape: f32[1,16], index: 8, kind: input, shape index: {}]   ;;  %s4257_s9 = inlined_call_operand.vmem [shape: f32[2,8,8,16], index: 9, kind: output, shape index: {}]  }
   0x1 LB: > { %s2806_s10 = sadd.s32 4294967295, %s3446_s30   ;;  %p2810_p0 = scmp.ge.s32.totalorder %s3446_s30, 1  ;;  %s3446_s30 = sphi %s3499_s30, %s19_s30  }
   0x2   : > { %p287_p1 = scmp.lt.s32.totalorder %s3446_s30, 3 }
   0x4   : > { %p288_p2 = pnand %p2810_p0, %p287_p1 }
   0x5   : > { %v3350_v0 = vld [vmem:[%s4253_s5 + $0x8] sm:$0xff] (!%p288_p2)   ;;  %p323_p3 = scmp.lt.s32.totalorder (!%p288_p2), %s2806_s10, 1  ;;  %v3515_v1 = vld [vmem:[%s4253_s5] sm:$0xff] (!%p288_p2)   ;;  %vm342_vm0 = vcmask (!%p288_p2), 130048   ;;  %vm595_vm1 = vcmask (!%p288_p2), 1040384   ;;  %vm633_vm2 = vcmask (!%p288_p2), 1046528  }
   0x6   : > { %291 = sbr.rel (%p288_p2) target bundleno = 890 (0x37a), region = 56  ;;  %3033 = vmatprep.subr.bf16.mxu0 (!%p288_p2), %v3350_v0  ;;  %vm838_vm3 = vcmask (!%p288_p2), 1045504  }
   0x7   : > { %3034 = vmatpush3.bf16.msra.mxu0 (!%p288_p2), %v3350_v0 }
   0x8   : > { %3043 = vmatprep.subr.bf16.mxu0 (!%p288_p2), %v3515_v1 }
   0xd   : > { %s4259_s10 = smov (!%p323_p3, %s2806_s10), 1 }
   0xe   : > { %s2941_s15 = sshll.u32 %s4259_s10, 6 }
   0xf   : > { %s3524_s18 = scalar_lea.vmem %s4248_s0, %s2941_s15  ;;  %s4219_s12 = scalar_lea.vmem %s4257_s9, %s2941_s15 }
  0x10   : > { %v3527_v2 = vld [vmem:[%s3524_s18] sm:$0xff]  ;;  %v3530_v3 = vld [vmem:[%s3524_s18 + $0x8] sm:$0xff]  ;;  %v3533_v4 = vld [vmem:[%s3524_s18 + $0x10] sm:$0xff] }
  0x11   : > { %v3536_v5 = vld [vmem:[%s3524_s18 + $0x18] sm:$0xff]  ;;  %v343_v6 = vsel %vm342_vm0, %v3527_v2, 0.0  ;;  %v350_v7 = vsel %vm342_vm0, %v3530_v3, 0.0  ;;  %v357_v8 = vsel %vm342_vm0, %v3533_v4, 0.0  ;;  %v3545_v9 = vld [vmem:[%s3524_s18 + $0x20] sm:$0xff]  ;;  %v3548_v10 = vld [vmem:[%s3524_s18 + $0x28] sm:$0xff] }
  0x12   : > { %v344_v11 = vrot.slane %v343_v6, 4  ;;  %v351_v12 = vrot.slane %v350_v7, 4  ;;  %v358_v13 = vrot.slane %v357_v8, 4  ;;  %v364_v14 = vsel %vm342_vm0, %v3536_v5, 0.0  ;;  %v3553_v15 = vld [vmem:[%s3524_s18 + $0x30] sm:$0xff]  ;;  %v3562_v20 = vld [vmem:[%s3524_s18 + $0x38] sm:$0xff] }
  0x13   : > { %v365_v16 = vrot.slane %v364_v14, 4  ;;  %v371_v17 = vsel %vm342_vm0, %v3545_v9, 0.0  ;;  %v378_v18 = vsel %vm342_vm0, %v3548_v10, 0.0  ;;  %v385_v19 = vsel %vm342_vm0, %v3553_v15, 0.0 }
  0x14   : > { %v345_v21 = vadd.f32 %v344_v11, %v343_v6  ;;  %v352_v22 = vadd.f32 %v351_v12, %v350_v7  ;;  %v359_v23 = vadd.f32 %v358_v13, %v357_v8  ;;  %v372_v24 = vrot.slane %v371_v17, 4 }
  0x15   : > { %v366_v25 = vadd.f32 %v365_v16, %v364_v14  ;;  %v379_v26 = vrot.slane %v378_v18, 4  ;;  %v386_v27 = vrot.slane %v385_v19, 4  ;;  %v392_v28 = vsel %vm342_vm0, %v3562_v20, 0.0 }
  0x16   : > { %v346_v29 = vrot.slane %v345_v21, 2  ;;  %v353_v30 = vrot.slane %v352_v22, 2  ;;  %v360_v31 = vrot.slane %v359_v23, 2  ;;  %v373_v32 = vadd.f32 %v372_v24, %v371_v17 }
  0x17   : > { %v367_v33 = vrot.slane %v366_v25, 2  ;;  %v380_v34 = vadd.f32 %v379_v26, %v378_v18  ;;  %v387_v35 = vadd.f32 %v386_v27, %v385_v19  ;;  %v393_v36 = vrot.slane %v392_v28, 4 }
  0x18   : > { %v347_v37 = vadd.f32 %v346_v29, %v345_v21  ;;  %v354_v38 = vadd.f32 %v353_v30, %v352_v22  ;;  %v361_v39 = vadd.f32 %v360_v31, %v359_v23  ;;  %v374_v40 = vrot.slane %v373_v32, 2 }
  0x19   : > { %v368_v41 = vadd.f32 %v367_v33, %v366_v25  ;;  %v381_v42 = vrot.slane %v380_v34, 2  ;;  %v388_v43 = vrot.slane %v387_v35, 2  ;;  %v394_v44 = vadd.f32 %v393_v36, %v392_v28 }
  0x1a   : > { %v348_v45 = vrot.slane %v347_v37, 1  ;;  %v355_v46 = vrot.slane %v354_v38, 1  ;;  %v362_v47 = vrot.slane %v361_v39, 1  ;;  %v375_v48 = vadd.f32 %v374_v40, %v373_v32 }
  0x1b   : > { %v369_v49 = vrot.slane %v368_v41, 1  ;;  %v382_v50 = vadd.f32 %v381_v42, %v380_v34  ;;  %v389_v51 = vadd.f32 %v388_v43, %v387_v35  ;;  %v395_v52 = vrot.slane %v394_v44, 2 }
  0x1c   : > { %v349_v53 = vadd.f32 %v348_v45, %v347_v37  ;;  %v356_v54 = vadd.f32 %v355_v46, %v354_v38  ;;  %v363_v55 = vadd.f32 %v362_v47, %v361_v39  ;;  %v376_v56 = vrot.slane %v375_v48, 1 }
  0x1d   : > { %v370_v57 = vadd.f32 %v369_v49, %v368_v41  ;;  %v383_v58 = vrot.slane %v382_v50, 1  ;;  %v390_v59 = vrot.slane %v389_v51, 1  ;;  %v396_v60 = vadd.f32 %v395_v52, %v394_v44 }
  0x1e   : > { %v400_v61 = vmul.f32 0.125, %v349_v53  ;;  %v401_v62 = vmul.f32 0.125, %v356_v54  ;;  %v402_v63 = vmul.f32 0.125, %v363_v55  ;;  %v377_v0 = vadd.f32 %v376_v56, %v375_v48 }
  0x1f   : > { %v403_v6 = vmul.f32 0.125, %v370_v57  ;;  %v384_v7 = vadd.f32 %v383_v58, %v382_v50  ;;  %v391_v8 = vadd.f32 %v390_v59, %v389_v51  ;;  %v397_v11 = vrot.slane %v396_v60, 1 }
  0x20   : > { %v3567_v12 = vsub.f32 %v3527_v2, %v400_v61  ;;  %v3570_v13 = vsub.f32 %v3530_v3, %v401_v62  ;;  %v3573_v14 = vsub.f32 %v3533_v4, %v402_v63  ;;  %v404_v16 = vmul.f32 0.125, %v377_v0 }
  0x21   : > { %v3576_v17 = vsub.f32 %v3536_v5, %v403_v6  ;;  %v405_v18 = vmul.f32 0.125, %v384_v7  ;;  %v406_v19 = vmul.f32 0.125, %v391_v8  ;;  %v398_v21 = vadd.f32 %v397_v11, %v396_v60 }
  0x22   : > { %v416_v22 = vmul.f32 %v3567_v12, %v3567_v12  ;;  %v417_v2 = vmul.f32 %v3570_v13, %v3570_v13  ;;  %v418_v3 = vmul.f32 %v3573_v14, %v3573_v14  ;;  %v3585_v23 = vsub.f32 %v3545_v9, %v404_v16 }
  0x23   : > { %v419_v4 = vmul.f32 %v3576_v17, %v3576_v17  ;;  %v3590_v5 = vsub.f32 %v3548_v10, %v405_v18  ;;  %v3593_v24 = vsub.f32 %v3553_v15, %v406_v19  ;;  %v407_v25 = vmul.f32 0.125, %v398_v21 }
  0x24   : > { %v424_v26 = vsel %vm342_vm0, %v416_v22, 0.0  ;;  %v431_v27 = vsel %vm342_vm0, %v417_v2, 0.0  ;;  %v438_v28 = vsel %vm342_vm0, %v418_v3, 0.0  ;;  %v420_v9 = vmul.f32 %v3585_v23, %v3585_v23 }
  0x25   : > { %v425_v29 = vrot.slane %v424_v26, 4  ;;  %v432_v30 = vrot.slane %v431_v27, 4  ;;  %v439_v31 = vrot.slane %v438_v28, 4  ;;  %v445_v32 = vsel %vm342_vm0, %v419_v4, 0.0 }
  0x26   : > { %v446_v10 = vrot.slane %v445_v32, 4  ;;  %v452_v33 = vsel %vm342_vm0, %v420_v9, 0.0  ;;  %v421_v15 = vmul.f32 %v3590_v5, %v3590_v5  ;;  %v422_v34 = vmul.f32 %v3593_v24, %v3593_v24 }
  0x27   : > { %v426_v35 = vadd.f32 %v425_v29, %v424_v26  ;;  %v433_v36 = vadd.f32 %v432_v30, %v431_v27  ;;  %v440_v37 = vadd.f32 %v439_v31, %v438_v28  ;;  %v453_v38 = vrot.slane %v452_v33, 4 }
  0x28   : > { %v447_v39 = vadd.f32 %v446_v10, %v445_v32  ;;  %v459_v40 = vsel %vm342_vm0, %v421_v15, 0.0  ;;  %v466_v41 = vsel %vm342_vm0, %v422_v34, 0.0  ;;  %v3609_v42 = vsub.f32 %v3562_v20, %v407_v25 }
  0x29   : > { %v427_v43 = vrot.slane %v426_v35, 2  ;;  %v434_v44 = vrot.slane %v433_v36, 2  ;;  %v441_v45 = vrot.slane %v440_v37, 2  ;;  %v454_v46 = vadd.f32 %v453_v38, %v452_v33 }
  0x2a   : > { %v448_v47 = vrot.slane %v447_v39, 2  ;;  %v460_v48 = vrot.slane %v459_v40, 4  ;;  %v467_v49 = vrot.slane %v466_v41, 4  ;;  %v423_v50 = vmul.f32 %v3609_v42, %v3609_v42 }
  0x2b   : > { %v428_v51 = vadd.f32 %v427_v43, %v426_v35  ;;  %v435_v52 = vadd.f32 %v434_v44, %v433_v36  ;;  %v442_v53 = vadd.f32 %v441_v45, %v440_v37  ;;  %v455_v54 = vrot.slane %v454_v46, 2 }
  0x2c   : > { %v449_v55 = vadd.f32 %v448_v47, %v447_v39  ;;  %v461_v56 = vadd.f32 %v460_v48, %v459_v40  ;;  %v468_v57 = vadd.f32 %v467_v49, %v466_v41  ;;  %v473_v20 = vsel %vm342_vm0, %v423_v50, 0.0 }
  0x2d   : > { %v429_v58 = vrot.slane %v428_v51, 1  ;;  %v436_v59 = vrot.slane %v435_v52, 1  ;;  %v443_v60 = vrot.slane %v442_v53, 1  ;;  %v456_v61 = vadd.f32 %v455_v54, %v454_v46  ;;  %v512_v46 = vld [vmem:[%s4249_s1] sm:$0xff] }
  0x2e   : > { %v450_v62 = vrot.slane %v449_v55, 1  ;;  %v462_v63 = vrot.slane %v461_v56, 2  ;;  %v469_v0 = vrot.slane %v468_v57, 2  ;;  %v474_v6 = vrot.slane %v473_v20, 4 }
  0x2f   : > { %v430_v7 = vadd.f32 %v429_v58, %v428_v51  ;;  %v437_v8 = vadd.f32 %v436_v59, %v435_v52  ;;  %v444_v11 = vadd.f32 %v443_v60, %v442_v53  ;;  %v457_v16 = vrot.slane %v456_v61, 1  ;;  %v521_v51 = vld [vmem:[%s4250_s2] sm:$0xff] }
  0x30   : > { %v451_v18 = vadd.f32 %v450_v62, %v449_v55  ;;  %v463_v19 = vadd.f32 %v462_v63, %v461_v56  ;;  %v470_v21 = vadd.f32 %v469_v0, %v468_v57  ;;  %v475_v22 = vadd.f32 %v474_v6, %v473_v20 }
  0x31   : > { %v480_v2 = vmul.f32 0.125, %v430_v7  ;;  %v481_v3 = vmul.f32 0.125, %v437_v8  ;;  %v482_v4 = vmul.f32 0.125, %v444_v11  ;;  %v458_v25 = vadd.f32 %v457_v16, %v456_v61 }
  0x32   : > { %v483_v26 = vmul.f32 0.125, %v451_v18  ;;  %v464_v27 = vrot.slane %v463_v19, 1  ;;  %v471_v28 = vrot.slane %v470_v21, 1  ;;  %v476_v9 = vrot.slane %v475_v22, 2 }
  0x33   : > { %v488_v29 = vadd.f32 1e-05, %v480_v2  ;;  %v489_v30 = vadd.f32 1e-05, %v481_v3  ;;  %v490_v31 = vadd.f32 1e-05, %v482_v4 }
  0x34   : > { %v491_v32 = vadd.f32 1e-05, %v483_v26  ;;  %v484_v10 = vmul.f32 0.125, %v458_v25  ;;  %v465_v33 = vadd.f32 %v464_v27, %v463_v19  ;;  %v472_v15 = vadd.f32 %v471_v28, %v470_v21 }
  0x35   : > { %3368 = vrsqrt.f32 %v488_v29  ;;  %v477_v34 = vadd.f32 %v476_v9, %v475_v22 }
  0x36   : > { %3370 = vrsqrt.f32 %v489_v30  ;;  %v492_v35 = vadd.f32 1e-05, %v484_v10  ;;  %v485_v36 = vmul.f32 0.125, %v465_v33  ;;  %v486_v37 = vmul.f32 0.125, %v472_v15 }
  0x37   : > { %3372 = vrsqrt.f32 %v490_v31  ;;  %v478_v38 = vrot.slane %v477_v34, 1 }
  0x38   : > { %3374 = vrsqrt.f32 %v491_v32  ;;  %v493_v39 = vadd.f32 1e-05, %v485_v36  ;;  %v494_v40 = vadd.f32 1e-05, %v486_v37 }
  0x39   : > { %3376 = vrsqrt.f32 %v492_v35  ;;  %v479_v41 = vadd.f32 %v478_v38, %v477_v34 }
  0x3a   : > { %3378 = vrsqrt.f32 %v493_v39 }
  0x3b   : > { %3380 = vrsqrt.f32 %v494_v40  ;;  %v487_v43 = vmul.f32 0.125, %v479_v41 }
  0x3d   : > { %v495_v44 = vadd.f32 1e-05, %v487_v43 }
  0x3f   : > { %v3369_v45 = vpop.eup %3368  ;;  %3382 = vrsqrt.f32 %v495_v44 }
  0x40   : > { %v3371_v47 = vpop.eup %3370  ;;  %v504_v48 = vmul.f32 %v3369_v45, %v3567_v12 }
  0x41   : > { %v3373_v49 = vpop.eup %3372  ;;  %v505_v50 = vmul.f32 %v3371_v47, %v3570_v13  ;;  %v3448_v47 = vmov 0.0  }
  0x42   : > { %v3375_v52 = vpop.eup %3374  ;;  %v506_v53 = vmul.f32 %v3373_v49, %v3573_v14  ;;  %v513_v54 = vmul.f32 %v512_v46, %v504_v48  ;;  %v3637_v48 = vrot.slane %v3448_v47, 1 }
  0x43   : > { %v3377_v55 = vpop.eup %3376  ;;  %v507_v56 = vmul.f32 %v3375_v52, %v3576_v17  ;;  %v514_v57 = vmul.f32 %v512_v46, %v505_v50 }
  0x44   : > { %v3379_v20 = vpop.eup %3378  ;;  %v515_v58 = vmul.f32 %v512_v46, %v506_v53  ;;  %v522_v59 = vadd.f32 %v521_v51, %v513_v54  ;;  %v508_v12 = vmul.f32 %v3377_v55, %v3585_v23 }
  0x45   : > { %v3381_v60 = vpop.eup %3380  ;;  %v516_v61 = vmul.f32 %v512_v46, %v507_v56  ;;  %v523_v13 = vadd.f32 %v521_v51, %v514_v57  ;;  %v509_v62 = vmul.f32 %v3379_v20, %v3590_v5 }
  0x46   : > { %v524_v63 = vadd.f32 %v521_v51, %v515_v58  ;;  %v539_v0 = vmul.f32 0.70710677, %v522_v59  ;;  %v517_v6 = vmul.f32 %v512_v46, %v508_v12  ;;  %v510_v8 = vmul.f32 %v3381_v60, %v3593_v24 }
  0x47   : > { %v525_v7 = vadd.f32 %v521_v51, %v516_v61  ;;  %v540_v14 = vmul.f32 0.70710677, %v523_v13  ;;  %v518_v19 = vmul.f32 %v512_v46, %v509_v62  ;;  %v530_v25 = vmul.f32 0.5, %v522_v59 }
  0x48   : > { %v541_v11 = vmul.f32 0.70710677, %v524_v63  ;;  %3384 = verf.f32 %v539_v0  ;;  %v526_v17 = vadd.f32 %v521_v51, %v517_v6  ;;  %v519_v21 = vmul.f32 %v512_v46, %v510_v8 }
  0x49   : > { %v3383_v16 = vpop.eup %3382  ;;  %v542_v18 = vmul.f32 0.70710677, %v525_v7  ;;  %3386 = verf.f32 %v540_v14  ;;  %v527_v22 = vadd.f32 %v521_v51, %v518_v19  ;;  %v531_v28 = vmul.f32 0.5, %v523_v13 }
  0x4a   : > { %3388 = verf.f32 %v541_v11  ;;  %v543_v23 = vmul.f32 0.70710677, %v526_v17  ;;  %v511_v5 = vmul.f32 %v3383_v16, %v3609_v42  ;;  %v528_v2 = vadd.f32 %v521_v51, %v519_v21 }
  0x4b   : > { %3390 = verf.f32 %v542_v18  ;;  %v544_v24 = vmul.f32 0.70710677, %v527_v22  ;;  %v532_v29 = vmul.f32 0.5, %v524_v63  ;;  %v533_v32 = vmul.f32 0.5, %v525_v7  ;;  %v3352_v18 = vld [vmem:[%s4253_s5 + $0x10] sm:$0xff]  }
  0x4c   : > { %3392 = verf.f32 %v543_v23  ;;  %v520_v3 = vmul.f32 %v512_v46, %v511_v5  ;;  %v545_v26 = vmul.f32 0.70710677, %v528_v2  ;;  %v534_v41 = vmul.f32 0.5, %v526_v17 }
  0x4d   : > { %3394 = verf.f32 %v544_v24  ;;  %v535_v14 = vmul.f32 0.5, %v527_v22  ;;  %v536_v8 = vmul.f32 0.5, %v528_v2 }
  0x4e   : > { %v3628_v4 = vadd.f32 %v521_v51, %v520_v3  ;;  %3396 = verf.f32 %v545_v26 }
  0x50   : > { %v546_v59 = vmul.f32 0.70710677, %v3628_v4 }
  0x52   : > { %v3385_v27 = vpop.eup %3384  ;;  %3398 = verf.f32 %v546_v59 }
  0x53   : > { %v3387_v9 = vpop.eup %3386  ;;  %v555_v30 = vadd.f32 1.0, %v3385_v27 }
  0x54   : > { %v3389_v31 = vpop.eup %3388  ;;  %v556_v10 = vadd.f32 1.0, %v3387_v9 }
  0x55   : > { %v3391_v33 = vpop.eup %3390  ;;  %v557_v42 = vadd.f32 1.0, %v3389_v31  ;;  %v563_v15 = vmul.f32 %v555_v30, %v530_v25 }
  0x56   : > { %v3393_v34 = vpop.eup %3392  ;;  %v558_v35 = vadd.f32 1.0, %v3391_v33  ;;  %v564_v36 = vmul.f32 %v556_v10, %v531_v28 }
  0x57   : > { %v565_v37 = vmul.f32 %v557_v42, %v532_v29  ;;  %v579_v38 = vrot.slane %v563_v15, 7  ;;  %v559_v43 = vadd.f32 1.0, %v3393_v34  ;;  %v3395_v62 = vpop.eup %3394 }
  0x58   : > { %v566_v39 = vmul.f32 %v558_v35, %v533_v32  ;;  %v580_v40 = vrot.slane %v564_v36, 7  ;;  %v3397_v6 = vpop.eup %3396  ;;  %v560_v23 = vadd.f32 1.0, %v3395_v62 }
  0x59   : > { %v581_v44 = vrot.slane %v565_v37, 7  ;;  %v3631_v45 = vsel %vm595_vm1, 0.0, %v579_v38  ;;  %v3634_v46 = vsel %vm595_vm1, %v579_v38, 0.0  ;;  %v567_v58 = vmul.f32 %v559_v43, %v534_v41 }
  0x5a   : > { %v582_v49 = vrot.slane %v566_v39, 7  ;;  %v3640_v50 = vsel %vm595_vm1, 0.0, %v580_v40  ;;  %v3643_v51 = vsel %vm595_vm1, %v580_v40, 0.0  ;;  %v636_v52 = vrot.slane %v3631_v45, 1 }
  0x5b   : > { %v3647_v53 = vsel %vm595_vm1, 0.0, %v581_v44  ;;  %v3650_v54 = vsel %vm595_vm1, %v581_v44, 0.0  ;;  %v637_v55 = vrot.slane %v3634_v46, 1  ;;  %v639_v56 = vrot.slane %v3640_v50, 1 }
  0x5c   : > { %v3655_v57 = vsel %vm595_vm1, 0.0, %v582_v49  ;;  %v640_v20 = vrot.slane %v3643_v51, 1  ;;  %v3660_v12 = vsel %vm595_vm1, %v582_v49, 0.0  ;;  %v642_v61 = vrot.slane %v3647_v53, 1  ;;  %v3399_v34 = vpop.eup %3398 }
  0x5d   : > { %v3663_v60 = vsel %vm633_vm2, %v636_v52, %v637_v55  ;;  %v643_v13 = vrot.slane %v3650_v54, 1  ;;  %v645_v11 = vrot.slane %v3655_v57, 1  ;;  %v646_v17 = vrot.slane %v3660_v12, 1 }
  0x5e   : > { %v3668_v63 = vsel %vm633_vm2, %v639_v56, %v640_v20  ;;  %v665_v0 = vpack.c.bf16 %v3663_v60, %v3637_v48  ;;  %v583_v19 = vrot.slane %v567_v58, 7  ;;  %v561_v21 = vadd.f32 1.0, %v3397_v6  ;;  %v3353_v20 = vld [vmem:[%s4253_s5 + $0x18] sm:$0xff]  }
  0x5f   : > { %v3673_v7 = vsel %vm633_vm2, %v642_v61, %v643_v13  ;;  %v568_v2 = vmul.f32 %v560_v23, %v535_v14  ;;  %v3695_v3 = vsel %vm633_vm2, %v645_v11, %v646_v17  ;;  %v612_v37 = vpack.c.bf16 %v3631_v45, %v3448_v47 }
  0x60   : > { %v3679_v16 = vpack.c.bf16 %v3673_v7, %v3668_v63  ;;  %3035 = vmatprep.mubr.msk.bf16.mxu0 %vm342_vm0, %v665_v0  ;;  %v3689_v5 = vsel %vm595_vm1, 0.0, %v583_v19  ;;  %v3692_v22 = vsel %vm595_vm1, %v583_v19, 0.0  ;;  %v569_v26 = vmul.f32 %v561_v21, %v536_v8 }
  0x61   : > { %v648_v24 = vrot.slane %v3689_v5, 1  ;;  %v649_v25 = vrot.slane %v3692_v22, 1  ;;  %v584_v27 = vrot.slane %v568_v2, 7  ;;  %v537_v38 = vmul.f32 0.5, %v3628_v4 }
  0x62   : > { %3036 = vmatmul.mubr.msk.bf16.vlgmr.msra.gmra.mrb[0].mxu0 %vm342_vm0, %v3679_v16  ;;  %v562_v40 = vadd.f32 1.0, %v3399_v34  ;;  %v3742_v44 = vpack.c.bf16 %v3647_v53, %v3640_v50  ;;  %v3746_v49 = vpack.c.bf16 %v3689_v5, %v3655_v57  ;;  %v842_v55 = vrot.slane %v3634_v46, 2 }
  0x63   : > { %3044 = vmatpush3.bf16.msra.mxu0 %v3515_v1  ;;  %v3700_v28 = vsel %vm633_vm2, %v648_v24, %v649_v25  ;;  %v585_v1 = vrot.slane %v569_v26, 7  ;;  %v3707_v29 = vsel %vm595_vm1, 0.0, %v584_v27  ;;  %v3710_v30 = vsel %vm595_vm1, %v584_v27, 0.0 }
  0x64   : > { %3053 = vmatprep.subr.bf16.mxu0 %v3352_v18  ;;  %v3704_v9 = vpack.c.bf16 %v3700_v28, %v3695_v3  ;;  %v651_v10 = vrot.slane %v3707_v29, 1  ;;  %v652_v33 = vrot.slane %v3710_v30, 1  ;;  %v570_v41 = vmul.f32 %v562_v40, %v537_v38 }
  0x65   : > { %v3713_v31 = vsel %vm595_vm1, 0.0, %v585_v1  ;;  %v3716_v32 = vsel %vm595_vm1, %v585_v1, 0.0  ;;  %v841_v56 = vrot.slane %v3631_v45, 2  ;;  %v3769_v46 = vrot.slane %v3448_v47, 2 }
  0x66   : > { %3039 = vmatprep.mubr.msk.bf16.mxu0 %vm342_vm0, %v3704_v9  ;;  %v654_v42 = vrot.slane %v3713_v31, 1  ;;  %v655_v15 = vrot.slane %v3716_v32, 1  ;;  %v3725_v35 = vsel %vm633_vm2, %v651_v10, %v652_v33  ;;  %v586_v43 = vrot.slane %v570_v41, 7  ;;  %v3354_v10 = vld [vmem:[%s4253_s5 + $0x20] sm:$0xff]  }
  0x67   : > { %v843_v62 = vsel %vm838_vm3, %v841_v56, %v842_v55  ;;  %v844_v0 = vrot.slane %v3640_v50, 2  ;;  %v3777_v6 = vpack.c.bf16 %v3713_v31, %v3707_v29  ;;  %v845_v14 = vrot.slane %v3643_v51, 2  ;;  %v2876_v41 = vld [vmem:[%s4255_s7] ss:$0 sm:$0xff] }
  0x68   : > { %v3728_v36 = vsel %vm633_vm2, %v654_v42, %v655_v15  ;;  %v3749_v4 = vsel %vm595_vm1, 0.0, %v586_v43  ;;  %v3752_v52 = vsel %vm595_vm1, %v586_v43, 0.0  ;;  %v847_v8 = vrot.slane %v3647_v53, 2 }
  0x69   : > { %v3735_v39 = vpack.c.bf16 %v3728_v36, %v3725_v35  ;;  %v1068_v58 = vrot.slane %v3749_v4, 1  ;;  %v1069_v59 = vrot.slane %v3752_v52, 1  ;;  %v848_v11 = vrot.slane %v3650_v54, 2 }
  0x6a   : > { %v870_v17 = vpack.c.bf16 %v843_v62, %v3769_v46  ;;  %v851_v19 = vrot.slane %v3660_v12, 2  ;;  %v853_v23 = vrot.slane %v3689_v5, 2  ;;  %v854_v21 = vrot.slane %v3692_v22, 2 }
  0x6b   : > { %3040 = vmatmul.mubr.msk.bf16.gmra.mrb[4].mxu0 %vm342_vm0, %v3735_v39  ;;  %v3764_v61 = vsel %vm633_vm2, %v1068_v58, %v1069_v59  ;;  %v846_v2 = vsel %vm838_vm3, %v844_v0, %v845_v14  ;;  %v849_v51 = vsel %vm838_vm3, %v847_v8, %v848_v11  ;;  %v856_v12 = vrot.slane %v3707_v29, 2 }
  0x6c   : > { %3045 = vmatprep.mubr.msk.bf16.mxu0 %vm342_vm0, %v612_v37  ;;  %v1075_v13 = vpack.c.bf16 %v3764_v61, %v3728_v36  ;;  %v855_v24 = vsel %vm838_vm3, %v853_v23, %v854_v21  ;;  %v3794_v25 = vpack.c.bf16 %v849_v51, %v846_v2  ;;  %v857_v22 = vrot.slane %v3710_v30, 2  ;;  %v3355_v36 = vld [vmem:[%s4253_s5 + $0x28] sm:$0xff]   ;;  %v3358_v37 = vld [vmem:[%s4253_s5 + $0x40] sm:$0xff]  }
  0x6d   : > { %v859_v27 = vrot.slane %v3713_v31, 2  ;;  %v860_v1 = vrot.slane %v3716_v32, 2  ;;  %v968_v32 = vpack.c.bf16 %v3640_v50, %v3631_v45  ;;  %v969_v15 = vpack.c.bf16 %v3655_v57, %v3647_v53 }
  0x6e   : > { %v858_v33 = vsel %vm838_vm3, %v856_v12, %v857_v22  ;;  %v970_v34 = vpack.c.bf16 %v3707_v29, %v3689_v5  ;;  %v971_v45 = vpack.c.bf16 %v3749_v4, %v3713_v31  ;;  %v1072_v50 = vpack.c.bf16 %v3668_v63, %v3663_v60  ;;  %v3356_v5 = vld [vmem:[%s4253_s5 + $0x30] sm:$0xff]   ;;  %v3357_v29 = vld [vmem:[%s4253_s5 + $0x38] sm:$0xff]  }
  0x6f   : > { %v861_v42 = vsel %vm838_vm3, %v859_v27, %v860_v1  ;;  %v1073_v53 = vpack.c.bf16 %v3695_v3, %v3673_v7  ;;  %v1174_v60 = vpack.c.bf16 %v846_v2, %v843_v62  ;;  %v1176_v7 = vpack.c.bf16 %v858_v33, %v855_v24 }
  0x70   : > { %v873_v30 = vpack.c.bf16 %v861_v42, %v858_v33  ;;  %v1170_v3 = vrot.slane %v3749_v4, 2  ;;  %v1272_v38 = vpack.c.bf16 %v3448_v47, %v3749_v4  ;;  %v1358_v40 = vpack.c.bf16 %v3637_v48, %v3764_v61 }
  0x73   : > { %3046 = vmatmul.mubr.msk.bf16.vlgmr.msra.gmra.mrb[0].mxu0 %vm342_vm0, %v3742_v44 }
  0x74   : > { %3054 = vmatpush3.bf16.msra.mxu0 %v3352_v18  ;;  %3049 = vmatprep.mubr.msk.bf16.mxu0 %vm342_vm0, %v3746_v49  ;;  %v850_v18 = vrot.slane %v3655_v57, 2  ;;  %v1074_v57 = vpack.c.bf16 %v3725_v35, %v3700_v28  ;;  %v1171_v28 = vrot.slane %v3752_v52, 2 }
  0x75   : > { %3063 = vmatprep.subr.bf16.mxu0 %v3353_v20 }
  0x76   : > { %v852_v54 = vsel %vm838_vm3, %v850_v18, %v851_v19  ;;  %v1172_v31 = vsel %vm838_vm3, %v1170_v3, %v1171_v28 }
  0x77   : > { %v3797_v26 = vpack.c.bf16 %v855_v24, %v852_v54  ;;  %v1175_v63 = vpack.c.bf16 %v852_v54, %v849_v51  ;;  %v1177_v35 = vpack.c.bf16 %v1172_v31, %v861_v42 }
  0x7b   : > { %3050 = vmatmul.mubr.msk.bf16.gmra.mrb[4].mxu0 %vm342_vm0, %v3777_v6 }
  0x7c   : > { %3055 = vmatprep.mubr.msk.bf16.mxu0 %vm342_vm0, %v870_v17 }
  0x83   : > { %3056 = vmatmul.mubr.msk.bf16.vlgmr.msra.gmra.mrb[0].mxu0 %vm342_vm0, %v3794_v25 }
  0x84   : > { %3064 = vmatpush3.bf16.msra.mxu0 %v3353_v20  ;;  %3059 = vmatprep.mubr.msk.bf16.mxu0 %vm342_vm0, %v3797_v26 }
  0x85   : > { %3073 = vmatprep.subr.bf16.mxu0 %v3354_v10 }
  0x8b   : > { %3060 = vmatmul.mubr.msk.bf16.gmra.mrb[4].mxu0 %vm342_vm0, %v873_v30 }
  0x8c   : > { %3065 = vmatprep.mubr.msk.bf16.mxu0 %vm342_vm0, %v968_v32 }
  0x93   : > { %3066 = vmatmul.mubr.msk.bf16.vlgmr.msra.gmra.mrb[0].mxu0 %vm342_vm0, %v969_v15 }
  0x94   : > { %3074 = vmatpush3.bf16.msra.mxu0 %v3354_v10  ;;  %3069 = vmatprep.mubr.msk.bf16.mxu0 %vm342_vm0, %v970_v34 }
  0x95   : > { %3083 = vmatprep.subr.bf16.mxu0 %v3355_v36 }
  0x9b   : > { %3070 = vmatmul.mubr.msk.bf16.gmra.mrb[4].mxu0 %vm342_vm0, %v971_v45 }
  0x9c   : > { %3075 = vmatprep.mubr.msk.bf16.mxu0 %vm342_vm0, %v1072_v50 }
  0xa3   : > { %3076 = vmatmul.mubr.msk.bf16.vlgmr.msra.gmra.mrb[0].mxu0 %vm342_vm0, %v1073_v53 }
  0xa4   : > { %3084 = vmatpush3.bf16.msra.mxu0 %v3355_v36  ;;  %3079 = vmatprep.mubr.msk.bf16.mxu0 %vm342_vm0, %v1074_v57 }
  0xa5   : > { %3093 = vmatprep.subr.bf16.mxu0 %v3356_v5 }
  0xab   : > { %3080 = vmatmul.mubr.msk.bf16.gmra.mrb[4].mxu0 %vm342_vm0, %v1075_v13 }
  0xac   : > { %3085 = vmatprep.mubr.msk.bf16.mxu0 %vm342_vm0, %v1174_v60 }
  0xb3   : > { %3086 = vmatmul.mubr.msk.bf16.vlgmr.msra.gmra.mrb[0].mxu0 %vm342_vm0, %v1175_v63 }
  0xb4   : > { %3094 = vmatpush3.bf16.msra.mxu0 %v3356_v5  ;;  %3089 = vmatprep.mubr.msk.bf16.mxu0 %vm342_vm0, %v1176_v7 }
  0xb5   : > { %3103 = vmatprep.subr.bf16.mxu0 %v3357_v29 }
  0xbb   : > { %3090 = vmatmul.mubr.msk.bf16.gmra.mrb[4].mxu0 %vm342_vm0, %v1177_v35 }
  0xbc   : > { %3095 = vmatprep.mubr.msk.bf16.mxu0 %vm342_vm0, %v3742_v44 }
  0xc3   : > { %3096 = vmatmul.mubr.msk.bf16.vlgmr.msra.gmra.mrb[0].mxu0 %vm342_vm0, %v3746_v49 }
  0xc4   : > { %3104 = vmatpush3.bf16.msra.mxu0 %v3357_v29  ;;  %3099 = vmatprep.mubr.msk.bf16.mxu0 %vm342_vm0, %v3777_v6 }
  0xc5   : > { %3113 = vmatprep.subr.bf16.mxu0 %v3358_v37 }
  0xcb   : > { %3100 = vmatmul.mubr.msk.bf16.gmra.mrb[4].mxu0 %vm342_vm0, %v1272_v38 }
  0xcc   : > { %3105 = vmatprep.mubr.msk.bf16.mxu0 %vm342_vm0, %v3679_v16  ;;  %v1444_v16 = vpack.c.bf16 %v3769_v46, %v1172_v31 }
  0xd3   : > { %3106 = vmatmul.mubr.msk.bf16.vlgmr.msra.gmra.mrb[0].mxu0 %vm342_vm0, %v3704_v9  ;;  %v3359_v9 = vld [vmem:[%s4254_s6 + $0x8] sm:$0xff]  }
  0xd4   : > { %3114 = vmatpush3.bf16.msra.mxu0 %v3358_v37  ;;  %3109 = vmatprep.mubr.msk.bf16.mxu0 %vm342_vm0, %v3735_v39  ;;  %v3884_v39 = vld [vmem:[%s4254_s6] sm:$0xff]  }
  0xd5   : > { %3123 = vmatprep.subr.bf16.mxu1 %v3359_v9 }
  0xd6   : > { %3124 = vmatpush3.bf16.msra.mxu1 %v3359_v9 }
  0xd7   : > { %3133 = vmatprep.subr.bf16.mxu1 %v3884_v39 }
  0xdb   : > { %3110 = vmatmul.mubr.msk.bf16.gmra.mrb[4].mxu0 %vm342_vm0, %v1358_v40 }
  0xdc   : > { %3115 = vmatprep.mubr.msk.bf16.mxu0 %vm342_vm0, %v3794_v25 }
  0xe3   : > { %3116 = vmatmul.mubr.msk.bf16.vlgmr.msra.gmra.mrb[0].mxu0 %vm342_vm0, %v3797_v26 }
  0xe4   : > { %3119 = vmatprep.mubr.msk.bf16.mxu0 %vm342_vm0, %v873_v30 }
  0xeb   : > { %3120 = vmatmul.mubr.msk.bf16.gmra.mrb[4].mxu0 %vm342_vm0, %v1444_v16 }
 0x1b6   : > { %v3117_v43 = vpop.f32.mrb[0].mxu0 }
 0x1b7   : > { %v1539_v44 = vadd.f32 %v3117_v43, %v2876_v41  ;;  %v1491_v49 = vpop.f32.mrb[1].mxu0 }
 0x1b8   : > { %v1537_v4 = vadd.f32 %v2876_v41, %v1491_v49  ;;  %v3118_v52 = vpop.f32.mrb[2].mxu0 }
 0x1b9   : > { %v1559_v55 = vsel %vm342_vm0, %v1539_v44, 0.0  ;;  %v1540_v56 = vadd.f32 %v3118_v52, %v2876_v41  ;;  %v1494_v20 = vpop.f32.mrb[3].mxu0 }
 0x1ba   : > { %v1560_v58 = vrot.slane %v1559_v55, 4  ;;  %v1545_v59 = vsel %vm342_vm0, %v1537_v4, 0.0  ;;  %v1538_v61 = vadd.f32 %v2876_v41, %v1494_v20 }
 0x1bb   : > { %v1546_v13 = vrot.slane %v1545_v59, 4  ;;  %v1566_v62 = vsel %vm342_vm0, %v1540_v56, 0.0 }
 0x1bc   : > { %v1561_v0 = vadd.f32 %v1560_v58, %v1559_v55  ;;  %v1567_v6 = vrot.slane %v1566_v62, 4  ;;  %v1552_v14 = vsel %vm342_vm0, %v1538_v61, 0.0 }
 0x1bd   : > { %v1547_v8 = vadd.f32 %v1546_v13, %v1545_v59  ;;  %v1553_v11 = vrot.slane %v1552_v14, 4 }
 0x1be   : > { %v1562_v17 = vrot.slane %v1561_v0, 2  ;;  %v1568_v18 = vadd.f32 %v1567_v6, %v1566_v62  ;;  %v3121_v19 = vpop.f32.mrb[4].mxu0 }
 0x1bf   : > { %v1548_v23 = vrot.slane %v1547_v8, 2  ;;  %v1554_v21 = vadd.f32 %v1553_v11, %v1552_v14  ;;  %v3894_v2 = vadd.f32 %v3121_v19, %v2876_v41  ;;  %v1507_v51 = vpop.f32.mrb[5].mxu0 }
 0x1c0   : > { %v1563_v54 = vadd.f32 %v1562_v17, %v1561_v0  ;;  %v1569_v24 = vrot.slane %v1568_v18, 2  ;;  %v3896_v25 = vadd.f32 %v2876_v41, %v1507_v51  ;;  %v3122_v12 = vpop.f32.mrb[6].mxu0 }
 0x1c1   : > { %v1549_v26 = vadd.f32 %v1548_v23, %v1547_v8  ;;  %v1555_v22 = vrot.slane %v1554_v21, 2  ;;  %v1587_v27 = vsel %vm342_vm0, %v3894_v2, 0.0  ;;  %v3900_v1 = vadd.f32 %v3122_v12, %v2876_v41  ;;  %v1510_v10 = vpop.f32.mrb[7].mxu0 }
 0x1c2   : > { %v1564_v33 = vrot.slane %v1563_v54, 1  ;;  %v1570_v42 = vadd.f32 %v1569_v24, %v1568_v18  ;;  %v1588_v30 = vrot.slane %v1587_v27, 4  ;;  %v1573_v32 = vsel %vm342_vm0, %v3896_v25, 0.0 }
 0x1c3   : > { %v1550_v15 = vrot.slane %v1549_v26, 1  ;;  %v1556_v34 = vadd.f32 %v1555_v22, %v1554_v21  ;;  %v1574_v36 = vrot.slane %v1573_v32, 4  ;;  %v1594_v45 = vsel %vm342_vm0, %v3900_v1, 0.0 }
 0x1c4   : > { %v1565_v50 = vadd.f32 %v1564_v33, %v1563_v54  ;;  %v1571_v53 = vrot.slane %v1570_v42, 1  ;;  %v1589_v57 = vadd.f32 %v1588_v30, %v1587_v27  ;;  %v1595_v5 = vrot.slane %v1594_v45, 4 }
 0x1c5   : > { %v1551_v60 = vadd.f32 %v1550_v15, %v1549_v26  ;;  %v1557_v63 = vrot.slane %v1556_v34, 1  ;;  %v1575_v7 = vadd.f32 %v1574_v36, %v1573_v32  ;;  %v3906_v3 = vadd.f32 %v2876_v41, %v1510_v10 }
 0x1c6   : > { %v1603_v28 = vmul.f32 0.125, %v1565_v50  ;;  %v1572_v29 = vadd.f32 %v1571_v53, %v1570_v42  ;;  %v1590_v31 = vrot.slane %v1589_v57, 2  ;;  %v1596_v35 = vadd.f32 %v1595_v5, %v1594_v45 }
 0x1c7   : > { %v1601_v37 = vmul.f32 0.125, %v1551_v60  ;;  %v1558_v38 = vadd.f32 %v1557_v63, %v1556_v34  ;;  %v1576_v40 = vrot.slane %v1575_v7, 2  ;;  %v1580_v16 = vsel %vm342_vm0, %v3906_v3, 0.0 }
 0x1c8   : > { %v3910_v9 = vsub.f32 %v1539_v44, %v1603_v28  ;;  %v1604_v43 = vmul.f32 0.125, %v1572_v29  ;;  %v1591_v49 = vadd.f32 %v1590_v31, %v1589_v57  ;;  %v1597_v52 = vrot.slane %v1596_v35, 2 }
 0x1c9   : > { %v3912_v55 = vsub.f32 %v1537_v4, %v1601_v37  ;;  %v1602_v20 = vmul.f32 0.125, %v1558_v38  ;;  %v1577_v41 = vadd.f32 %v1576_v40, %v1575_v7  ;;  %v1581_v58 = vrot.slane %v1580_v16, 4 }
 0x1ca   : > { %v1619_v59 = vmul.f32 %v3910_v9, %v3910_v9  ;;  %v3916_v13 = vsub.f32 %v1540_v56, %v1604_v43  ;;  %v1592_v62 = vrot.slane %v1591_v49, 1  ;;  %v1598_v0 = vadd.f32 %v1597_v52, %v1596_v35 }
 0x1cb   : > { %v1617_v6 = vmul.f32 %v3912_v55, %v3912_v55  ;;  %v3920_v44 = vsub.f32 %v1538_v61, %v1602_v20  ;;  %v1578_v14 = vrot.slane %v1577_v41, 1  ;;  %v1582_v8 = vadd.f32 %v1581_v58, %v1580_v16 }
 0x1cc   : > { %v1639_v4 = vsel %vm342_vm0, %v1619_v59, 0.0  ;;  %v1620_v11 = vmul.f32 %v3916_v13, %v3916_v13  ;;  %v1593_v17 = vadd.f32 %v1592_v62, %v1591_v49  ;;  %v1599_v18 = vrot.slane %v1598_v0, 1 }
 0x1cd   : > { %v1640_v19 = vrot.slane %v1639_v4, 4  ;;  %v1625_v56 = vsel %vm342_vm0, %v1617_v6, 0.0  ;;  %v1618_v23 = vmul.f32 %v3920_v44, %v3920_v44  ;;  %v1579_v21 = vadd.f32 %v1578_v14, %v1577_v41 }
 0x1ce   : > { %v1626_v51 = vrot.slane %v1625_v56, 4  ;;  %v1646_v61 = vsel %vm342_vm0, %v1620_v11, 0.0  ;;  %v1607_v54 = vmul.f32 0.125, %v1593_v17  ;;  %v1600_v24 = vadd.f32 %v1599_v18, %v1598_v0 }
 0x1cf   : > { %v1641_v12 = vadd.f32 %v1640_v19, %v1639_v4  ;;  %v1647_v26 = vrot.slane %v1646_v61, 4  ;;  %v1632_v22 = vsel %vm342_vm0, %v1618_v23, 0.0  ;;  %v1605_v27 = vmul.f32 0.125, %v1579_v21 }
 0x1d0   : > { %v1627_v10 = vadd.f32 %v1626_v51, %v1625_v56  ;;  %v1633_v33 = vrot.slane %v1632_v22, 4  ;;  %v3931_v42 = vsub.f32 %v3894_v2, %v1607_v54  ;;  %v1608_v30 = vmul.f32 0.125, %v1600_v24 }
 0x1d1   : > { %v1642_v32 = vrot.slane %v1641_v12, 2  ;;  %v1648_v15 = vadd.f32 %v1647_v26, %v1646_v61  ;;  %v3934_v34 = vsub.f32 %v3896_v25, %v1605_v27  ;;  %v1583_v36 = vrot.slane %v1582_v8, 2 }
 0x1d2   : > { %v1628_v45 = vrot.slane %v1627_v10, 2  ;;  %v1634_v50 = vadd.f32 %v1633_v33, %v1632_v22  ;;  %v1623_v53 = vmul.f32 %v3931_v42, %v3931_v42  ;;  %v3939_v57 = vsub.f32 %v3900_v1, %v1608_v30 }
 0x1d3   : > { %v1643_v5 = vadd.f32 %v1642_v32, %v1641_v12  ;;  %v1649_v60 = vrot.slane %v1648_v15, 2  ;;  %v1621_v2 = vmul.f32 %v3934_v34, %v3934_v34  ;;  %v1584_v63 = vadd.f32 %v1583_v36, %v1582_v8 }
 0x1d4   : > { %v1629_v7 = vadd.f32 %v1628_v45, %v1627_v10  ;;  %v1635_v28 = vrot.slane %v1634_v50, 2  ;;  %v1667_v25 = vsel %vm342_vm0, %v1623_v53, 0.0  ;;  %v1624_v29 = vmul.f32 %v3939_v57, %v3939_v57 }
 0x1d5   : > { %v1644_v31 = vrot.slane %v1643_v5, 1  ;;  %v1650_v35 = vadd.f32 %v1649_v60, %v1648_v15  ;;  %v1668_v37 = vrot.slane %v1667_v25, 4  ;;  %v1653_v38 = vsel %vm342_vm0, %v1621_v2, 0.0 }
 0x1d6   : > { %v1630_v1 = vrot.slane %v1629_v7, 1  ;;  %v1636_v40 = vadd.f32 %v1635_v28, %v1634_v50  ;;  %v1654_v16 = vrot.slane %v1653_v38, 4  ;;  %v1674_v43 = vsel %vm342_vm0, %v1624_v29, 0.0 }
 0x1d7   : > { %v1645_v49 = vadd.f32 %v1644_v31, %v1643_v5  ;;  %v1651_v52 = vrot.slane %v1650_v35, 1  ;;  %v1669_v20 = vadd.f32 %v1668_v37, %v1667_v25  ;;  %v1675_v41 = vrot.slane %v1674_v43, 4  ;;  %v3957_v31 = vld [vmem:[%s4251_s3] sm:$0xff] }
 0x1d8   : > { %v1631_v58 = vadd.f32 %v1630_v1, %v1629_v7  ;;  %v1637_v59 = vrot.slane %v1636_v40, 1  ;;  %v1655_v62 = vadd.f32 %v1654_v16, %v1653_v38  ;;  %v1585_v0 = vrot.slane %v1584_v63, 1 }
 0x1d9   : > { %v1683_v6 = vmul.f32 0.125, %v1645_v49  ;;  %v1652_v14 = vadd.f32 %v1651_v52, %v1650_v35  ;;  %v1670_v8 = vrot.slane %v1669_v20, 2  ;;  %v1676_v4 = vadd.f32 %v1675_v41, %v1674_v43 }
 0x1da   : > { %v1681_v11 = vmul.f32 0.125, %v1631_v58  ;;  %v1638_v17 = vadd.f32 %v1637_v59, %v1636_v40  ;;  %v1656_v18 = vrot.slane %v1655_v62, 2  ;;  %v1586_v19 = vadd.f32 %v1585_v0, %v1584_v63  ;;  %v3963_v40 = vld [vmem:[%s4252_s4] sm:$0xff] }
 0x1db   : > { %v1691_v56 = vadd.f32 1e-05, %v1683_v6  ;;  %v1684_v23 = vmul.f32 0.125, %v1652_v14  ;;  %v1671_v21 = vadd.f32 %v1670_v8, %v1669_v20  ;;  %v1677_v51 = vrot.slane %v1676_v4, 2 }
 0x1dc   : > { %v1689_v61 = vadd.f32 1e-05, %v1681_v11  ;;  %v1682_v54 = vmul.f32 0.125, %v1638_v17  ;;  %v1657_v24 = vadd.f32 %v1656_v18, %v1655_v62  ;;  %v1606_v12 = vmul.f32 0.125, %v1586_v19 }
 0x1dd   : > { %3400 = vrsqrt.f32 %v1691_v56  ;;  %v1692_v26 = vadd.f32 1e-05, %v1684_v23  ;;  %v1672_v22 = vrot.slane %v1671_v21, 1  ;;  %v1678_v27 = vadd.f32 %v1677_v51, %v1676_v4 }
 0x1de   : > { %3402 = vrsqrt.f32 %v1689_v61  ;;  %v1690_v10 = vadd.f32 1e-05, %v1682_v54  ;;  %v1658_v33 = vrot.slane %v1657_v24, 1  ;;  %v3949_v30 = vsub.f32 %v3906_v3, %v1606_v12 }
 0x1df   : > { %3404 = vrsqrt.f32 %v1692_v26  ;;  %v1673_v32 = vadd.f32 %v1672_v22, %v1671_v21  ;;  %v1679_v15 = vrot.slane %v1678_v27, 1 }
 0x1e0   : > { %3406 = vrsqrt.f32 %v1690_v10  ;;  %v1659_v36 = vadd.f32 %v1658_v33, %v1657_v24  ;;  %v1622_v45 = vmul.f32 %v3949_v30, %v3949_v30 }
 0x1e1   : > { %v1687_v50 = vmul.f32 0.125, %v1673_v32  ;;  %v1680_v53 = vadd.f32 %v1679_v15, %v1678_v27 }
 0x1e2   : > { %v1685_v5 = vmul.f32 0.125, %v1659_v36  ;;  %v1660_v60 = vsel %vm342_vm0, %v1622_v45, 0.0 }
 0x1e3   : > { %v1695_v2 = vadd.f32 1e-05, %v1687_v50  ;;  %v1688_v63 = vmul.f32 0.125, %v1680_v53  ;;  %v1661_v7 = vrot.slane %v1660_v60, 4 }
 0x1e4   : > { %v1693_v28 = vadd.f32 1e-05, %v1685_v5 }
 0x1e5   : > { %3408 = vrsqrt.f32 %v1695_v2  ;;  %v1696_v3 = vadd.f32 1e-05, %v1688_v63  ;;  %v1662_v25 = vadd.f32 %v1661_v7, %v1660_v60 }
 0x1e6   : > { %3410 = vrsqrt.f32 %v1693_v28 }
 0x1e7   : > { %v3401_v29 = vpop.eup %3400  ;;  %3412 = vrsqrt.f32 %v1696_v3  ;;  %v1663_v35 = vrot.slane %v1662_v25, 2 }
 0x1e8   : > { %v3403_v37 = vpop.eup %3402  ;;  %v1707_v38 = vmul.f32 %v3401_v29, %v3910_v9 }
 0x1e9   : > { %v3405_v1 = vpop.eup %3404  ;;  %v1705_v16 = vmul.f32 %v3403_v37, %v3912_v55  ;;  %v1664_v43 = vadd.f32 %v1663_v35, %v1662_v25 }
 0x1ea   : > { %v3407_v49 = vpop.eup %3406  ;;  %v1716_v52 = vmul.f32 %v3957_v31, %v1707_v38  ;;  %v1708_v20 = vmul.f32 %v3405_v1, %v3916_v13 }
 0x1eb   : > { %v1714_v41 = vmul.f32 %v3957_v31, %v1705_v16  ;;  %v1706_v58 = vmul.f32 %v3407_v49, %v3920_v44  ;;  %v1665_v59 = vrot.slane %v1664_v43, 1 }
 0x1ec   : > { %v1725_v9 = vadd.f32 %v3963_v40, %v1716_v52  ;;  %v1717_v62 = vmul.f32 %v3957_v31, %v1708_v20 }
 0x1ed   : > { %v1723_v0 = vadd.f32 %v3963_v40, %v1714_v41  ;;  %v1715_v6 = vmul.f32 %v3957_v31, %v1706_v58  ;;  %v1666_v55 = vadd.f32 %v1665_v59, %v1664_v43 }
 0x1ee   : > { %v1741_v14 = vmul.f32 0.70710677, %v1725_v9  ;;  %v1726_v8 = vadd.f32 %v3963_v40, %v1717_v62  ;;  %v1733_v32 = vmul.f32 0.5, %v1725_v9 }
 0x1ef   : > { %v3409_v4 = vpop.eup %3408  ;;  %v1739_v11 = vmul.f32 0.70710677, %v1723_v0  ;;  %v1724_v13 = vadd.f32 %v3963_v40, %v1715_v6  ;;  %v1686_v17 = vmul.f32 0.125, %v1666_v55  ;;  %v1731_v45 = vmul.f32 0.5, %v1723_v0 }
 0x1f0   : > { %v3411_v18 = vpop.eup %3410  ;;  %3414 = verf.f32 %v1741_v14  ;;  %v1742_v44 = vmul.f32 0.70710677, %v1726_v8  ;;  %v1711_v19 = vmul.f32 %v3409_v4, %v3931_v42  ;;  %v1734_v60 = vmul.f32 0.5, %v1726_v8 }
 0x1f1   : > { %v3413_v56 = vpop.eup %3412  ;;  %3416 = verf.f32 %v1739_v11  ;;  %v1740_v23 = vmul.f32 0.70710677, %v1724_v13  ;;  %v1709_v21 = vmul.f32 %v3411_v18, %v3934_v34  ;;  %v1694_v54 = vadd.f32 1e-05, %v1686_v17 }
 0x1f2   : > { %3418 = verf.f32 %v1742_v44  ;;  %v1720_v51 = vmul.f32 %v3957_v31, %v1711_v19  ;;  %v1712_v61 = vmul.f32 %v3413_v56, %v3939_v57  ;;  %v1732_v7 = vmul.f32 0.5, %v1724_v13 }
 0x1f3   : > { %3420 = verf.f32 %v1740_v23  ;;  %v1718_v24 = vmul.f32 %v3957_v31, %v1709_v21 }
 0x1f4   : > { %v1729_v12 = vadd.f32 %v3963_v40, %v1720_v51  ;;  %v1721_v26 = vmul.f32 %v3957_v31, %v1712_v61  ;;  %3422 = vrsqrt.f32 %v1694_v54 }
 0x1f5   : > { %v1727_v42 = vadd.f32 %v3963_v40, %v1718_v24 }
 0x1f6   : > { %v1745_v22 = vmul.f32 0.70710677, %v1729_v12  ;;  %v1730_v27 = vadd.f32 %v3963_v40, %v1721_v26  ;;  %v1737_v37 = vmul.f32 0.5, %v1729_v12 }
 0x1f7   : > { %v1743_v34 = vmul.f32 0.70710677, %v1727_v42  ;;  %v1735_v43 = vmul.f32 0.5, %v1727_v42 }
 0x1f8   : > { %3424 = verf.f32 %v1745_v22  ;;  %v1746_v10 = vmul.f32 0.70710677, %v1730_v27  ;;  %v1738_v21 = vmul.f32 0.5, %v1730_v27 }
 0x1f9   : > { %3426 = verf.f32 %v1743_v34 }
 0x1fa   : > { %v3415_v33 = vpop.eup %3414  ;;  %3428 = verf.f32 %v1746_v10 }
 0x1fb   : > { %v3417_v57 = vpop.eup %3416  ;;  %v1757_v15 = vadd.f32 1.0, %v3415_v33 }
 0x1fc   : > { %v3419_v36 = vpop.eup %3418  ;;  %v1755_v50 = vadd.f32 1.0, %v3417_v57 }
 0x1fd   : > { %v3421_v53 = vpop.eup %3420  ;;  %v1765_v5 = vmul.f32 %v1757_v15, %v1733_v32  ;;  %v1758_v2 = vadd.f32 1.0, %v3419_v36 }
 0x1fe   : > { %v3423_v63 = vpop.eup %3422  ;;  %v1756_v28 = vadd.f32 1.0, %v3421_v53  ;;  %v1763_v3 = vmul.f32 %v1755_v50, %v1731_v45  ;;  %v4040_v45 = vld [vmem:[%s4254_s6 + $0x10] sm:$0xff]  }
 0x1ff   : > { %v1781_v25 = vrot.slane %v1765_v5, 7  ;;  %v1766_v29 = vmul.f32 %v1758_v2, %v1734_v60  ;;  %v1710_v35 = vmul.f32 %v3423_v63, %v3949_v30 }
 0x200   : > { %v1764_v38 = vmul.f32 %v1756_v28, %v1732_v7  ;;  %v1779_v1 = vrot.slane %v1763_v3, 7 }
 0x201   : > { %v1782_v16 = vrot.slane %v1766_v29, 7  ;;  %v1719_v49 = vmul.f32 %v3957_v31, %v1710_v35  ;;  %v3988_v52 = vsel %vm595_vm1, 0.0, %v1781_v25  ;;  %v1805_v30 = vsel %vm595_vm1, %v1781_v25, 0.0 }
 0x202   : > { %v3425_v20 = vpop.eup %3424  ;;  %v1780_v41 = vrot.slane %v1764_v38, 7  ;;  %v3991_v58 = vsel %vm595_vm1, 0.0, %v1779_v1  ;;  %v3994_v59 = vsel %vm595_vm1, %v1779_v1, 0.0  ;;  %v1837_v6 = vrot.slane %v3988_v52, 1 }
 0x203   : > { %v3427_v9 = vpop.eup %3426  ;;  %v3998_v62 = vsel %vm595_vm1, 0.0, %v1782_v16  ;;  %v1761_v0 = vadd.f32 1.0, %v3425_v20  ;;  %v1728_v31 = vadd.f32 %v3963_v40, %v1719_v49  ;;  %v1831_v11 = vrot.slane %v3991_v58, 1 }
 0x204   : > { %v3429_v55 = vpop.eup %3428  ;;  %v1759_v14 = vadd.f32 1.0, %v3427_v9  ;;  %v4003_v8 = vsel %vm595_vm1, 0.0, %v1780_v41  ;;  %v1804_v4 = vsel %vm595_vm1, %v1780_v41, 0.0  ;;  %v1806_v44 = vsel %vm595_vm1, %v1782_v16, 0.0 }
 0x205   : > { %v1769_v13 = vmul.f32 %v1761_v0, %v1737_v37  ;;  %v1762_v17 = vadd.f32 1.0, %v3429_v55  ;;  %v1744_v18 = vmul.f32 0.70710677, %v1728_v31  ;;  %v4010_v40 = vpack.c.bf16 %v3988_v52, %v4003_v8 }
 0x206   : > { %v1767_v19 = vmul.f32 %v1759_v14, %v1735_v43  ;;  %v1832_v56 = vrot.slane %v3994_v59, 1  ;;  %v1834_v23 = vrot.slane %v4003_v8, 1  ;;  %v1835_v51 = vrot.slane %v1804_v4, 1 }
 0x207   : > { %3430 = verf.f32 %v1744_v18  ;;  %v1838_v24 = vrot.slane %v1805_v30, 1  ;;  %v1840_v12 = vrot.slane %v3998_v62, 1  ;;  %v1785_v26 = vrot.slane %v1769_v13, 7 }
 0x208   : > { %v1783_v61 = vrot.slane %v1767_v19, 7  ;;  %v4015_v54 = vsel %vm633_vm2, %v1831_v11, %v1832_v56  ;;  %v4019_v42 = vsel %vm633_vm2, %v1834_v23, %v1835_v51  ;;  %v1841_v22 = vrot.slane %v1806_v44, 1 }
 0x209   : > { %v1770_v10 = vmul.f32 %v1762_v17, %v1738_v21  ;;  %v4025_v27 = vsel %vm633_vm2, %v1837_v6, %v1838_v24  ;;  %v1859_v33 = vpack.c.bf16 %v4015_v54, %v3637_v48  ;;  %v2035_v15 = vrot.slane %v4003_v8, 2 }
 0x20a   : > { %v4022_v34 = vsel %vm595_vm1, 0.0, %v1783_v61  ;;  %v4030_v57 = vsel %vm633_vm2, %v1840_v12, %v1841_v22  ;;  %v4034_v32 = vpack.c.bf16 %v4025_v27, %v4019_v42  ;;  %v2036_v36 = vrot.slane %v1804_v4, 2 }
 0x20b   : > { %3125 = vmatprep.mubr.msk.bf16.mxu1 %vm342_vm0, %v1859_v33  ;;  %v2038_v50 = vrot.slane %v3988_v52, 2  ;;  %v2039_v53 = vrot.slane %v1805_v30, 2  ;;  %v2262_v5 = vpack.c.bf16 %v4019_v42, %v4015_v54  ;;  %v2263_v60 = vpack.c.bf16 %v4030_v57, %v4025_v27  ;;  %v3366_v54 = vld [vmem:[%s4254_s6 + $0x38] sm:$0xff]   ;;  %v3367_v42 = vld [vmem:[%s4254_s6 + $0x40] sm:$0xff]  }
 0x20c   : > { %v4049_v2 = vsel %vm595_vm1, 0.0, %v1785_v26  ;;  %v4052_v63 = vsel %vm838_vm3, %v2035_v15, %v2036_v36  ;;  %3126 = vmatmul.mubr.msk.bf16.vlgmr.msra.gmra.mrb[0].mxu1 %vm342_vm0, %v4034_v32  ;;  %v1807_v7 = vsel %vm595_vm1, %v1783_v61, 0.0  ;;  %v1843_v28 = vrot.slane %v4022_v34, 1 }
 0x20d   : > { %v1786_v3 = vrot.slane %v1770_v10, 7  ;;  %v1736_v25 = vmul.f32 0.5, %v1728_v31  ;;  %v4059_v29 = vsel %vm838_vm3, %v2038_v50, %v2039_v53  ;;  %3134 = vmatpush3.bf16.msra.mxu1 %v3884_v39  ;;  %v1844_v35 = vrot.slane %v1807_v7, 1 }
 0x20e   : > { %v2033_v37 = vrot.slane %v3994_v59, 2  ;;  %v4065_v38 = vpack.c.bf16 %v4059_v29, %v4052_v63  ;;  %v1809_v1 = vsel %vm595_vm1, %v1785_v26, 0.0  ;;  %3143 = vmatprep.subr.bf16.mxu1 %v4040_v45  ;;  %v4071_v16 = vpack.c.bf16 %v4022_v34, %v3998_v62 }
 0x20f   : > { %v4074_v43 = vsel %vm633_vm2, %v1843_v28, %v1844_v35  ;;  %v1849_v39 = vrot.slane %v4049_v2, 1  ;;  %v2041_v49 = vrot.slane %v3998_v62, 2  ;;  %v2042_v20 = vrot.slane %v1806_v44, 2 }
 0x210   : > { %v4080_v59 = vpack.c.bf16 %v4074_v43, %v4030_v57  ;;  %v2032_v30 = vrot.slane %v3991_v58, 2  ;;  %v2044_v9 = vrot.slane %v4022_v34, 2  ;;  %v2045_v0 = vrot.slane %v1807_v7, 2 }
 0x211   : > { %v3431_v41 = vpop.eup %3430  ;;  %v1850_v6 = vrot.slane %v1809_v1, 1  ;;  %v4085_v55 = vsel %vm838_vm3, %v2041_v49, %v2042_v20  ;;  %v2050_v14 = vrot.slane %v4049_v2, 2  ;;  %v2051_v13 = vrot.slane %v1809_v1, 2 }
 0x212   : > { %v1760_v31 = vadd.f32 1.0, %v3431_v41  ;;  %3129 = vmatprep.mubr.msk.bf16.mxu1 %vm342_vm0, %v4080_v59  ;;  %v4091_v4 = vsel %vm838_vm3, %v2044_v9, %v2045_v0  ;;  %v2365_v11 = vpack.c.bf16 %v4085_v55, %v4059_v29  ;;  %v2158_v17 = vpack.c.bf16 %v4003_v8, %v3991_v58  ;;  %v3362_v41 = vld [vmem:[%s4254_s6 + $0x18] sm:$0xff]   ;;  %v3432_v29 = vld [vmem:[%s3524_s18 + $0x10] sm:$0xff]  ;;  %v3433_v9 = vld [vmem:[%s3524_s18] sm:$0xff] }
 0x213   : > { %v4099_v44 = vpack.c.bf16 %v4091_v4, %v4085_v55  ;;  %v2159_v19 = vpack.c.bf16 %v3998_v62, %v3988_v52  ;;  %v4104_v56 = vsel %vm595_vm1, 0.0, %v1786_v3  ;;  %v2034_v23 = vsel %vm838_vm3, %v2032_v30, %v2033_v37  ;;  %v3365_v30 = vld [vmem:[%s4254_s6 + $0x30] sm:$0xff]  }
 0x214   : > { %v1768_v18 = vmul.f32 %v1760_v31, %v1736_v25  ;;  %v2161_v21 = vpack.c.bf16 %v4104_v56, %v4049_v2  ;;  %v1810_v51 = vsel %vm595_vm1, %v1786_v3, 0.0  ;;  %v2258_v8 = vrot.slane %v4104_v56, 1 }
 0x215   : > { %v2259_v24 = vrot.slane %v1810_v51, 1  ;;  %v2364_v12 = vpack.c.bf16 %v4052_v63, %v2034_v23  ;;  %v2360_v26 = vrot.slane %v4104_v56, 2  ;;  %v1851_v52 = vsel %vm633_vm2, %v1849_v39, %v1850_v6  ;;  %v3434_v6 = vld [vmem:[%s3524_s18 + $0x18] sm:$0xff] }
 0x216   : > { %v1784_v61 = vrot.slane %v1768_v18, 7  ;;  %v2361_v62 = vrot.slane %v1810_v51, 2  ;;  %v2052_v33 = vsel %vm838_vm3, %v2050_v14, %v2051_v13  ;;  %v2462_v27 = vpack.c.bf16 %v3448_v47, %v4104_v56  ;;  %v3435_v14 = vld [vmem:[%s3524_s18 + $0x8] sm:$0xff]  ;;  %v3437_v51 = vld [vmem:[%s3524_s18 + $0x20] sm:$0xff] }
 0x217   : > { %v4118_v15 = vsel %vm633_vm2, %v2258_v8, %v2259_v24  ;;  %v3438_v24 = vld [vmem:[%s3524_s18 + $0x38] sm:$0xff] }
 0x218   : > { %v1800_v22 = vsel %vm595_vm1, 0.0, %v1784_v61  ;;  %v1808_v10 = vsel %vm595_vm1, %v1784_v61, 0.0  ;;  %v2265_v3 = vpack.c.bf16 %v4118_v15, %v1851_v52  ;;  %v4124_v25 = vsel %vm838_vm3, %v2360_v26, %v2361_v62  ;;  %v3439_v26 = vld [vmem:[%s3524_s18 + $0x28] sm:$0xff] }
 0x219   : > { %v1846_v36 = vrot.slane %v1800_v22, 1  ;;  %v1847_v50 = vrot.slane %v1808_v10, 1  ;;  %v1814_v53 = vpack.c.bf16 %v4049_v2, %v1800_v22  ;;  %v2047_v7 = vrot.slane %v1800_v22, 2 }
 0x21a   : > { %v2048_v63 = vrot.slane %v1808_v10, 2  ;;  %v2160_v28 = vpack.c.bf16 %v1800_v22, %v4022_v34  ;;  %v2367_v37 = vpack.c.bf16 %v4124_v25, %v2052_v33  ;;  %v1811_v2 = vpack.c.bf16 %v3991_v58, %v3448_v47 }
 0x21b   : > { %v1848_v35 = vsel %vm633_vm2, %v1846_v36, %v1847_v50  ;;  %v2060_v58 = vpack.c.bf16 %v2034_v23, %v3769_v46  ;;  %v2634_v47 = vpack.c.bf16 %v3769_v46, %v4124_v25 }
 0x21c   : > { %v1862_v1 = vpack.c.bf16 %v1851_v52, %v1848_v35  ;;  %v2049_v39 = vsel %vm838_vm3, %v2047_v7, %v2048_v63  ;;  %v2264_v49 = vpack.c.bf16 %v1848_v35, %v4074_v43  ;;  %v3363_v43 = vld [vmem:[%s4254_s6 + $0x20] sm:$0xff]  }
 0x21d   : > { %v2063_v20 = vpack.c.bf16 %v2052_v33, %v2049_v39  ;;  %v2366_v34 = vpack.c.bf16 %v2049_v39, %v4091_v4 }
 0x21e   : > { %3130 = vmatmul.mubr.msk.bf16.gmra.mrb[4].mxu1 %vm342_vm0, %v1862_v1 }
 0x21f   : > { %3135 = vmatprep.mubr.msk.bf16.mxu1 %vm342_vm0, %v1811_v2 }
 0x226   : > { %3136 = vmatmul.mubr.msk.bf16.vlgmr.msra.gmra.mrb[0].mxu1 %vm342_vm0, %v4010_v40 }
 0x227   : > { %3144 = vmatpush3.bf16.msra.mxu1 %v4040_v45  ;;  %3139 = vmatprep.mubr.msk.bf16.mxu1 %vm342_vm0, %v4071_v16  ;;  %v3364_v45 = vld [vmem:[%s4254_s6 + $0x28] sm:$0xff]  }
 0x228   : > { %3153 = vmatprep.subr.bf16.mxu1 %v3362_v41 }
 0x22e   : > { %3140 = vmatmul.mubr.msk.bf16.gmra.mrb[4].mxu1 %vm342_vm0, %v1814_v53 }
 0x22f   : > { %3145 = vmatprep.mubr.msk.bf16.mxu1 %vm342_vm0, %v2060_v58 }
 0x236   : > { %3146 = vmatmul.mubr.msk.bf16.vlgmr.msra.gmra.mrb[0].mxu1 %vm342_vm0, %v4065_v38 }
 0x237   : > { %3154 = vmatpush3.bf16.msra.mxu1 %v3362_v41  ;;  %3149 = vmatprep.mubr.msk.bf16.mxu1 %vm342_vm0, %v4099_v44 }
 0x238   : > { %3163 = vmatprep.subr.bf16.mxu1 %v3363_v43 }
 0x23e   : > { %3150 = vmatmul.mubr.msk.bf16.gmra.mrb[4].mxu1 %vm342_vm0, %v2063_v20 }
 0x23f   : > { %3155 = vmatprep.mubr.msk.bf16.mxu1 %vm342_vm0, %v2158_v17 }
 0x246   : > { %3156 = vmatmul.mubr.msk.bf16.vlgmr.msra.gmra.mrb[0].mxu1 %vm342_vm0, %v2159_v19  ;;  %v3436_v19 = vld [vmem:[%s3524_s18 + $0x30] sm:$0xff] }
 0x247   : > { %3164 = vmatpush3.bf16.msra.mxu1 %v3363_v43  ;;  %3159 = vmatprep.mubr.msk.bf16.mxu1 %vm342_vm0, %v2160_v28 }
 0x248   : > { %3173 = vmatprep.subr.bf16.mxu1 %v3364_v45 }
 0x24e   : > { %3160 = vmatmul.mubr.msk.bf16.gmra.mrb[4].mxu1 %vm342_vm0, %v2161_v21 }
 0x24f   : > { %3165 = vmatprep.mubr.msk.bf16.mxu1 %vm342_vm0, %v2262_v5 }
 0x256   : > { %3166 = vmatmul.mubr.msk.bf16.vlgmr.msra.gmra.mrb[0].mxu1 %vm342_vm0, %v2263_v60 }
 0x257   : > { %3174 = vmatpush3.bf16.msra.mxu1 %v3364_v45  ;;  %3169 = vmatprep.mubr.msk.bf16.mxu1 %vm342_vm0, %v2264_v49 }
 0x258   : > { %3183 = vmatprep.subr.bf16.mxu1 %v3365_v30 }
 0x25e   : > { %3170 = vmatmul.mubr.msk.bf16.gmra.mrb[4].mxu1 %vm342_vm0, %v2265_v3 }
 0x25f   : > { %3175 = vmatprep.mubr.msk.bf16.mxu1 %vm342_vm0, %v2364_v12 }
 0x266   : > { %3176 = vmatmul.mubr.msk.bf16.vlgmr.msra.gmra.mrb[0].mxu1 %vm342_vm0, %v2365_v11 }
 0x267   : > { %3184 = vmatpush3.bf16.msra.mxu1 %v3365_v30  ;;  %3179 = vmatprep.mubr.msk.bf16.mxu1 %vm342_vm0, %v2366_v34 }
 0x268   : > { %3193 = vmatprep.subr.bf16.mxu1 %v3366_v54 }
 0x26e   : > { %3180 = vmatmul.mubr.msk.bf16.gmra.mrb[4].mxu1 %vm342_vm0, %v2367_v37 }
 0x26f   : > { %3185 = vmatprep.mubr.msk.bf16.mxu1 %vm342_vm0, %v4010_v40  ;;  %v2548_v40 = vpack.c.bf16 %v3637_v48, %v4118_v15  ;;  %v2938_v48 = vld [vmem:[%s4256_s8] ss:$0 sm:$0xff] }
 0x276   : > { %3186 = vmatmul.mubr.msk.bf16.vlgmr.msra.gmra.mrb[0].mxu1 %vm342_vm0, %v4071_v16 }
 0x277   : > { %3194 = vmatpush3.bf16.msra.mxu1 %v3366_v54  ;;  %3189 = vmatprep.mubr.msk.bf16.mxu1 %vm342_vm0, %v1814_v53 }
 0x278   : > { %3203 = vmatprep.subr.bf16.mxu1 %v3367_v42 }
 0x27e   : > { %3190 = vmatmul.mubr.msk.bf16.gmra.mrb[4].mxu1 %vm342_vm0, %v2462_v27 }
 0x27f   : > { %3195 = vmatprep.mubr.msk.bf16.mxu1 %vm342_vm0, %v4034_v32 }
 0x286   : > { %3196 = vmatmul.mubr.msk.bf16.vlgmr.msra.gmra.mrb[0].mxu1 %vm342_vm0, %v4080_v59 }
 0x287   : > { %3204 = vmatpush3.bf16.msra.mxu1 %v3367_v42  ;;  %3199 = vmatprep.mubr.msk.bf16.mxu1 %vm342_vm0, %v1862_v1 }
 0x28e   : > { %3200 = vmatmul.mubr.msk.bf16.gmra.mrb[4].mxu1 %vm342_vm0, %v2548_v40 }
 0x28f   : > { %3205 = vmatprep.mubr.msk.bf16.mxu1 %vm342_vm0, %v4065_v38 }
 0x296   : > { %3206 = vmatmul.mubr.msk.bf16.vlgmr.msra.gmra.mrb[0].mxu1 %vm342_vm0, %v4099_v44 }
 0x297   : > { %3209 = vmatprep.mubr.msk.bf16.mxu1 %vm342_vm0, %v2063_v20 }
 0x29e   : > { %3210 = vmatmul.mubr.msk.bf16.gmra.mrb[4].mxu1 %vm342_vm0, %v2634_v47 }
 0x369   : > { %v3207_v57 = vpop.f32.mrb[0].mxu1 }
 0x36a   : > { %v2729_v32 = vadd.f32 %v3207_v57, %v2938_v48  ;;  %v2681_v5 = vpop.f32.mrb[1].mxu1 }
 0x36b   : > { %v2727_v46 = vadd.f32 %v2938_v48, %v2681_v5  ;;  %v3208_v60 = vpop.f32.mrb[2].mxu1 }
 0x36c   : > { %v2737_v38 = vadd.f32 %v3432_v29, %v2729_v32  ;;  %v2730_v16 = vadd.f32 %v3208_v60, %v2938_v48  ;;  %v2684_v59 = vpop.f32.mrb[3].mxu1 }
 0x36d   : > { %v2735_v0 = vadd.f32 %v3433_v9, %v2727_v46  ;;  %v2728_v31 = vadd.f32 %v2938_v48, %v2684_v59 }
 0x36e   : > { %2745 = vst.msk [vmem:[%s4219_s12 + $0x10] sm:$0xff] %vm342_vm0, %v2737_v38  ;;  %v2738_v55 = vadd.f32 %v3434_v6, %v2730_v16 }
 0x36f   : > { %2743 = vst.msk [vmem:[%s4219_s12] sm:$0xff] %vm342_vm0, %v2735_v0  ;;  %v2736_v4 = vadd.f32 %v3435_v14, %v2728_v31 }
 0x370   : > { %2746 = vst.msk [vmem:[%s4219_s12 + $0x18] sm:$0xff] %vm342_vm0, %v2738_v55 }
 0x371   : > { %2744 = vst.msk [vmem:[%s4219_s12 + $0x8] sm:$0xff] %vm342_vm0, %v2736_v4  ;;  %v3211_v11 = vpop.f32.mrb[4].mxu1 }
 0x372   : > { %v2733_v13 = vadd.f32 %v3211_v11, %v2938_v48  ;;  %v2697_v17 = vpop.f32.mrb[5].mxu1 }
 0x373   : > { %v2731_v18 = vadd.f32 %v2938_v48, %v2697_v17  ;;  %v3212_v44 = vpop.f32.mrb[6].mxu1 }
 0x374   : > { %v2741_v56 = vadd.f32 %v3436_v19, %v2733_v13  ;;  %v2734_v23 = vadd.f32 %v3212_v44, %v2938_v48  ;;  %v2700_v21 = vpop.f32.mrb[7].mxu1 }
 0x375   : > { %v2739_v8 = vadd.f32 %v3437_v51, %v2731_v18  ;;  %v2732_v61 = vadd.f32 %v2938_v48, %v2700_v21 }
 0x376   : > { %2749 = vst.msk [vmem:[%s4219_s12 + $0x30] sm:$0xff] %vm342_vm0, %v2741_v56  ;;  %v2742_v12 = vadd.f32 %v3438_v24, %v2734_v23 }
 0x377   : > { %2747 = vst.msk [vmem:[%s4219_s12 + $0x20] sm:$0xff] %vm342_vm0, %v2739_v8  ;;  %v2740_v52 = vadd.f32 %v3439_v26, %v2732_v61 }
 0x378   : > { %2750 = vst.msk [vmem:[%s4219_s12 + $0x38] sm:$0xff] %vm342_vm0, %v2742_v12 }
 0x379   : > { %2748 = vst.msk [vmem:[%s4219_s12 + $0x28] sm:$0xff] %vm342_vm0, %v2740_v52 }
 0x37a PF: > { %s19_s30 = sadd.s32 1, %s3446_s30  }
 0x37b   : > { %p16_p4 = scmp.ge.s32.totalorder %s19_s30, 4  }
 0x37d   :  { %18 = sbr.rel (!%p16_p4) target bundleno = 1 (0x1), region = 102 }

// kernel: speech_recognition_forward.19
= control target key start
LH: loop header
LB: loop body
LE: loop exit
PB: predicated region body
PF: predicated region fallthrough
CT: control target
= control target key end

     0   :  { %vm37_vm0 = vcmask 523264   ;;  %v228_v14 = vmov 0.0   ;;  %vm229_vm1 = vmmov 0   ;;  %vm32_vm2 = vcmask 785408   ;;  %s304_s0 = inlined_call_operand.vmem [shape: f32[16,64], index: 0, kind: input, shape index: {}]   ;;  %s305_s1 = inlined_call_operand.vmem [shape: bf16[64,96], index: 1, kind: input, shape index: {}]   ;;  %s306_s2 = inlined_call_operand.vmem [shape: f32[1,96], index: 2, kind: input, shape index: {}]   ;;  %s307_s3 = inlined_call_operand.vmem [shape: f32[1,64], index: 3, kind: input, shape index: {}]   ;;  %s308_s4 = inlined_call_operand.vmem [shape: f32[1,64], index: 4, kind: input, shape index: {}]   ;;  %s309_s5 = inlined_call_operand.vmem [shape: f32[16,96], index: 5, kind: output, shape index: {}]  }
   0x1   :  { %v35_v0 = vld [vmem:[%s304_s0] sm:$0xff]  ;;  %v36_v1 = vld [vmem:[%s304_s0 + $0x8] sm:$0xff]  ;;  %202 = vmatprep.subr.bf16.mxu0 %v228_v14  ;;  %210 = vmatprep.mubr.msk.bf16.mxu0 %vm229_vm1, %v228_v14  ;;  %v218_v17 = vld [vmem:[%s305_s1 + $0x10] sm:$0xff]  }
   0x2   :  { %v38_v2 = vsel %vm37_vm0, %v35_v0, 0.0  ;;  %v41_v3 = vsel %vm37_vm0, %v36_v1, 0.0  ;;  %v216_v15 = vld [vmem:[%s305_s1] sm:$0xff]   ;;  %v217_v16 = vld [vmem:[%s305_s1 + $0x8] sm:$0xff]   ;;  %v219_v18 = vld [vmem:[%s305_s1 + $0x18] sm:$0xff]  }
   0x3   :  { %39 = vadd.xlane.f32.xlu0 %v38_v2  ;;  %203 = vmatpush3.bf16.msra.mxu0 %v216_v15  ;;  %v189_v19 = vld [vmem:[%s306_s2] ss:$0 sm:$0xff] }
   0x4   :  { %204 = vmatprep.subr.bf16.mxu0 %v228_v14  ;;  %33 = vst.msk [vmem:[#allocation2] sm:$0xff] %vm32_vm2, %v189_v19  ;;  %34 = vst.msk [vmem:[#allocation2 + $0x8] sm:$0xff] %vm32_vm2, %v189_v19  ;;  %v190_v27 = vld [vmem:[%s307_s3] ss:$0 sm:$0xff] }
   0x5   :  { %v191_v29 = vld [vmem:[%s308_s4] ss:$0 sm:$0xff] }
   0x7   :  { %42 = vadd.xlane.f32.xlu0 %v41_v3  ;;  %205 = vmatpush3.bf16.msra.mxu0 %v217_v16 }
   0x8   :  { %206 = vmatprep.subr.bf16.mxu0 %v228_v14 }
   0xb   :  { %207 = vmatpush3.bf16.msra.mxu0 %v218_v17  ;;  %v94_v47 = vld [vmem:[#allocation2] sm:$0xff]  ;;  %v95_v49 = vld [vmem:[#allocation2 + $0x8] sm:$0xff] }
   0xc   :  { %208 = vmatprep.subr.bf16.mxu0 %v228_v14 }
   0xf   :  { %209 = vmatpush3.bf16.msra.mxu0 %v219_v18 }
  0x90   :  { %v40_v4 = vpop.xlane.xlu0 %39 }
  0x91   :  { %v45_v5 = vmul.f32 0.015625, %v40_v4 }
  0x93   :  { %v47_v6 = vsub.f32 %v35_v0, %v45_v5 }
  0x94   :  { %v43_v7 = vpop.xlane.xlu0 %42 }
  0x95   :  { %v46_v8 = vmul.f32 0.015625, %v43_v7  ;;  %v49_v9 = vmul.f32 %v47_v6, %v47_v6 }
  0x97   :  { %v48_v10 = vsub.f32 %v36_v1, %v46_v8  ;;  %v51_v11 = vsel %vm37_vm0, %v49_v9, 0.0 }
  0x98   :  { %52 = vadd.xlane.f32.xlu1 %v51_v11 }
  0x99   :  { %v50_v12 = vmul.f32 %v48_v10, %v48_v10 }
  0x9b   :  { %v54_v13 = vsel %vm37_vm0, %v50_v12, 0.0 }
  0x9c   :  { %55 = vadd.xlane.f32.xlu1 %v54_v13 }
 0x125   :  { %v53_v20 = vpop.xlane.xlu1 %52 }
 0x126   :  { %v57_v21 = vmul.f32 0.015625, %v53_v20 }
 0x128   :  { %v59_v22 = vadd.f32 1e-05, %v57_v21 }
 0x129   :  { %v56_v23 = vpop.xlane.xlu1 %55 }
 0x12a   :  { %220 = vrsqrt.f32 %v59_v22  ;;  %v58_v24 = vmul.f32 0.015625, %v56_v23 }
 0x12c   :  { %v60_v25 = vadd.f32 1e-05, %v58_v24 }
 0x12e   :  { %222 = vrsqrt.f32 %v60_v25 }
 0x134   :  { %v221_v26 = vpop.eup %220 }
 0x135   :  { %v63_v28 = vmul.f32 %v221_v26, %v47_v6 }
 0x137   :  { %v72_v30 = vmul.f32 %v190_v27, %v63_v28 }
 0x138   :  { %v223_v31 = vpop.eup %222 }
 0x139   :  { %v64_v32 = vmul.f32 %v223_v31, %v48_v10  ;;  %v81_v33 = vadd.f32 %v191_v29, %v72_v30 }
 0x13b   :  { %v73_v34 = vmul.f32 %v190_v27, %v64_v32  ;;  %v86_v35 = vmul.f32 0.70710677, %v81_v33  ;;  %v83_v41 = vmul.f32 0.5, %v81_v33 }
 0x13d   :  { %v82_v36 = vadd.f32 %v191_v29, %v73_v34  ;;  %224 = verf.f32 %v86_v35 }
 0x13f   :  { %v87_v37 = vmul.f32 0.70710677, %v82_v36  ;;  %v84_v42 = vmul.f32 0.5, %v82_v36 }
 0x141   :  { %226 = verf.f32 %v87_v37 }
 0x147   :  { %v225_v38 = vpop.eup %224 }
 0x148   :  { %v90_v39 = vadd.f32 1.0, %v225_v38 }
 0x14a   :  { %v92_v44 = vmul.f32 %v90_v39, %v83_v41 }
 0x14b   :  { %v227_v40 = vpop.eup %226 }
 0x14c   :  { %v91_v43 = vadd.f32 1.0, %v227_v40 }
 0x14e   :  { %v93_v45 = vmul.f32 %v91_v43, %v84_v42 }
 0x150   :  { %v96_v46 = vpack.c.bf16 %v93_v45, %v92_v44 }
 0x152   :  { %211 = vmatmul.mubr.msk.bf16.vlgmr.msra.gmra.mrb[0].mxu0 %vm37_vm0, %v96_v46 }
 0x225   :  { %v166_v48 = vpop.f32.mrb[0].mxu0 }
 0x226   :  { %v173_v50 = vadd.f32 %v166_v48, %v94_v47  ;;  %v212_v51 = vpop.f32.mrb[1].mxu0 }
 0x227   :  { %v169_v52 = vpop.f32.mrb[2].mxu0 }
 0x228   :  { %176 = vst.msk [vmem:[#allocation2] sm:$0xff] %vm32_vm2, %v173_v50  ;;  %v174_v53 = vadd.f32 %v169_v52, %v95_v49  ;;  %v213_v54 = vpop.f32.mrb[3].mxu0 }
 0x22a   :  { %177 = vst.msk [vmem:[#allocation2 + $0x8] sm:$0xff] %vm32_vm2, %v174_v53 }
 0x22f   :  { %v181_v55 = vld [vmem:[#allocation2] sm:$0xff] }
 0x230   :  { %183 = vst.msk [vmem:[%s309_s5] sm:$0xff] %vm32_vm2, %v181_v55 }
 0x231   :  { %v182_v56 = vld [vmem:[#allocation2 + $0x8] sm:$0xff] }
 0x232   :  { %184 = vst.msk [vmem:[%s309_s5 + $0x8] sm:$0xff] %vm32_vm2, %v182_v56 }

// kernel: speech_recognition_forward.21
= control target key start
LH: loop header
LB: loop body
LE: loop exit
PB: predicated region body
PF: predicated region fallthrough
CT: control target
= control target key end

     0   :  { %vm65_vm0 = vcmask 261120   ;;  %v692_v0 = vmov 0.0|0.0   ;;  %v693_v4 = vmov 0.0   ;;  %vm694_vm1 = vmmov 0   ;;  %s695_s19 = smov 64   ;;  %s696_s22 = smov 32   ;;  %s832_s2 = inlined_call_operand.vmem [shape: f32[32,96], index: 2, kind: input, shape index: {}]   ;;  %s833_s3 = inlined_call_operand.vmem [shape: f32[32,96], index: 3, kind: input, shape index: {}]   ;;  %s834_s4 = inlined_call_operand.vmem [shape: f32[1,96], index: 4, kind: input, shape index: {}]   ;;  %s835_s5 = inlined_call_operand.vmem [shape: f32[1,96], index: 5, kind: input, shape index: {}]   ;;  %s836_s0 = inlined_call_operand.vmem [shape: f32[2,8,96], index: 0, kind: input, shape index: {}]   ;;  %s837_s1 = inlined_call_operand.vmem [shape: f32[2,8,96], index: 1, kind: input, shape index: {}]   ;;  %s838_s6 = inlined_call_operand.vmem [shape: f32[2,8,32], index: 6, kind: output, shape index: {0}]   ;;  %s839_s7 = inlined_call_operand.vmem [shape: f32[2,8,32], index: 7, kind: output, shape index: {1}]  }
   0x1   :  { %638 = vmatprep.subr.bf16.mxu0 %v692_v0  ;;  %v68_v1 = vld [vmem:[%s832_s2] sm:$0xff]  ;;  %v69_v2 = vld [vmem:[%s832_s2 + $0x8] sm:$0xff]  ;;  %644 = vmatprep.subr.bf16.mxu1 %v692_v0  ;;  %66 = vst.msk [vmem:[#allocation2] sm:$0xff] %vm65_vm0, %v693_v4  ;;  %67 = vst.msk [vmem:[#allocation2 + $0x8] sm:$0xff] %vm65_vm0, %v693_v4  ;;  %s697_s23 = smov 96  }
   0x2   :  { %v72_v3 = vld [vmem:[%s833_s3] sm:$0xff]  ;;  %v639_v5 = vpack.c.bf16 %v69_v2, %v68_v1  ;;  %v73_v6 = vld [vmem:[%s833_s3 + $0x8] sm:$0xff]  ;;  %v70_v7 = vld [vmem:[%s832_s2 + $0x10] sm:$0xff]  ;;  %602 = vmatprep.mubr.msk.f32.mxu0 %vm694_vm1, %v693_v4  ;;  %613 = vmatprep.mubr.msk.f32.mxu1 %vm694_vm1, %v693_v4 }
   0x3   :  { %v71_v8 = vld [vmem:[%s832_s2 + $0x18] sm:$0xff]  ;;  %v645_v9 = vpack.c.bf16 %v73_v6, %v72_v3  ;;  %v74_v10 = vld [vmem:[%s833_s3 + $0x10] sm:$0xff]  ;;  %v773_v16 = vld [vmem:[%s834_s4] ss:$0 sm:$0xff] }
   0x4   :  { %v75_v11 = vld [vmem:[%s833_s3 + $0x18] sm:$0xff]  ;;  %640 = vmatpush3.bf16.msra.mxu0 %v639_v5  ;;  %v642_v12 = vpack.c.bf16 %v71_v8, %v70_v7  ;;  %v778_v18 = vld [vmem:[%s835_s5] ss:$0 sm:$0xff]  ;;  %v563_v26 = vld [vmem:[%s837_s1 + $0x8] sm:$0xff] }
   0x5   :  { %641 = vmatprep.subr.bf16.mxu0 %v692_v0  ;;  %646 = vmatpush3.bf16.msra.mxu1 %v645_v9  ;;  %v648_v13 = vpack.c.bf16 %v75_v11, %v74_v10  ;;  %v81_v24 = vld [vmem:[%s836_s0] sm:$0xff]  ;;  %v568_v2 = vld [vmem:[%s836_s0 + $0x8] sm:$0xff] }
   0x6   :  { %647 = vmatprep.subr.bf16.mxu1 %v692_v0 }
   0x8   :  { %643 = vmatpush3.bf16.msra.mxu0 %v642_v12  ;;  %v78_v14 = vld [vmem:[#allocation2] sm:$0xff]  ;;  %v80_v15 = vld [vmem:[#allocation2 + $0x8] sm:$0xff] }
   0x9   :  { %649 = vmatpush3.bf16.msra.mxu1 %v648_v13  ;;  %650 = vmatprep.subr.bf16.mxu0 %v692_v0 }
   0xa   :  { %656 = vmatprep.subr.bf16.mxu1 %v692_v0 }
   0xb   :  { %603 = vmatmul.mubr.msk.f32.vlgmr.msra.gmra.mrb[0].mxu0 %vm65_vm0, %v78_v14 }
   0xc   :  { %614 = vmatmul.mubr.msk.f32.vlgmr.msra.gmra.mrb[0].mxu1 %vm65_vm0, %v80_v15  ;;  %652 = vmatpush3.bf16.msra.mxu0 %v639_v5 }
   0xd   :  { %653 = vmatprep.subr.bf16.mxu0 %v692_v0  ;;  %658 = vmatpush3.bf16.msra.mxu1 %v645_v9 }
   0xe   :  { %624 = vmatprep.mubr.msk.f32.mxu0 %vm694_vm1, %v693_v4  ;;  %659 = vmatprep.subr.bf16.mxu1 %v692_v0 }
   0xf   :  { %635 = vmatprep.mubr.msk.f32.mxu1 %vm694_vm1, %v693_v4  ;;  %v418_v4 = vld [vmem:[%s837_s1] sm:$0xff] }
  0x10   :  { %655 = vmatpush3.bf16.msra.mxu0 %v642_v12 }
  0x11   :  { %661 = vmatpush3.bf16.msra.mxu1 %v648_v13 }
  0xde   :  { %v158_v17 = vpop.f32.mrb[0].mxu0 }
  0xdf   :  { %v159_v19 = vadd.f32 %v773_v16, %v158_v17  ;;  %v604_v20 = vpop.f32.mrb[1].mxu0  ;;  %v273_v21 = vpop.f32.mrb[0].mxu1 }
  0xe0   :  { %v615_v22 = vpop.f32.mrb[1].mxu1  ;;  %v274_v23 = vadd.f32 %v778_v18, %v273_v21 }
  0xe1   :  { %170 = vrot.lane.b32.xlu0 %v159_v19, %s695_s19  ;;  %v162_v25 = vadd.f32 %v159_v19, %v81_v24 }
  0xe2   :  { %v277_v28 = vadd.f32 %v563_v26, %v274_v23 }
  0xe3   :  { %v562_v27 = vmul.f32 -1.442695, %v162_v25 }
  0xe4   :  { %v566_v29 = vmul.f32 -1.442695, %v277_v28 }
  0xe5   :  { %285 = vrot.lane.b32.xlu0 %v274_v23, %s695_s19  ;;  %668 = vpow2.f32 %v562_v27 }
  0xe6   :  { %670 = vpow2.f32 %v566_v29 }
  0xef   :  { %v669_v30 = vpop.eup %668 }
  0xf0   :  { %v166_v31 = vadd.f32 1.0, %v669_v30  ;;  %v671_v32 = vpop.eup %670 }
  0xf1   :  { %v281_v33 = vadd.f32 1.0, %v671_v32 }
  0xf2   :  { %672 = vrcp.f32 %v166_v31 }
  0xf3   :  { %674 = vrcp.f32 %v281_v33 }
  0xfc   :  { %v673_v34 = vpop.eup %672 }
  0xfd   :  { %v675_v37 = vpop.eup %674  ;;  %v180_v47 = vsub.f32 1.0, %v673_v34 }
  0xfe   :  { %v295_v53 = vsub.f32 1.0, %v675_v37 }
 0x153   :  { %v171_v35 = vpop.permute.xlu0 %170 }
 0x154   :  { %v173_v36 = vmul.f32 %v673_v34, %v171_v35 }
 0x156   :  { %175 = vrot.lane.b32.xlu1 %v173_v36, %s695_s19 }
 0x157   :  { %v286_v38 = vpop.permute.xlu0 %285 }
 0x158   :  { %v288_v39 = vmul.f32 %v675_v37, %v286_v38 }
 0x15a   :  { %290 = vrot.lane.b32.xlu1 %v288_v39, %s695_s19 }
 0x15e   :  { %186 = vrot.lane.b32.xlu1 %v78_v14, %s696_s22 }
 0x162   :  { %301 = vrot.lane.b32.xlu1 %v80_v15, %s696_s22 }
 0x1c8   :  { %v176_v40 = vpop.permute.xlu1 %175 }
 0x1c9   :  { %v178_v41 = vadd.f32 %v176_v40, %v81_v24 }
 0x1cb   :  { %676 = vtanh.f32 %v178_v41 }
 0x1cc   :  { %v291_v42 = vpop.permute.xlu1 %290 }
 0x1cd   :  { %v293_v43 = vadd.f32 %v563_v26, %v291_v42 }
 0x1cf   :  { %678 = vtanh.f32 %v293_v43 }
 0x1d0   :  { %v187_v46 = vpop.permute.xlu1 %186 }
 0x1d1   :  { %v189_v49 = vmul.f32 %v673_v34, %v187_v46 }
 0x1d4   :  { %v302_v51 = vpop.permute.xlu1 %301 }
 0x1d5   :  { %v677_v44 = vpop.eup %676  ;;  %v304_v55 = vmul.f32 %v675_v37, %v302_v51 }
 0x1d6   :  { %182 = vrot.lane.b32.xlu0 %v677_v44, %s697_s23 }
 0x1d9   :  { %v679_v45 = vpop.eup %678 }
 0x1da   :  { %297 = vrot.lane.b32.xlu0 %v679_v45, %s697_s23 }
 0x248   :  { %v183_v48 = vpop.permute.xlu0 %182 }
 0x249   :  { %v185_v50 = vmul.f32 %v183_v48, %v180_v47 }
 0x24b   :  { %v190_v52 = vadd.f32 %v189_v49, %v185_v50 }
 0x24c   :  { %v298_v54 = vpop.permute.xlu0 %297 }
 0x24d   :  { %v300_v56 = vmul.f32 %v298_v54, %v295_v53  ;;  %192 = vrot.lane.b32.xlu0 %v190_v52, %s697_s23 }
 0x24f   :  { %v305_v57 = vadd.f32 %v304_v55, %v300_v56 }
 0x251   :  { %307 = vrot.lane.b32.xlu1 %v305_v57, %s697_s23 }
 0x2bf   :  { %v193_v58 = vpop.permute.xlu0 %192 }
 0x2c0   :  { %195 = vst.msk [vmem:[%s838_s6] sm:$0xff] %vm65_vm0, %v193_v58  ;;  %625 = vmatmul.mubr.msk.f32.vlgmr.msra.gmra.mrb[2].mxu0 %vm65_vm0, %v193_v58 }
 0x2c3   :  { %v308_v59 = vpop.permute.xlu1 %307 }
 0x2c4   :  { %567 = vst.msk [vmem:[%s839_s7 + $0x8] sm:$0xff] %vm65_vm0, %v308_v59  ;;  %636 = vmatmul.mubr.msk.f32.vlgmr.msra.gmra.mrb[2].mxu1 %vm65_vm0, %v308_v59 }
 0x393   :  { %v382_v60 = vpop.f32.mrb[2].mxu0 }
 0x394   :  { %v383_v61 = vadd.f32 %v773_v16, %v382_v60  ;;  %v626_v62 = vpop.f32.mrb[3].mxu0 }
 0x396   :  { %394 = vrot.lane.b32.xlu0 %v383_v61, %s695_s19  ;;  %v386_v3 = vadd.f32 %v568_v2, %v383_v61 }
 0x397   :  { %v487_v63 = vpop.f32.mrb[2].mxu1 }
 0x398   :  { %v488_v0 = vadd.f32 %v778_v18, %v487_v63  ;;  %v637_v1 = vpop.f32.mrb[3].mxu1  ;;  %v570_v5 = vmul.f32 -1.442695, %v386_v3 }
 0x39a   :  { %499 = vrot.lane.b32.xlu1 %v488_v0, %s695_s19  ;;  %v491_v6 = vadd.f32 %v488_v0, %v418_v4  ;;  %680 = vpow2.f32 %v570_v5 }
 0x39c   :  { %v573_v7 = vmul.f32 -1.442695, %v491_v6 }
 0x39e   :  { %682 = vpow2.f32 %v573_v7 }
 0x3a4   :  { %v681_v8 = vpop.eup %680 }
 0x3a5   :  { %v390_v9 = vadd.f32 1.0, %v681_v8 }
 0x3a7   :  { %684 = vrcp.f32 %v390_v9 }
 0x3a8   :  { %v683_v10 = vpop.eup %682 }
 0x3a9   :  { %v495_v11 = vadd.f32 1.0, %v683_v10 }
 0x3ab   :  { %686 = vrcp.f32 %v495_v11 }
 0x3b1   :  { %v685_v12 = vpop.eup %684 }
 0x3b2   :  { %v404_v24 = vsub.f32 1.0, %v685_v12  ;;  %v410_v26 = vmul.f32 %v685_v12, %v190_v52 }
 0x3b5   :  { %v687_v15 = vpop.eup %686 }
 0x3b6   :  { %v509_v29 = vsub.f32 1.0, %v687_v15  ;;  %v515_v31 = vmul.f32 %v687_v15, %v305_v57 }
 0x408   :  { %v395_v13 = vpop.permute.xlu0 %394 }
 0x409   :  { %v397_v14 = vmul.f32 %v685_v12, %v395_v13 }
 0x40b   :  { %399 = vrot.lane.b32.xlu0 %v397_v14, %s695_s19 }
 0x40c   :  { %v500_v16 = vpop.permute.xlu1 %499 }
 0x40d   :  { %v502_v17 = vmul.f32 %v687_v15, %v500_v16 }
 0x40f   :  { %504 = vrot.lane.b32.xlu1 %v502_v17, %s695_s19 }
 0x47d   :  { %v400_v18 = vpop.permute.xlu0 %399 }
 0x47e   :  { %v402_v19 = vadd.f32 %v568_v2, %v400_v18 }
 0x480   :  { %688 = vtanh.f32 %v402_v19 }
 0x481   :  { %v505_v20 = vpop.permute.xlu1 %504 }
 0x482   :  { %v507_v21 = vadd.f32 %v505_v20, %v418_v4 }
 0x484   :  { %690 = vtanh.f32 %v507_v21 }
 0x48a   :  { %v689_v22 = vpop.eup %688 }
 0x48b   :  { %406 = vrot.lane.b32.xlu0 %v689_v22, %s697_s23 }
 0x48e   :  { %v691_v23 = vpop.eup %690 }
 0x48f   :  { %511 = vrot.lane.b32.xlu1 %v691_v23, %s697_s23 }
 0x4fd   :  { %v407_v25 = vpop.permute.xlu0 %406 }
 0x4fe   :  { %v409_v27 = vmul.f32 %v407_v25, %v404_v24 }
 0x500   :  { %v411_v28 = vadd.f32 %v410_v26, %v409_v27 }
 0x501   :  { %v512_v30 = vpop.permute.xlu1 %511 }
 0x502   :  { %v514_v32 = vmul.f32 %v512_v30, %v509_v29  ;;  %413 = vrot.lane.b32.xlu0 %v411_v28, %s697_s23 }
 0x504   :  { %v516_v33 = vadd.f32 %v515_v31, %v514_v32 }
 0x506   :  { %518 = vrot.lane.b32.xlu1 %v516_v33, %s697_s23 }
 0x574   :  { %v414_v34 = vpop.permute.xlu0 %413 }
 0x575   :  { %571 = vst.msk [vmem:[%s838_s6 + $0x8] sm:$0xff] %vm65_vm0, %v414_v34  ;;  %522 = vst.msk [vmem:[#allocation2] sm:$0xff] %vm65_vm0, %v414_v34 }
 0x578   :  { %v519_v35 = vpop.permute.xlu1 %518 }
 0x579   :  { %521 = vst.msk [vmem:[%s839_s7] sm:$0xff] %vm65_vm0, %v519_v35  ;;  %523 = vst.msk [vmem:[#allocation2 + $0x8] sm:$0xff] %vm65_vm0, %v519_v35 }

// kernel: speech_recognition_forward.22
= control target key start
LH: loop header
LB: loop body
LE: loop exit
PB: predicated region body
PF: predicated region fallthrough
CT: control target
= control target key end

     0   :  { %v184_v0 = vmov 0.0   ;;  %vm185_vm0 = vmmov 0   ;;  %vm26_vm1 = vcmask 261120   ;;  %vm66_vm2 = vcmask 523264   ;;  %s237_s1 = inlined_call_operand.vmem [shape: bf16[64,32], index: 1, kind: input, shape index: {}]   ;;  %s238_s2 = inlined_call_operand.vmem [shape: f32[1,32], index: 2, kind: input, shape index: {}]   ;;  %s239_s0 = inlined_call_operand.vmem [shape: f32[16,64], index: 0, kind: input, shape index: {}]   ;;  %s240_s3 = inlined_call_operand.vmem [shape: bf16[16,32], index: 3, kind: output, shape index: {}]  }
   0x1   :  { %162 = vmatprep.subr.bf16.mxu0 %v184_v0  ;;  %v176_v1 = vld [vmem:[%s237_s1] sm:$0xff]   ;;  %170 = vmatprep.mubr.msk.bf16.mxu0 %vm185_vm0, %v184_v0  ;;  %v177_v2 = vld [vmem:[%s237_s1 + $0x8] sm:$0xff]   ;;  %v178_v4 = vld [vmem:[%s237_s1 + $0x10] sm:$0xff]   ;;  %vm140_vm3 = vcmask 257024  }
   0x2   :  { %163 = vmatpush3.bf16.msra.mxu0 %v176_v1  ;;  %v147_v3 = vld [vmem:[%s238_s2] ss:$0 sm:$0xff]  ;;  %v179_v5 = vld [vmem:[%s237_s1 + $0x18] sm:$0xff]   ;;  %v30_v7 = vld [vmem:[%s239_s0 + $0x8] sm:$0xff] }
   0x3   :  { %164 = vmatprep.subr.bf16.mxu0 %v184_v0  ;;  %27 = vst.msk [vmem:[#allocation2] sm:$0xff] %vm26_vm1, %v147_v3  ;;  %28 = vst.msk [vmem:[#allocation2 + $0x8] sm:$0xff] %vm26_vm1, %v147_v3  ;;  %v29_v6 = vld [vmem:[%s239_s0] sm:$0xff] }
   0x4   :  { %v33_v8 = vpack.c.bf16 %v30_v7, %v29_v6 }
   0x6   :  { %165 = vmatpush3.bf16.msra.mxu0 %v177_v2 }
   0x7   :  { %166 = vmatprep.subr.bf16.mxu0 %v184_v0 }
   0xa   :  { %167 = vmatpush3.bf16.msra.mxu0 %v178_v4  ;;  %v31_v9 = vld [vmem:[#allocation2] sm:$0xff]  ;;  %v32_v11 = vld [vmem:[#allocation2 + $0x8] sm:$0xff] }
   0xb   :  { %168 = vmatprep.subr.bf16.mxu0 %v184_v0 }
   0xe   :  { %169 = vmatpush3.bf16.msra.mxu0 %v179_v5 }
  0x11   :  { %171 = vmatmul.mubr.msk.bf16.vlgmr.msra.gmra.mrb[0].mxu0 %vm66_vm2, %v33_v8 }
  0xe4   :  { %v104_v10 = vpop.f32.mrb[0].mxu0 }
  0xe5   :  { %v111_v12 = vadd.f32 %v104_v10, %v31_v9  ;;  %v172_v13 = vpop.f32.mrb[1].mxu0 }
  0xe6   :  { %v107_v14 = vpop.f32.mrb[2].mxu0 }
  0xe7   :  { %114 = vst.msk [vmem:[#allocation2] sm:$0xff] %vm26_vm1, %v111_v12  ;;  %v112_v15 = vadd.f32 %v107_v14, %v32_v11  ;;  %v173_v16 = vpop.f32.mrb[3].mxu0 }
  0xe9   :  { %115 = vst.msk [vmem:[#allocation2 + $0x8] sm:$0xff] %vm26_vm1, %v112_v15 }
  0xee   :  { %v119_v17 = vld [vmem:[#allocation2] sm:$0xff] }
  0xef   :  { %v124_v18 = vmul.f32 0.70710677, %v119_v17  ;;  %v121_v22 = vmul.f32 0.5, %v119_v17 }
  0xf0   :  { %v120_v19 = vld [vmem:[#allocation2 + $0x8] sm:$0xff] }
  0xf1   :  { %180 = verf.f32 %v124_v18  ;;  %v125_v20 = vmul.f32 0.70710677, %v120_v19  ;;  %v122_v26 = vmul.f32 0.5, %v120_v19 }
  0xf3   :  { %182 = verf.f32 %v125_v20 }
  0xfb   :  { %v181_v21 = vpop.eup %180 }
  0xfc   :  { %v128_v23 = vadd.f32 1.0, %v181_v21 }
  0xfd   :  { %v183_v24 = vpop.eup %182 }
  0xfe   :  { %v130_v25 = vmul.f32 %v128_v23, %v121_v22  ;;  %v129_v27 = vadd.f32 1.0, %v183_v24 }
 0x100   :  { %v155_v28 = vpack.c.bf16 %v130_v25, %v130_v25  ;;  %v131_v29 = vmul.f32 %v129_v27, %v122_v26 }
 0x102   :  { %141 = vst.msk [vmem:[%s240_s3] sm:$0xf] %vm140_vm3, %v155_v28  ;;  %v156_v30 = vpack.c.bf16 %v131_v29, %v131_v29 }
 0x104   :  { %142 = vst.msk [vmem:[%s240_s3 + $0x4] sm:$0xf] %vm140_vm3, %v156_v30 }

// kernel: speech_recognition_forward.23
= control target key start
LH: loop header
LB: loop body
LE: loop exit
PB: predicated region body
PF: predicated region fallthrough
CT: control target
= control target key end

     0   :  { %v176_v1 = vmov 0.0   ;;  %vm177_vm0 = vmmov 0   ;;  %vm27_vm1 = vcmask 80896   ;;  %s231_s0 = inlined_call_operand.vmem [shape: bf16[16,32], index: 0, kind: input, shape index: {}]   ;;  %s232_s1 = inlined_call_operand.vmem [shape: bf16[32,10], index: 1, kind: input, shape index: {}]   ;;  %s233_s2 = inlined_call_operand.vmem [shape: f32[1,10], index: 2, kind: input, shape index: {}]   ;;  %s234_s3 = inlined_call_operand.hbm [shape: f32[16,10], index: 3, kind: output, shape index: {}]  }
   0x1   :  { %v149_v0 = vld [vmem:[%s232_s1] sm:$0xff]   ;;  %136 = vmatprep.subr.bf16.mxu0 %v176_v1  ;;  %v150_v2 = vld [vmem:[%s232_s1 + $0x8] sm:$0xff]   ;;  %140 = vmatprep.mubr.msk.bf16.mxu0 %vm177_vm0, %v176_v1 }
   0x2   :  { %137 = vmatpush3.bf16.msra.mxu0 %v149_v0  ;;  %v128_v3 = vld [vmem:[%s233_s2] ss:$0 sm:$0xff] }
   0x3   :  { %138 = vmatprep.subr.bf16.mxu0 %v176_v1 }
   0x4   :  { %8 = vsyncpa [#allocation4], 0  ;;  %28 = vst.msk [vmem:[#allocation2] sm:$0xff] %vm27_vm1, %v128_v3  ;;  %v151_v4 = vld [vmem:[%s231_s0] sm:$0xff]   ;;  %vm55_vm2 = vcmask 261120   ;;  %s178_s1 = smov [#allocation3]  }
   0x5   :  { %29 = vst.msk [vmem:[#allocation2 + $0x8] sm:$0xff] %vm27_vm1, %v128_v3  ;;  %s117_s2 = sshll.u32 %s178_s1, 4  ;;  %s118_s2 = int_to_ptr.vmem [resolvable:$true] %s117_s2 }
   0x6   :  { %139 = vmatpush3.bf16.msra.mxu0 %v150_v2  ;;  %s152_s0 = scalar_lea.vmem %s118_s2, 256  ;;  %p157_p1 = scmp.lt.s32.totalorder %s118_s2, %s118_s2 }
   0x7   :  { %p153_p0 = scmp.ne.s32.totalorder %s118_s2, %s152_s0  ;;  %p158_p2 = scmp.lt.s32.totalorder %s152_s0, %s152_s0 }
   0x9   :  { %141 = vmatmul.mubr.msk.bf16.vlgmr.msra.gmra.mrb[0].mxu0 %vm55_vm2, %v151_v4  ;;  %p159_p3 = por %p158_p2, %p157_p1 }
   0xb   :  { %v32_v5 = vld [vmem:[#allocation2] sm:$0xff]  ;;  %p160_p4 = pnand %p159_p3, %p153_p0 }
   0xc   :  { %v33_v7 = vld [vmem:[#allocation2 + $0x8] sm:$0xff] }
  0xdc   :  { %v93_v6 = vpop.f32.mrb[0].mxu0 }
  0xdd   :  { %v100_v8 = vadd.f32 %v93_v6, %v32_v5  ;;  %v142_v9 = vpop.f32.mrb[1].mxu0 }
  0xde   :  { %v96_v10 = vpop.f32.mrb[2].mxu0 }
  0xdf   :  { %103 = vst.msk [vmem:[#allocation2] sm:$0xff] %vm27_vm1, %v100_v8  ;;  %v101_v11 = vadd.f32 %v96_v10, %v33_v7  ;;  %v143_v12 = vpop.f32.mrb[3].mxu0 }
  0xe1   :  { %104 = vst.msk [vmem:[#allocation2 + $0x8] sm:$0xff] %vm27_vm1, %v101_v11 }
  0xe6   :  { %v108_v13 = vld [vmem:[#allocation2] sm:$0xff] }
  0xe7   :  { %110 = vst.msk [vmem:[#allocation3] sm:$0xff] %vm27_vm1, %v108_v13 }
  0xe8   :  { %v109_v14 = vld [vmem:[#allocation2 + $0x8] sm:$0xff] }
  0xe9   :  { %111 = vst.msk [vmem:[#allocation3 + $0x8] sm:$0xff] %vm27_vm1, %v109_v14 }
  0xea   :  { %163 = shalt.err (!%p160_p4)
}
  0xeb   :  { %s164_s22 = scalar_lea.hbm %s234_s3, 256 }
  0xec   :  { %p165_p5 = scmp.ne.s32.totalorder %s234_s3, %s164_s22  ;;  %p168_p6 = scmp.lt.u32.totalorder %s164_s22, %s234_s3 }
  0xee   :  { %p170_p7 = pnand %p168_p6, %p165_p5 }
  0xf0   :  { %173 = shalt.err (!%p170_p7)
}
  0xf1   :  { %s179_s27 = smov 128   ;;  %s180_s28 = smov 8  }
  0xf2   :  { %123 = dma.vmem_to_hbm [thread:$0]  %s118_s2, 256, %s234_s3, [#allocation4], %s179_s27, %s179_s27, %s180_s28  }
  0xf3   :  { %174 = dma.done.wait [#allocation4], 256  }
  0xf4   :  { %175 = vsyncadd [#allocation4], 4294967040 }
  0xf5   :  { %127 = vsyncpa [#allocation4], 1 }

// kernel: speech_recognition_forward.18
= control target key start
LH: loop header
LB: loop body
LE: loop exit
PB: predicated region body
PF: predicated region fallthrough
CT: control target
= control target key end

     0   :  { %vm65_vm0 = vcmask 254976   ;;  %v2349_v0 = vmov 0.0|0.0   ;;  %v2350_v4 = vmov 0.0   ;;  %vm2351_vm1 = vmmov 0   ;;  %s2352_s19 = smov 64   ;;  %s2353_s22 = smov 32   ;;  %s2795_s2 = inlined_call_operand.vmem [shape: f32[32,96], index: 2, kind: input, shape index: {}]   ;;  %s2796_s3 = inlined_call_operand.vmem [shape: f32[32,96], index: 3, kind: input, shape index: {}]   ;;  %s2797_s4 = inlined_call_operand.vmem [shape: f32[1,96], index: 4, kind: input, shape index: {}]   ;;  %s2798_s5 = inlined_call_operand.vmem [shape: f32[1,96], index: 5, kind: input, shape index: {}]   ;;  %s2799_s0 = inlined_call_operand.vmem [shape: f32[8,2,96], index: 0, kind: input, shape index: {}]   ;;  %s2800_s1 = inlined_call_operand.vmem [shape: f32[8,2,96], index: 1, kind: input, shape index: {}]   ;;  %s2801_s6 = inlined_call_operand.vmem [shape: f32[8,2,32], index: 6, kind: output, shape index: {0}]   ;;  %s2802_s7 = inlined_call_operand.vmem [shape: f32[8,2,32], index: 7, kind: output, shape index: {1}]  }
   0x1   :  { %2151 = vmatprep.subr.bf16.mxu0 %v2349_v0  ;;  %v68_v1 = vld [vmem:[%s2795_s2] sm:$0xff]  ;;  %v69_v2 = vld [vmem:[%s2795_s2 + $0x8] sm:$0xff]  ;;  %2157 = vmatprep.subr.bf16.mxu1 %v2349_v0  ;;  %66 = vst.msk [vmem:[#allocation2] sm:$0x3] %vm65_vm0, %v2350_v4  ;;  %67 = vst.msk [vmem:[#allocation2 + $0x2] sm:$0x3] %vm65_vm0, %v2350_v4 }
   0x2   :  { %v72_v3 = vld [vmem:[%s2796_s3] sm:$0xff]  ;;  %v2410_v5 = vpack.c.bf16 %v69_v2, %v68_v1  ;;  %v73_v6 = vld [vmem:[%s2796_s3 + $0x8] sm:$0xff]  ;;  %v70_v7 = vld [vmem:[%s2795_s2 + $0x10] sm:$0xff]  ;;  %1983 = vmatprep.mubr.msk.f32.mxu0 %vm2351_vm1, %v2350_v4  ;;  %1994 = vmatprep.mubr.msk.f32.mxu1 %vm2351_vm1, %v2350_v4  ;;  %vm88_vm2 = vcmask 261120   ;;  %s2354_s23 = smov 96  }
   0x3   :  { %v71_v8 = vld [vmem:[%s2795_s2 + $0x18] sm:$0xff]  ;;  %v2425_v9 = vpack.c.bf16 %v73_v6, %v72_v3  ;;  %v74_v10 = vld [vmem:[%s2796_s3 + $0x10] sm:$0xff]  ;;  %v2462_v16 = vld [vmem:[%s2797_s4] ss:$0 sm:$0xff] }
   0x4   :  { %v75_v11 = vld [vmem:[%s2796_s3 + $0x18] sm:$0xff]  ;;  %2153 = vmatpush3.bf16.msra.mxu0 %v2410_v5  ;;  %v2434_v12 = vpack.c.bf16 %v71_v8, %v70_v7  ;;  %v2467_v18 = vld [vmem:[%s2798_s5] ss:$0 sm:$0xff]  ;;  %v1836_v26 = vld [vmem:[%s2800_s1 + $0xe] sm:$0x3] }
   0x5   :  { %2154 = vmatprep.subr.bf16.mxu0 %v2349_v0  ;;  %2159 = vmatpush3.bf16.msra.mxu1 %v2425_v9  ;;  %v2438_v13 = vpack.c.bf16 %v75_v11, %v74_v10  ;;  %v81_v24 = vld [vmem:[%s2799_s0] sm:$0x3]  ;;  %v1841_v3 = vld [vmem:[%s2799_s0 + $0x2] sm:$0x3]  ;;  %v1845_v7 = vld [vmem:[%s2800_s1 + $0xc] sm:$0x3] }
   0x6   :  { %2160 = vmatprep.subr.bf16.mxu1 %v2349_v0 }
   0x8   :  { %2156 = vmatpush3.bf16.msra.mxu0 %v2434_v12  ;;  %v78_v14 = vld [vmem:[#allocation2] sm:$0x3]  ;;  %v80_v15 = vld [vmem:[#allocation2 + $0x2] sm:$0x3] }
   0x9   :  { %2162 = vmatpush3.bf16.msra.mxu1 %v2438_v13  ;;  %2163 = vmatprep.subr.bf16.mxu0 %v2349_v0 }
   0xa   :  { %2169 = vmatprep.subr.bf16.mxu1 %v2349_v0 }
   0xb   :  { %1984 = vmatmul.mubr.msk.f32.vlgmr.msra.gmra.mrb[0].mxu0 %vm88_vm2, %v78_v14 }
   0xc   :  { %1995 = vmatmul.mubr.msk.f32.vlgmr.msra.gmra.mrb[0].mxu1 %vm88_vm2, %v80_v15  ;;  %2165 = vmatpush3.bf16.msra.mxu0 %v2410_v5 }
   0xd   :  { %2166 = vmatprep.subr.bf16.mxu0 %v2349_v0  ;;  %2171 = vmatpush3.bf16.msra.mxu1 %v2425_v9 }
   0xe   :  { %2005 = vmatprep.mubr.msk.f32.mxu0 %vm2351_vm1, %v2350_v4  ;;  %2172 = vmatprep.subr.bf16.mxu1 %v2349_v0 }
   0xf   :  { %2016 = vmatprep.mubr.msk.f32.mxu1 %vm2351_vm1, %v2350_v4 }
  0x10   :  { %2168 = vmatpush3.bf16.msra.mxu0 %v2434_v12 }
  0x11   :  { %2174 = vmatpush3.bf16.msra.mxu1 %v2438_v13  ;;  %2175 = vmatprep.subr.bf16.mxu0 %v2349_v0 }
  0x12   :  { %2181 = vmatprep.subr.bf16.mxu1 %v2349_v0 }
  0xde   :  { %v158_v17 = vpop.f32.mrb[0].mxu0 }
  0xdf   :  { %v159_v19 = vadd.f32 %v2462_v16, %v158_v17  ;;  %v1985_v20 = vpop.f32.mrb[1].mxu0  ;;  %v274_v21 = vpop.f32.mrb[0].mxu1 }
  0xe0   :  { %v1996_v22 = vpop.f32.mrb[1].mxu1  ;;  %v275_v23 = vadd.f32 %v2467_v18, %v274_v21 }
  0xe1   :  { %170 = vrot.lane.b32.xlu0 %v159_v19, %s2352_s19  ;;  %v162_v25 = vadd.f32 %v159_v19, %v81_v24 }
  0xe2   :  { %v278_v28 = vadd.f32 %v1836_v26, %v275_v23 }
  0xe3   :  { %v1835_v27 = vmul.f32 -1.442695, %v162_v25 }
  0xe4   :  { %v1839_v29 = vmul.f32 -1.442695, %v278_v28 }
  0xe5   :  { %286 = vrot.lane.b32.xlu0 %v275_v23, %s2352_s19  ;;  %2253 = vpow2.f32 %v1835_v27 }
  0xe6   :  { %2255 = vpow2.f32 %v1839_v29 }
  0xef   :  { %v2254_v30 = vpop.eup %2253 }
  0xf0   :  { %v166_v31 = vadd.f32 1.0, %v2254_v30  ;;  %v2256_v32 = vpop.eup %2255 }
  0xf1   :  { %v282_v33 = vadd.f32 1.0, %v2256_v32 }
  0xf2   :  { %2257 = vrcp.f32 %v166_v31 }
  0xf3   :  { %2259 = vrcp.f32 %v282_v33 }
  0xfc   :  { %v2258_v34 = vpop.eup %2257 }
  0xfd   :  { %v2260_v37 = vpop.eup %2259  ;;  %v180_v47 = vsub.f32 1.0, %v2258_v34 }
  0xfe   :  { %v296_v53 = vsub.f32 1.0, %v2260_v37 }
 0x153   :  { %v171_v35 = vpop.permute.xlu0 %170 }
 0x154   :  { %v173_v36 = vmul.f32 %v2258_v34, %v171_v35 }
 0x156   :  { %175 = vrot.lane.b32.xlu1 %v173_v36, %s2352_s19 }
 0x157   :  { %v287_v38 = vpop.permute.xlu0 %286 }
 0x158   :  { %v289_v39 = vmul.f32 %v2260_v37, %v287_v38 }
 0x15a   :  { %291 = vrot.lane.b32.xlu1 %v289_v39, %s2352_s19 }
 0x15e   :  { %186 = vrot.lane.b32.xlu1 %v78_v14, %s2353_s22 }
 0x162   :  { %302 = vrot.lane.b32.xlu1 %v80_v15, %s2353_s22 }
 0x1c8   :  { %v176_v40 = vpop.permute.xlu1 %175 }
 0x1c9   :  { %v178_v41 = vadd.f32 %v176_v40, %v81_v24 }
 0x1cb   :  { %2261 = vtanh.f32 %v178_v41 }
 0x1cc   :  { %v292_v42 = vpop.permute.xlu1 %291 }
 0x1cd   :  { %v294_v43 = vadd.f32 %v1836_v26, %v292_v42 }
 0x1cf   :  { %2263 = vtanh.f32 %v294_v43 }
 0x1d0   :  { %v187_v46 = vpop.permute.xlu1 %186 }
 0x1d1   :  { %v189_v49 = vmul.f32 %v2258_v34, %v187_v46 }
 0x1d4   :  { %v303_v51 = vpop.permute.xlu1 %302 }
 0x1d5   :  { %v2262_v44 = vpop.eup %2261  ;;  %v305_v55 = vmul.f32 %v2260_v37, %v303_v51 }
 0x1d6   :  { %182 = vrot.lane.b32.xlu0 %v2262_v44, %s2354_s23 }
 0x1d9   :  { %v2264_v45 = vpop.eup %2263 }
 0x1da   :  { %298 = vrot.lane.b32.xlu0 %v2264_v45, %s2354_s23 }
 0x248   :  { %v183_v48 = vpop.permute.xlu0 %182 }
 0x249   :  { %v185_v50 = vmul.f32 %v183_v48, %v180_v47 }
 0x24b   :  { %v2483_v52 = vadd.f32 %v189_v49, %v185_v50  ;;  %v1849_v50 = vld [vmem:[%s2799_s0 + $0x4] sm:$0x3] }
 0x24c   :  { %v299_v54 = vpop.permute.xlu0 %298 }
 0x24d   :  { %v301_v56 = vmul.f32 %v299_v54, %v296_v53  ;;  %192 = vrot.lane.b32.xlu0 %v2483_v52, %s2354_s23 }
 0x24f   :  { %v2487_v57 = vadd.f32 %v305_v55, %v301_v56 }
 0x251   :  { %308 = vrot.lane.b32.xlu1 %v2487_v57, %s2354_s23 }
 0x2bf   :  { %v193_v58 = vpop.permute.xlu0 %192 }
 0x2c0   :  { %196 = vst.msk [vmem:[%s2801_s6] sm:$0x3] %vm65_vm0, %v193_v58  ;;  %2006 = vmatmul.mubr.msk.f32.vlgmr.msra.gmra.mrb[2].mxu0 %vm88_vm2, %v193_v58 }
 0x2c1   :  { %2177 = vmatpush3.bf16.msra.mxu0 %v2410_v5  ;;  %2027 = vmatprep.mubr.msk.f32.mxu0 %vm2351_vm1, %v2350_v4 }
 0x2c2   :  { %2178 = vmatprep.subr.bf16.mxu0 %v2349_v0 }
 0x2c3   :  { %v309_v59 = vpop.permute.xlu1 %308 }
 0x2c4   :  { %1840 = vst.msk [vmem:[%s2802_s7 + $0xe] sm:$0x3] %vm65_vm0, %v309_v59  ;;  %2017 = vmatmul.mubr.msk.f32.vlgmr.msra.gmra.mrb[2].mxu1 %vm88_vm2, %v309_v59 }
 0x2c5   :  { %2180 = vmatpush3.bf16.msra.mxu0 %v2434_v12  ;;  %2183 = vmatpush3.bf16.msra.mxu1 %v2425_v9 }
 0x2c6   :  { %2184 = vmatprep.subr.bf16.mxu1 %v2349_v0  ;;  %2038 = vmatprep.mubr.msk.f32.mxu1 %vm2351_vm1, %v2350_v4 }
 0x2c7   :  { %2187 = vmatprep.subr.bf16.mxu0 %v2349_v0 }
 0x2c9   :  { %2186 = vmatpush3.bf16.msra.mxu1 %v2438_v13 }
 0x2ca   :  { %2193 = vmatprep.subr.bf16.mxu1 %v2349_v0 }
 0x393   :  { %v383_v60 = vpop.f32.mrb[2].mxu0 }
 0x394   :  { %v384_v61 = vadd.f32 %v2462_v16, %v383_v60  ;;  %v2007_v62 = vpop.f32.mrb[3].mxu0 }
 0x396   :  { %395 = vrot.lane.b32.xlu0 %v384_v61, %s2352_s19  ;;  %v387_v6 = vadd.f32 %v1841_v3, %v384_v61 }
 0x397   :  { %v489_v63 = vpop.f32.mrb[2].mxu1 }
 0x398   :  { %v490_v1 = vadd.f32 %v2467_v18, %v489_v63  ;;  %v2018_v2 = vpop.f32.mrb[3].mxu1  ;;  %v1843_v8 = vmul.f32 -1.442695, %v387_v6 }
 0x39a   :  { %501 = vrot.lane.b32.xlu1 %v490_v1, %s2352_s19  ;;  %v493_v10 = vadd.f32 %v1845_v7, %v490_v1  ;;  %2265 = vpow2.f32 %v1843_v8 }
 0x39c   :  { %v1847_v11 = vmul.f32 -1.442695, %v493_v10 }
 0x39e   :  { %2267 = vpow2.f32 %v1847_v11 }
 0x3a4   :  { %v2266_v14 = vpop.eup %2265 }
 0x3a5   :  { %v391_v15 = vadd.f32 1.0, %v2266_v14 }
 0x3a7   :  { %2269 = vrcp.f32 %v391_v15 }
 0x3a8   :  { %v2268_v17 = vpop.eup %2267 }
 0x3a9   :  { %v497_v19 = vadd.f32 1.0, %v2268_v17 }
 0x3ab   :  { %2271 = vrcp.f32 %v497_v19 }
 0x3b1   :  { %v2270_v20 = vpop.eup %2269 }
 0x3b2   :  { %v405_v32 = vsub.f32 1.0, %v2270_v20  ;;  %v411_v34 = vmul.f32 %v2270_v20, %v2483_v52  ;;  %v1853_v52 = vld [vmem:[%s2800_s1 + $0xa] sm:$0x3] }
 0x3b5   :  { %v2272_v23 = vpop.eup %2271 }
 0x3b6   :  { %v511_v37 = vsub.f32 1.0, %v2272_v23  ;;  %v517_v39 = vmul.f32 %v2272_v23, %v2487_v57 }
 0x408   :  { %v396_v21 = vpop.permute.xlu0 %395 }
 0x409   :  { %v398_v22 = vmul.f32 %v2270_v20, %v396_v21 }
 0x40b   :  { %400 = vrot.lane.b32.xlu0 %v398_v22, %s2352_s19 }
 0x40c   :  { %v502_v24 = vpop.permute.xlu1 %501 }
 0x40d   :  { %v504_v25 = vmul.f32 %v2272_v23, %v502_v24 }
 0x40f   :  { %506 = vrot.lane.b32.xlu1 %v504_v25, %s2352_s19 }
 0x47d   :  { %v401_v26 = vpop.permute.xlu0 %400 }
 0x47e   :  { %v403_v27 = vadd.f32 %v1841_v3, %v401_v26 }
 0x480   :  { %2273 = vtanh.f32 %v403_v27 }
 0x481   :  { %v507_v28 = vpop.permute.xlu1 %506 }
 0x482   :  { %v509_v29 = vadd.f32 %v1845_v7, %v507_v28 }
 0x484   :  { %2275 = vtanh.f32 %v509_v29 }
 0x48a   :  { %v2274_v30 = vpop.eup %2273 }
 0x48b   :  { %407 = vrot.lane.b32.xlu0 %v2274_v30, %s2354_s23 }
 0x48e   :  { %v2276_v31 = vpop.eup %2275 }
 0x48f   :  { %513 = vrot.lane.b32.xlu1 %v2276_v31, %s2354_s23 }
 0x4fd   :  { %v408_v33 = vpop.permute.xlu0 %407 }
 0x4fe   :  { %v410_v35 = vmul.f32 %v408_v33, %v405_v32 }
 0x500   :  { %v2528_v36 = vadd.f32 %v411_v34, %v410_v35  ;;  %v1857_v34 = vld [vmem:[%s2799_s0 + $0x6] sm:$0x3] }
 0x501   :  { %v514_v38 = vpop.permute.xlu1 %513 }
 0x502   :  { %v516_v40 = vmul.f32 %v514_v38, %v511_v37  ;;  %414 = vrot.lane.b32.xlu0 %v2528_v36, %s2354_s23 }
 0x504   :  { %v2533_v41 = vadd.f32 %v517_v39, %v516_v40 }
 0x506   :  { %520 = vrot.lane.b32.xlu1 %v2533_v41, %s2354_s23 }
 0x574   :  { %v415_v42 = vpop.permute.xlu0 %414 }
 0x575   :  { %1844 = vst.msk [vmem:[%s2801_s6 + $0x2] sm:$0x3] %vm65_vm0, %v415_v42  ;;  %2028 = vmatmul.mubr.msk.f32.vlgmr.msra.gmra.mrb[4].mxu0 %vm88_vm2, %v415_v42 }
 0x576   :  { %2189 = vmatpush3.bf16.msra.mxu0 %v2410_v5  ;;  %2049 = vmatprep.mubr.msk.f32.mxu0 %vm2351_vm1, %v2350_v4 }
 0x577   :  { %2190 = vmatprep.subr.bf16.mxu0 %v2349_v0 }
 0x578   :  { %v521_v43 = vpop.permute.xlu1 %520 }
 0x579   :  { %1848 = vst.msk [vmem:[%s2802_s7 + $0xc] sm:$0x3] %vm65_vm0, %v521_v43  ;;  %2039 = vmatmul.mubr.msk.f32.vlgmr.msra.gmra.mrb[4].mxu1 %vm88_vm2, %v521_v43 }
 0x57a   :  { %2192 = vmatpush3.bf16.msra.mxu0 %v2434_v12  ;;  %2195 = vmatpush3.bf16.msra.mxu1 %v2425_v9 }
 0x57b   :  { %2196 = vmatprep.subr.bf16.mxu1 %v2349_v0  ;;  %2060 = vmatprep.mubr.msk.f32.mxu1 %vm2351_vm1, %v2350_v4 }
 0x57c   :  { %2199 = vmatprep.subr.bf16.mxu0 %v2349_v0 }
 0x57e   :  { %2198 = vmatpush3.bf16.msra.mxu1 %v2438_v13 }
 0x57f   :  { %2205 = vmatprep.subr.bf16.mxu1 %v2349_v0 }
 0x648   :  { %v595_v44 = vpop.f32.mrb[4].mxu0 }
 0x649   :  { %v596_v45 = vadd.f32 %v2462_v16, %v595_v44  ;;  %v2029_v46 = vpop.f32.mrb[5].mxu0 }
 0x64b   :  { %607 = vrot.lane.b32.xlu0 %v596_v45, %s2352_s19  ;;  %v599_v51 = vadd.f32 %v1849_v50, %v596_v45 }
 0x64c   :  { %v701_v47 = vpop.f32.mrb[4].mxu1 }
 0x64d   :  { %v702_v48 = vadd.f32 %v2467_v18, %v701_v47  ;;  %v2040_v49 = vpop.f32.mrb[5].mxu1  ;;  %v1851_v53 = vmul.f32 -1.442695, %v599_v51 }
 0x64f   :  { %713 = vrot.lane.b32.xlu1 %v702_v48, %s2352_s19  ;;  %v705_v54 = vadd.f32 %v1853_v52, %v702_v48  ;;  %2277 = vpow2.f32 %v1851_v53 }
 0x651   :  { %v1855_v55 = vmul.f32 -1.442695, %v705_v54 }
 0x653   :  { %2279 = vpow2.f32 %v1855_v55 }
 0x659   :  { %v2278_v56 = vpop.eup %2277 }
 0x65a   :  { %v603_v57 = vadd.f32 1.0, %v2278_v56 }
 0x65c   :  { %2281 = vrcp.f32 %v603_v57 }
 0x65d   :  { %v2280_v58 = vpop.eup %2279 }
 0x65e   :  { %v709_v59 = vadd.f32 1.0, %v2280_v58 }
 0x660   :  { %2283 = vrcp.f32 %v709_v59 }
 0x666   :  { %v2282_v60 = vpop.eup %2281 }
 0x667   :  { %v617_v14 = vsub.f32 1.0, %v2282_v60  ;;  %v623_v17 = vmul.f32 %v2282_v60, %v2528_v36  ;;  %v1861_v36 = vld [vmem:[%s2800_s1 + $0x8] sm:$0x3] }
 0x66a   :  { %v2284_v63 = vpop.eup %2283 }
 0x66b   :  { %v723_v21 = vsub.f32 1.0, %v2284_v63  ;;  %v729_v23 = vmul.f32 %v2284_v63, %v2533_v41 }
 0x6bd   :  { %v608_v61 = vpop.permute.xlu0 %607 }
 0x6be   :  { %v610_v62 = vmul.f32 %v2282_v60, %v608_v61 }
 0x6c0   :  { %612 = vrot.lane.b32.xlu0 %v610_v62, %s2352_s19 }
 0x6c1   :  { %v714_v1 = vpop.permute.xlu1 %713 }
 0x6c2   :  { %v716_v2 = vmul.f32 %v2284_v63, %v714_v1 }
 0x6c4   :  { %718 = vrot.lane.b32.xlu1 %v716_v2, %s2352_s19 }
 0x732   :  { %v613_v3 = vpop.permute.xlu0 %612 }
 0x733   :  { %v615_v6 = vadd.f32 %v1849_v50, %v613_v3 }
 0x735   :  { %2285 = vtanh.f32 %v615_v6 }
 0x736   :  { %v719_v7 = vpop.permute.xlu1 %718 }
 0x737   :  { %v721_v8 = vadd.f32 %v1853_v52, %v719_v7 }
 0x739   :  { %2287 = vtanh.f32 %v721_v8 }
 0x73f   :  { %v2286_v10 = vpop.eup %2285 }
 0x740   :  { %619 = vrot.lane.b32.xlu0 %v2286_v10, %s2354_s23 }
 0x743   :  { %v2288_v11 = vpop.eup %2287 }
 0x744   :  { %725 = vrot.lane.b32.xlu1 %v2288_v11, %s2354_s23 }
 0x7b2   :  { %v620_v15 = vpop.permute.xlu0 %619 }
 0x7b3   :  { %v622_v19 = vmul.f32 %v620_v15, %v617_v14 }
 0x7b5   :  { %v2574_v20 = vadd.f32 %v623_v17, %v622_v19  ;;  %v1865_v17 = vld [vmem:[%s2799_s0 + $0x8] sm:$0x3] }
 0x7b6   :  { %v726_v22 = vpop.permute.xlu1 %725 }
 0x7b7   :  { %v728_v24 = vmul.f32 %v726_v22, %v723_v21  ;;  %626 = vrot.lane.b32.xlu0 %v2574_v20, %s2354_s23 }
 0x7b9   :  { %v2579_v25 = vadd.f32 %v729_v23, %v728_v24 }
 0x7bb   :  { %732 = vrot.lane.b32.xlu1 %v2579_v25, %s2354_s23 }
 0x829   :  { %v627_v26 = vpop.permute.xlu0 %626 }
 0x82a   :  { %1852 = vst.msk [vmem:[%s2801_s6 + $0x4] sm:$0x3] %vm65_vm0, %v627_v26  ;;  %2050 = vmatmul.mubr.msk.f32.vlgmr.msra.gmra.mrb[6].mxu0 %vm88_vm2, %v627_v26 }
 0x82b   :  { %2201 = vmatpush3.bf16.msra.mxu0 %v2410_v5  ;;  %2071 = vmatprep.mubr.msk.f32.mxu0 %vm2351_vm1, %v2350_v4 }
 0x82c   :  { %2202 = vmatprep.subr.bf16.mxu0 %v2349_v0 }
 0x82d   :  { %v733_v27 = vpop.permute.xlu1 %732 }
 0x82e   :  { %1856 = vst.msk [vmem:[%s2802_s7 + $0xa] sm:$0x3] %vm65_vm0, %v733_v27  ;;  %2061 = vmatmul.mubr.msk.f32.vlgmr.msra.gmra.mrb[6].mxu1 %vm88_vm2, %v733_v27 }
 0x82f   :  { %2204 = vmatpush3.bf16.msra.mxu0 %v2434_v12  ;;  %2207 = vmatpush3.bf16.msra.mxu1 %v2425_v9 }
 0x830   :  { %2208 = vmatprep.subr.bf16.mxu1 %v2349_v0  ;;  %2082 = vmatprep.mubr.msk.f32.mxu1 %vm2351_vm1, %v2350_v4 }
 0x831   :  { %2211 = vmatprep.subr.bf16.mxu0 %v2349_v0 }
 0x833   :  { %2210 = vmatpush3.bf16.msra.mxu1 %v2438_v13 }
 0x834   :  { %2217 = vmatprep.subr.bf16.mxu1 %v2349_v0 }
 0x8fd   :  { %v807_v28 = vpop.f32.mrb[6].mxu0 }
 0x8fe   :  { %v808_v29 = vadd.f32 %v2462_v16, %v807_v28  ;;  %v2051_v30 = vpop.f32.mrb[7].mxu0 }
 0x900   :  { %819 = vrot.lane.b32.xlu0 %v808_v29, %s2352_s19  ;;  %v811_v35 = vadd.f32 %v1857_v34, %v808_v29 }
 0x901   :  { %v913_v31 = vpop.f32.mrb[6].mxu1 }
 0x902   :  { %v914_v32 = vadd.f32 %v2467_v18, %v913_v31  ;;  %v2062_v33 = vpop.f32.mrb[7].mxu1  ;;  %v1859_v37 = vmul.f32 -1.442695, %v811_v35 }
 0x904   :  { %925 = vrot.lane.b32.xlu1 %v914_v32, %s2352_s19  ;;  %v917_v38 = vadd.f32 %v1861_v36, %v914_v32  ;;  %2289 = vpow2.f32 %v1859_v37 }
 0x906   :  { %v1863_v39 = vmul.f32 -1.442695, %v917_v38 }
 0x908   :  { %2291 = vpow2.f32 %v1863_v39 }
 0x90e   :  { %v2290_v40 = vpop.eup %2289 }
 0x90f   :  { %v815_v41 = vadd.f32 1.0, %v2290_v40 }
 0x911   :  { %2293 = vrcp.f32 %v815_v41 }
 0x912   :  { %v2292_v42 = vpop.eup %2291 }
 0x913   :  { %v921_v43 = vadd.f32 1.0, %v2292_v42 }
 0x915   :  { %2295 = vrcp.f32 %v921_v43 }
 0x91b   :  { %v2294_v44 = vpop.eup %2293 }
 0x91c   :  { %v829_v56 = vsub.f32 1.0, %v2294_v44  ;;  %v835_v58 = vmul.f32 %v2294_v44, %v2574_v20  ;;  %v1869_v20 = vld [vmem:[%s2800_s1 + $0x6] sm:$0x3] }
 0x91f   :  { %v2296_v47 = vpop.eup %2295 }
 0x920   :  { %v935_v61 = vsub.f32 1.0, %v2296_v47  ;;  %v941_v63 = vmul.f32 %v2296_v47, %v2579_v25 }
 0x972   :  { %v820_v45 = vpop.permute.xlu0 %819 }
 0x973   :  { %v822_v46 = vmul.f32 %v2294_v44, %v820_v45 }
 0x975   :  { %824 = vrot.lane.b32.xlu0 %v822_v46, %s2352_s19 }
 0x976   :  { %v926_v48 = vpop.permute.xlu1 %925 }
 0x977   :  { %v928_v49 = vmul.f32 %v2296_v47, %v926_v48 }
 0x979   :  { %930 = vrot.lane.b32.xlu1 %v928_v49, %s2352_s19 }
 0x9e7   :  { %v825_v50 = vpop.permute.xlu0 %824 }
 0x9e8   :  { %v827_v51 = vadd.f32 %v1857_v34, %v825_v50 }
 0x9ea   :  { %2297 = vtanh.f32 %v827_v51 }
 0x9eb   :  { %v931_v52 = vpop.permute.xlu1 %930 }
 0x9ec   :  { %v933_v53 = vadd.f32 %v1861_v36, %v931_v52 }
 0x9ee   :  { %2299 = vtanh.f32 %v933_v53 }
 0x9f4   :  { %v2298_v54 = vpop.eup %2297 }
 0x9f5   :  { %831 = vrot.lane.b32.xlu0 %v2298_v54, %s2354_s23 }
 0x9f8   :  { %v2300_v55 = vpop.eup %2299 }
 0x9f9   :  { %937 = vrot.lane.b32.xlu1 %v2300_v55, %s2354_s23 }
 0xa67   :  { %v832_v57 = vpop.permute.xlu0 %831 }
 0xa68   :  { %v834_v59 = vmul.f32 %v832_v57, %v829_v56 }
 0xa6a   :  { %v2620_v60 = vadd.f32 %v835_v58, %v834_v59  ;;  %v1873_v58 = vld [vmem:[%s2799_s0 + $0xa] sm:$0x3] }
 0xa6b   :  { %v938_v62 = vpop.permute.xlu1 %937 }
 0xa6c   :  { %v940_v1 = vmul.f32 %v938_v62, %v935_v61  ;;  %838 = vrot.lane.b32.xlu0 %v2620_v60, %s2354_s23 }
 0xa6e   :  { %v2625_v2 = vadd.f32 %v941_v63, %v940_v1 }
 0xa70   :  { %944 = vrot.lane.b32.xlu1 %v2625_v2, %s2354_s23 }
 0xade   :  { %v839_v3 = vpop.permute.xlu0 %838 }
 0xadf   :  { %1860 = vst.msk [vmem:[%s2801_s6 + $0x6] sm:$0x3] %vm65_vm0, %v839_v3  ;;  %2072 = vmatmul.mubr.msk.f32.vlgmr.msra.gmra.mrb[8].mxu0 %vm88_vm2, %v839_v3 }
 0xae0   :  { %2213 = vmatpush3.bf16.msra.mxu0 %v2410_v5  ;;  %2093 = vmatprep.mubr.msk.f32.mxu0 %vm2351_vm1, %v2350_v4 }
 0xae1   :  { %2214 = vmatprep.subr.bf16.mxu0 %v2349_v0 }
 0xae2   :  { %v945_v6 = vpop.permute.xlu1 %944 }
 0xae3   :  { %1864 = vst.msk [vmem:[%s2802_s7 + $0x8] sm:$0x3] %vm65_vm0, %v945_v6  ;;  %2083 = vmatmul.mubr.msk.f32.vlgmr.msra.gmra.mrb[8].mxu1 %vm88_vm2, %v945_v6 }
 0xae4   :  { %2216 = vmatpush3.bf16.msra.mxu0 %v2434_v12  ;;  %2219 = vmatpush3.bf16.msra.mxu1 %v2425_v9 }
 0xae5   :  { %2220 = vmatprep.subr.bf16.mxu1 %v2349_v0  ;;  %2104 = vmatprep.mubr.msk.f32.mxu1 %vm2351_vm1, %v2350_v4 }
 0xae6   :  { %2223 = vmatprep.subr.bf16.mxu0 %v2349_v0 }
 0xae8   :  { %2222 = vmatpush3.bf16.msra.mxu1 %v2438_v13 }
 0xae9   :  { %2229 = vmatprep.subr.bf16.mxu1 %v2349_v0 }
 0xbb2   :  { %v1019_v7 = vpop.f32.mrb[8].mxu0 }
 0xbb3   :  { %v1020_v8 = vadd.f32 %v2462_v16, %v1019_v7  ;;  %v2073_v10 = vpop.f32.mrb[9].mxu0 }
 0xbb5   :  { %1031 = vrot.lane.b32.xlu0 %v1020_v8, %s2352_s19  ;;  %v1023_v19 = vadd.f32 %v1865_v17, %v1020_v8 }
 0xbb6   :  { %v1125_v11 = vpop.f32.mrb[8].mxu1 }
 0xbb7   :  { %v1126_v14 = vadd.f32 %v2467_v18, %v1125_v11  ;;  %v2084_v15 = vpop.f32.mrb[9].mxu1  ;;  %v1867_v21 = vmul.f32 -1.442695, %v1023_v19 }
 0xbb9   :  { %1137 = vrot.lane.b32.xlu1 %v1126_v14, %s2352_s19  ;;  %v1129_v22 = vadd.f32 %v1869_v20, %v1126_v14  ;;  %2301 = vpow2.f32 %v1867_v21 }
 0xbbb   :  { %v1871_v23 = vmul.f32 -1.442695, %v1129_v22 }
 0xbbd   :  { %2303 = vpow2.f32 %v1871_v23 }
 0xbc3   :  { %v2302_v24 = vpop.eup %2301 }
 0xbc4   :  { %v1027_v25 = vadd.f32 1.0, %v2302_v24 }
 0xbc6   :  { %2305 = vrcp.f32 %v1027_v25 }
 0xbc7   :  { %v2304_v26 = vpop.eup %2303 }
 0xbc8   :  { %v1133_v27 = vadd.f32 1.0, %v2304_v26 }
 0xbca   :  { %2307 = vrcp.f32 %v1133_v27 }
 0xbd0   :  { %v2306_v28 = vpop.eup %2305 }
 0xbd1   :  { %v1041_v40 = vsub.f32 1.0, %v2306_v28  ;;  %v1047_v42 = vmul.f32 %v2306_v28, %v2620_v60  ;;  %v1877_v60 = vld [vmem:[%s2800_s1 + $0x4] sm:$0x3] }
 0xbd4   :  { %v2308_v31 = vpop.eup %2307 }
 0xbd5   :  { %v1147_v45 = vsub.f32 1.0, %v2308_v31  ;;  %v1153_v47 = vmul.f32 %v2308_v31, %v2625_v2 }
 0xc27   :  { %v1032_v29 = vpop.permute.xlu0 %1031 }
 0xc28   :  { %v1034_v30 = vmul.f32 %v2306_v28, %v1032_v29 }
 0xc2a   :  { %1036 = vrot.lane.b32.xlu0 %v1034_v30, %s2352_s19 }
 0xc2b   :  { %v1138_v32 = vpop.permute.xlu1 %1137 }
 0xc2c   :  { %v1140_v33 = vmul.f32 %v2308_v31, %v1138_v32 }
 0xc2e   :  { %1142 = vrot.lane.b32.xlu1 %v1140_v33, %s2352_s19 }
 0xc9c   :  { %v1037_v34 = vpop.permute.xlu0 %1036 }
 0xc9d   :  { %v1039_v35 = vadd.f32 %v1865_v17, %v1037_v34 }
 0xc9f   :  { %2309 = vtanh.f32 %v1039_v35 }
 0xca0   :  { %v1143_v36 = vpop.permute.xlu1 %1142 }
 0xca1   :  { %v1145_v37 = vadd.f32 %v1869_v20, %v1143_v36 }
 0xca3   :  { %2311 = vtanh.f32 %v1145_v37 }
 0xca9   :  { %v2310_v38 = vpop.eup %2309 }
 0xcaa   :  { %1043 = vrot.lane.b32.xlu0 %v2310_v38, %s2354_s23 }
 0xcad   :  { %v2312_v39 = vpop.eup %2311 }
 0xcae   :  { %1149 = vrot.lane.b32.xlu1 %v2312_v39, %s2354_s23 }
 0xd1c   :  { %v1044_v41 = vpop.permute.xlu0 %1043 }
 0xd1d   :  { %v1046_v43 = vmul.f32 %v1044_v41, %v1041_v40 }
 0xd1f   :  { %v2666_v44 = vadd.f32 %v1047_v42, %v1046_v43 }
 0xd20   :  { %v1150_v46 = vpop.permute.xlu1 %1149 }
 0xd21   :  { %v1152_v48 = vmul.f32 %v1150_v46, %v1147_v45  ;;  %1050 = vrot.lane.b32.xlu0 %v2666_v44, %s2354_s23 }
 0xd23   :  { %v2671_v49 = vadd.f32 %v1153_v47, %v1152_v48 }
 0xd25   :  { %1156 = vrot.lane.b32.xlu1 %v2671_v49, %s2354_s23 }
 0xd93   :  { %v1051_v50 = vpop.permute.xlu0 %1050 }
 0xd94   :  { %1868 = vst.msk [vmem:[%s2801_s6 + $0x8] sm:$0x3] %vm65_vm0, %v1051_v50  ;;  %2094 = vmatmul.mubr.msk.f32.vlgmr.msra.gmra.mrb[10].mxu0 %vm88_vm2, %v1051_v50 }
 0xd95   :  { %2225 = vmatpush3.bf16.msra.mxu0 %v2410_v5  ;;  %2115 = vmatprep.mubr.msk.f32.mxu0 %vm2351_vm1, %v2350_v4 }
 0xd96   :  { %2226 = vmatprep.subr.bf16.mxu0 %v2349_v0 }
 0xd97   :  { %v1157_v51 = vpop.permute.xlu1 %1156 }
 0xd98   :  { %1872 = vst.msk [vmem:[%s2802_s7 + $0x6] sm:$0x3] %vm65_vm0, %v1157_v51  ;;  %2105 = vmatmul.mubr.msk.f32.vlgmr.msra.gmra.mrb[10].mxu1 %vm88_vm2, %v1157_v51 }
 0xd99   :  { %2228 = vmatpush3.bf16.msra.mxu0 %v2434_v12  ;;  %2231 = vmatpush3.bf16.msra.mxu1 %v2425_v9 }
 0xd9a   :  { %2232 = vmatprep.subr.bf16.mxu1 %v2349_v0  ;;  %2126 = vmatprep.mubr.msk.f32.mxu1 %vm2351_vm1, %v2350_v4 }
 0xd9b   :  { %2235 = vmatprep.subr.bf16.mxu0 %v2349_v0 }
 0xd9d   :  { %2234 = vmatpush3.bf16.msra.mxu1 %v2438_v13 }
 0xd9e   :  { %2241 = vmatprep.subr.bf16.mxu1 %v2349_v0 }
 0xe67   :  { %v1231_v52 = vpop.f32.mrb[10].mxu0 }
 0xe68   :  { %v1232_v53 = vadd.f32 %v2462_v16, %v1231_v52  ;;  %v2095_v54 = vpop.f32.mrb[11].mxu0 }
 0xe6a   :  { %1243 = vrot.lane.b32.xlu0 %v1232_v53, %s2352_s19  ;;  %v1235_v59 = vadd.f32 %v1873_v58, %v1232_v53 }
 0xe6b   :  { %v1337_v55 = vpop.f32.mrb[10].mxu1 }
 0xe6c   :  { %v1338_v56 = vadd.f32 %v2467_v18, %v1337_v55  ;;  %v2106_v57 = vpop.f32.mrb[11].mxu1  ;;  %v1875_v61 = vmul.f32 -1.442695, %v1235_v59 }
 0xe6e   :  { %1349 = vrot.lane.b32.xlu1 %v1338_v56, %s2352_s19  ;;  %v1341_v62 = vadd.f32 %v1877_v60, %v1338_v56  ;;  %2313 = vpow2.f32 %v1875_v61 }
 0xe70   :  { %v1879_v63 = vmul.f32 -1.442695, %v1341_v62 }
 0xe72   :  { %2315 = vpow2.f32 %v1879_v63 }
 0xe78   :  { %v2314_v1 = vpop.eup %2313 }
 0xe79   :  { %v1239_v2 = vadd.f32 1.0, %v2314_v1 }
 0xe7b   :  { %2317 = vrcp.f32 %v1239_v2 }
 0xe7c   :  { %v2316_v3 = vpop.eup %2315 }
 0xe7d   :  { %v1345_v6 = vadd.f32 1.0, %v2316_v3 }
 0xe7f   :  { %2319 = vrcp.f32 %v1345_v6 }
 0xe85   :  { %v2318_v7 = vpop.eup %2317 }
 0xe86   :  { %v1253_v24 = vsub.f32 1.0, %v2318_v7  ;;  %v1259_v26 = vmul.f32 %v2318_v7, %v2666_v44 }
 0xe89   :  { %v2320_v11 = vpop.eup %2319 }
 0xe8a   :  { %v1359_v29 = vsub.f32 1.0, %v2320_v11  ;;  %v1365_v31 = vmul.f32 %v2320_v11, %v2671_v49 }
 0xedc   :  { %v1244_v8 = vpop.permute.xlu0 %1243 }
 0xedd   :  { %v1246_v10 = vmul.f32 %v2318_v7, %v1244_v8 }
 0xedf   :  { %1248 = vrot.lane.b32.xlu0 %v1246_v10, %s2352_s19 }
 0xee0   :  { %v1350_v14 = vpop.permute.xlu1 %1349 }
 0xee1   :  { %v1352_v15 = vmul.f32 %v2320_v11, %v1350_v14 }
 0xee3   :  { %1354 = vrot.lane.b32.xlu1 %v1352_v15, %s2352_s19 }
 0xf51   :  { %v1249_v17 = vpop.permute.xlu0 %1248 }
 0xf52   :  { %v1251_v19 = vadd.f32 %v1873_v58, %v1249_v17 }
 0xf54   :  { %2321 = vtanh.f32 %v1251_v19 }
 0xf55   :  { %v1355_v20 = vpop.permute.xlu1 %1354 }
 0xf56   :  { %v1357_v21 = vadd.f32 %v1877_v60, %v1355_v20  ;;  %v1889_v20 = vld [vmem:[%s2799_s0 + $0xe] sm:$0x3] }
 0xf58   :  { %2323 = vtanh.f32 %v1357_v21 }
 0xf5e   :  { %v2322_v22 = vpop.eup %2321 }
 0xf5f   :  { %1255 = vrot.lane.b32.xlu0 %v2322_v22, %s2354_s23  ;;  %v1691_v22 = vld [vmem:[%s2800_s1] sm:$0x3] }
 0xf62   :  { %v2324_v23 = vpop.eup %2323 }
 0xf63   :  { %1361 = vrot.lane.b32.xlu1 %v2324_v23, %s2354_s23 }
 0xfd1   :  { %v1256_v25 = vpop.permute.xlu0 %1255 }
 0xfd2   :  { %v1258_v27 = vmul.f32 %v1256_v25, %v1253_v24 }
 0xfd4   :  { %v2712_v28 = vadd.f32 %v1259_v26, %v1258_v27 }
 0xfd5   :  { %v1362_v30 = vpop.permute.xlu1 %1361 }
 0xfd6   :  { %v1364_v32 = vmul.f32 %v1362_v30, %v1359_v29  ;;  %1262 = vrot.lane.b32.xlu0 %v2712_v28, %s2354_s23 }
 0xfd8   :  { %v2717_v33 = vadd.f32 %v1365_v31, %v1364_v32 }
 0xfda   :  { %1368 = vrot.lane.b32.xlu1 %v2717_v33, %s2354_s23 }
0x1048   :  { %v1263_v34 = vpop.permute.xlu0 %1262 }
0x1049   :  { %1876 = vst.msk [vmem:[%s2801_s6 + $0xa] sm:$0x3] %vm65_vm0, %v1263_v34  ;;  %2116 = vmatmul.mubr.msk.f32.vlgmr.msra.gmra.mrb[12].mxu0 %vm88_vm2, %v1263_v34 }
0x104a   :  { %2237 = vmatpush3.bf16.msra.mxu0 %v2410_v5  ;;  %2137 = vmatprep.mubr.msk.f32.mxu0 %vm2351_vm1, %v2350_v4 }
0x104b   :  { %2238 = vmatprep.subr.bf16.mxu0 %v2349_v0 }
0x104c   :  { %v1369_v35 = vpop.permute.xlu1 %1368 }
0x104d   :  { %1880 = vst.msk [vmem:[%s2802_s7 + $0x4] sm:$0x3] %vm65_vm0, %v1369_v35  ;;  %2127 = vmatmul.mubr.msk.f32.vlgmr.msra.gmra.mrb[12].mxu1 %vm88_vm2, %v1369_v35 }
0x104e   :  { %2240 = vmatpush3.bf16.msra.mxu0 %v2434_v12  ;;  %2243 = vmatpush3.bf16.msra.mxu1 %v2425_v9 }
0x104f   :  { %2244 = vmatprep.subr.bf16.mxu1 %v2349_v0  ;;  %2148 = vmatprep.mubr.msk.f32.mxu1 %vm2351_vm1, %v2350_v4  ;;  %v1881_v0 = vld [vmem:[%s2799_s0 + $0xc] sm:$0x3]  ;;  %v1885_v4 = vld [vmem:[%s2800_s1 + $0x2] sm:$0x3] }
0x1052   :  { %2246 = vmatpush3.bf16.msra.mxu1 %v2438_v13 }
0x111c   :  { %v1443_v5 = vpop.f32.mrb[12].mxu0 }
0x111d   :  { %v1444_v36 = vadd.f32 %v2462_v16, %v1443_v5  ;;  %v2117_v37 = vpop.f32.mrb[13].mxu0 }
0x111f   :  { %1455 = vrot.lane.b32.xlu0 %v1444_v36, %s2352_s19  ;;  %v1447_v9 = vadd.f32 %v1881_v0, %v1444_v36 }
0x1120   :  { %v1549_v38 = vpop.f32.mrb[12].mxu1 }
0x1121   :  { %v1550_v39 = vadd.f32 %v2467_v18, %v1549_v38  ;;  %v2128_v40 = vpop.f32.mrb[13].mxu1  ;;  %v1883_v12 = vmul.f32 -1.442695, %v1447_v9 }
0x1123   :  { %1561 = vrot.lane.b32.xlu1 %v1550_v39, %s2352_s19  ;;  %v1553_v13 = vadd.f32 %v1885_v4, %v1550_v39  ;;  %2325 = vpow2.f32 %v1883_v12 }
0x1125   :  { %v1887_v41 = vmul.f32 -1.442695, %v1553_v13 }
0x1127   :  { %2327 = vpow2.f32 %v1887_v41 }
0x112d   :  { %v2326_v42 = vpop.eup %2325 }
0x112e   :  { %v1451_v43 = vadd.f32 1.0, %v2326_v42 }
0x1130   :  { %2329 = vrcp.f32 %v1451_v43 }
0x1131   :  { %v2328_v44 = vpop.eup %2327 }
0x1132   :  { %v1557_v45 = vadd.f32 1.0, %v2328_v44 }
0x1134   :  { %2331 = vrcp.f32 %v1557_v45 }
0x113a   :  { %v2330_v46 = vpop.eup %2329 }
0x113b   :  { %v1465_v58 = vsub.f32 1.0, %v2330_v46  ;;  %v1471_v60 = vmul.f32 %v2330_v46, %v2712_v28 }
0x113e   :  { %v2332_v49 = vpop.eup %2331 }
0x113f   :  { %v1571_v63 = vsub.f32 1.0, %v2332_v49  ;;  %v1577_v2 = vmul.f32 %v2332_v49, %v2717_v33 }
0x1191   :  { %v1456_v47 = vpop.permute.xlu0 %1455 }
0x1192   :  { %v1458_v48 = vmul.f32 %v2330_v46, %v1456_v47 }
0x1194   :  { %1460 = vrot.lane.b32.xlu0 %v1458_v48, %s2352_s19 }
0x1195   :  { %v1562_v50 = vpop.permute.xlu1 %1561 }
0x1196   :  { %v1564_v51 = vmul.f32 %v2332_v49, %v1562_v50 }
0x1198   :  { %1566 = vrot.lane.b32.xlu1 %v1564_v51, %s2352_s19 }
0x1206   :  { %v1461_v52 = vpop.permute.xlu0 %1460 }
0x1207   :  { %v1463_v53 = vadd.f32 %v1881_v0, %v1461_v52 }
0x1209   :  { %2333 = vtanh.f32 %v1463_v53 }
0x120a   :  { %v1567_v54 = vpop.permute.xlu1 %1566 }
0x120b   :  { %v1569_v55 = vadd.f32 %v1885_v4, %v1567_v54 }
0x120d   :  { %2335 = vtanh.f32 %v1569_v55 }
0x1213   :  { %v2334_v56 = vpop.eup %2333 }
0x1214   :  { %1467 = vrot.lane.b32.xlu0 %v2334_v56, %s2354_s23 }
0x1217   :  { %v2336_v57 = vpop.eup %2335 }
0x1218   :  { %1573 = vrot.lane.b32.xlu1 %v2336_v57, %s2354_s23 }
0x1286   :  { %v1468_v59 = vpop.permute.xlu0 %1467 }
0x1287   :  { %v1470_v61 = vmul.f32 %v1468_v59, %v1465_v58 }
0x1289   :  { %v1472_v62 = vadd.f32 %v1471_v60, %v1470_v61 }
0x128a   :  { %v1574_v1 = vpop.permute.xlu1 %1573 }
0x128b   :  { %v1576_v3 = vmul.f32 %v1574_v1, %v1571_v63  ;;  %1474 = vrot.lane.b32.xlu0 %v1472_v62, %s2354_s23 }
0x128d   :  { %v1578_v6 = vadd.f32 %v1577_v2, %v1576_v3 }
0x128f   :  { %1580 = vrot.lane.b32.xlu1 %v1578_v6, %s2354_s23 }
0x12fd   :  { %v1475_v7 = vpop.permute.xlu0 %1474 }
0x12fe   :  { %1884 = vst.msk [vmem:[%s2801_s6 + $0xc] sm:$0x3] %vm65_vm0, %v1475_v7  ;;  %2138 = vmatmul.mubr.msk.f32.vlgmr.msra.gmra.mrb[14].mxu0 %vm88_vm2, %v1475_v7 }
0x1301   :  { %v1581_v8 = vpop.permute.xlu1 %1580 }
0x1302   :  { %1888 = vst.msk [vmem:[%s2802_s7 + $0x2] sm:$0x3] %vm65_vm0, %v1581_v8  ;;  %2149 = vmatmul.mubr.msk.f32.vlgmr.msra.gmra.mrb[14].mxu1 %vm88_vm2, %v1581_v8 }
0x13d1   :  { %v1655_v10 = vpop.f32.mrb[14].mxu0 }
0x13d2   :  { %v1656_v11 = vadd.f32 %v2462_v16, %v1655_v10  ;;  %v2139_v14 = vpop.f32.mrb[15].mxu0 }
0x13d4   :  { %1667 = vrot.lane.b32.xlu0 %v1656_v11, %s2352_s19  ;;  %v1659_v21 = vadd.f32 %v1889_v20, %v1656_v11 }
0x13d5   :  { %v1760_v15 = vpop.f32.mrb[14].mxu1 }
0x13d6   :  { %v1761_v17 = vadd.f32 %v2467_v18, %v1760_v15  ;;  %v2150_v19 = vpop.f32.mrb[15].mxu1  ;;  %v1891_v23 = vmul.f32 -1.442695, %v1659_v21 }
0x13d8   :  { %1772 = vrot.lane.b32.xlu1 %v1761_v17, %s2352_s19  ;;  %v1764_v16 = vadd.f32 %v1761_v17, %v1691_v22  ;;  %2337 = vpow2.f32 %v1891_v23 }
0x13da   :  { %v1894_v24 = vmul.f32 -1.442695, %v1764_v16 }
0x13dc   :  { %2339 = vpow2.f32 %v1894_v24 }
0x13e2   :  { %v2338_v25 = vpop.eup %2337 }
0x13e3   :  { %v1663_v26 = vadd.f32 1.0, %v2338_v25 }
0x13e5   :  { %2341 = vrcp.f32 %v1663_v26 }
0x13e6   :  { %v2340_v18 = vpop.eup %2339 }
0x13e7   :  { %v1768_v27 = vadd.f32 1.0, %v2340_v18 }
0x13e9   :  { %2343 = vrcp.f32 %v1768_v27 }
0x13ef   :  { %v2342_v28 = vpop.eup %2341 }
0x13f0   :  { %v1677_v39 = vsub.f32 1.0, %v2342_v28  ;;  %v1683_v0 = vmul.f32 %v2342_v28, %v1472_v62 }
0x13f3   :  { %v2344_v31 = vpop.eup %2343 }
0x13f4   :  { %v1782_v12 = vsub.f32 1.0, %v2344_v31  ;;  %v1788_v41 = vmul.f32 %v2344_v31, %v1578_v6 }
0x1446   :  { %v1668_v29 = vpop.permute.xlu0 %1667 }
0x1447   :  { %v1670_v30 = vmul.f32 %v2342_v28, %v1668_v29 }
0x1449   :  { %1672 = vrot.lane.b32.xlu0 %v1670_v30, %s2352_s19 }
0x144a   :  { %v1773_v32 = vpop.permute.xlu1 %1772 }
0x144b   :  { %v1775_v33 = vmul.f32 %v2344_v31, %v1773_v32 }
0x144d   :  { %1777 = vrot.lane.b32.xlu1 %v1775_v33, %s2352_s19 }
0x14bb   :  { %v1673_v34 = vpop.permute.xlu0 %1672 }
0x14bc   :  { %v1675_v35 = vadd.f32 %v1889_v20, %v1673_v34 }
0x14be   :  { %2345 = vtanh.f32 %v1675_v35 }
0x14bf   :  { %v1778_v5 = vpop.permute.xlu1 %1777 }
0x14c0   :  { %v1780_v36 = vadd.f32 %v1778_v5, %v1691_v22 }
0x14c2   :  { %2347 = vtanh.f32 %v1780_v36 }
0x14c8   :  { %v2346_v37 = vpop.eup %2345 }
0x14c9   :  { %1679 = vrot.lane.b32.xlu0 %v2346_v37, %s2354_s23 }
0x14cc   :  { %v2348_v38 = vpop.eup %2347 }
0x14cd   :  { %1784 = vrot.lane.b32.xlu1 %v2348_v38, %s2354_s23 }
0x153b   :  { %v1680_v40 = vpop.permute.xlu0 %1679 }
0x153c   :  { %v1682_v9 = vmul.f32 %v1680_v40, %v1677_v39 }
0x153e   :  { %v1684_v4 = vadd.f32 %v1683_v0, %v1682_v9 }
0x153f   :  { %v1785_v13 = vpop.permute.xlu1 %1784 }
0x1540   :  { %v1787_v42 = vmul.f32 %v1785_v13, %v1782_v12  ;;  %1686 = vrot.lane.b32.xlu0 %v1684_v4, %s2354_s23 }
0x1542   :  { %v1789_v43 = vadd.f32 %v1788_v41, %v1787_v42 }
0x1544   :  { %1791 = vrot.lane.b32.xlu1 %v1789_v43, %s2354_s23 }
0x15b2   :  { %v1687_v44 = vpop.permute.xlu0 %1686 }
0x15b3   :  { %1892 = vst.msk [vmem:[%s2801_s6 + $0xe] sm:$0x3] %vm65_vm0, %v1687_v44  ;;  %1795 = vst.msk [vmem:[#allocation2] sm:$0x3] %vm65_vm0, %v1687_v44 }
0x15b6   :  { %v1792_v45 = vpop.permute.xlu1 %1791 }
0x15b7   :  { %1794 = vst.msk [vmem:[%s2802_s7] sm:$0x3] %vm65_vm0, %v1792_v45  ;;  %1796 = vst.msk [vmem:[#allocation2 + $0x2] sm:$0x3] %vm65_vm0, %v1792_v45 }

</bundles_post_ra>
